<compile_context>
chip_gen: v5e
topology: v5e:2x2
jax: 0.10.0
libtpu: 0.0.40
codegen_flags: <defaults>
</compile_context>

<pallas_src>
import jax
import jax.numpy as jnp
from jax import lax
from jax.experimental import pallas as pl
from jax.experimental.pallas import tpu as pltpu

_BN_EPS = 1e-5  # PyTorch BatchNorm2d default


def _fold_bn(conv_bias, bn, eps=_BN_EPS):
    """Fold conv bias + BatchNorm (gamma, beta, mean, var) into scale/bias."""
    gamma, beta, mean, var = bn
    scale = gamma / jnp.sqrt(var + eps)
    bias = (conv_bias - mean) * scale + beta
    return scale.astype(jnp.float32), bias.astype(jnp.float32)


def basic_block_forward(x, w1, b1, bn1, w2, b2, bn2, *,
                        stride=1, pad=1, dilation=1, downsample=None,
                        negative_slope=0.2):
    """Forward pass of BasicBlock.

    x  : (N, Cin, H, W) float32 (NCHW, like the PyTorch module)
    w1 : (Cmid, Cin, 3, 3), b1: (Cmid,), bn1: (gamma, beta, mean, var) of (Cmid,)
    w2 : (Cout, Cmid, 3, 3), b2: (Cout,), bn2: (gamma, beta, mean, var) of (Cout,)
    Returns (N, Cout, H, W) float32.
    """
    assert downsample is None, "only the downsample=None path is implemented"
    assert stride == 1, "identity residual requires stride == 1"

    N, Cin, H, W = x.shape
    Cmid = w1.shape[0]
    Cout = w2.shape[0]
    p = dilation if dilation > 1 else pad          # padding used by both convs
    Ho = (H + 2 * p - dilation * 2 - 1) // stride + 1
    Wo = (W + 2 * p - dilation * 2 - 1) // stride + 1
    assert (Ho, Wo, Cout) == (H, W, Cin), "identity residual requires matching shapes"

    Hp, Wp = H + 2 * p, W + 2 * p                  # padded input extents
    Hm, Wm = Ho + 2 * p, Wo + 2 * p                # padded intermediate extents

    # ---- fold BN + conv bias into per-channel scale / bias ----------------
    s1, fb1 = _fold_bn(b1, bn1)
    s2, fb2 = _fold_bn(b2, bn2)
    sb1 = jnp.stack([s1, fb1], axis=0)             # (2, Cmid)
    sb2 = jnp.stack([s2, fb2], axis=0)             # (2, Cout)

    # ---- NCHW -> NHWC, zero-pad spatially for conv1 ------------------------
    x_nhwc = jnp.transpose(x, (0, 2, 3, 1)).astype(jnp.float32)
    xp = jnp.pad(x_nhwc, ((0, 0), (p, p), (p, p), (0, 0)))

    # ---- OIHW -> HWIO weights ----------------------------------------------
    w1_hwio = jnp.transpose(w1, (2, 3, 1, 0)).astype(jnp.float32)  # (3,3,Cin,Cmid)
    w2_hwio = jnp.transpose(w2, (2, 3, 1, 0)).astype(jnp.float32)  # (3,3,Cmid,Cout)

    neg = float(negative_slope)
    dil = int(dilation)

    def kernel(xp_ref, w1_ref, sb1_ref, w2_ref, sb2_ref, o_ref, mid_ref):
        # xp_ref : (Hp, Wp, Cin)   padded input (batch dim squeezed)
        # w*_ref : (3, 3, Ci, Co)  conv weights
        # sb*_ref: (2, Co)         row0 = BN scale, row1 = BN+conv bias
        # o_ref  : (Ho, Wo, Cout)
        # mid_ref: (Hm, Wm, Cmid)  VMEM scratch for padded conv1 activation

        # ---------------- conv1 + BN + LeakyReLU ----------------
        acc1 = jnp.zeros((Ho * Wo, Cmid), jnp.float32)
        for kh in range(3):
            for kw in range(3):
                xt = xp_ref[kh * dil:kh * dil + Ho, kw * dil:kw * dil + Wo, :]
                acc1 = acc1 + jnp.dot(xt.reshape(Ho * Wo, Cin),
                                      w1_ref[kh, kw],
                                      preferred_element_type=jnp.float32)
        a1 = acc1 * sb1_ref[0:1, :] + sb1_ref[1:2, :]
        a1 = jnp.where(a1 >= 0, a1, neg * a1)      # LeakyReLU(0.2)

        # stash into zero-padded VMEM scratch (stays on-chip for conv2)
        mid_ref[...] = jnp.zeros_like(mid_ref)
        mid_ref[p:p + Ho, p:p + Wo, :] = a1.reshape(Ho, Wo, Cmid)

        # ---------------- conv2 + BN ----------------
        acc2 = jnp.zeros((Ho * Wo, Cout), jnp.float32)
        for kh in range(3):
            for kw in range(3):
                mt = mid_ref[kh * dil:kh * dil + Ho, kw * dil:kw * dil + Wo, :]
                acc2 = acc2 + jnp.dot(mt.reshape(Ho * Wo, Cmid),
                                      w2_ref[kh, kw],
                                      preferred_element_type=jnp.float32)
        out = acc2 * sb2_ref[0:1, :] + sb2_ref[1:2, :]

        # ---------------- identity residual ----------------
        res = xp_ref[p:p + Ho, p:p + Wo, :].reshape(Ho * Wo, Cin)
        out = out + res

        o_ref[...] = out.reshape(Ho, Wo, Cout).astype(o_ref.dtype)

    out_nhwc = pl.pallas_call(
        kernel,
        out_shape=jax.ShapeDtypeStruct((N, Ho, Wo, Cout), jnp.float32),
        grid_spec=pltpu.PrefetchScalarGridSpec(
            num_scalar_prefetch=0,
            grid=(N,),
            in_specs=[
                pl.BlockSpec((pl.Squeezed(), Hp, Wp, Cin), lambda n: (n, 0, 0, 0)),
                pl.BlockSpec((3, 3, Cin, Cmid), lambda n: (0, 0, 0, 0)),
                pl.BlockSpec((2, Cmid), lambda n: (0, 0)),
                pl.BlockSpec((3, 3, Cmid, Cout), lambda n: (0, 0, 0, 0)),
                pl.BlockSpec((2, Cout), lambda n: (0, 0)),
            ],
            out_specs=pl.BlockSpec((pl.Squeezed(), Ho, Wo, Cout),
                                   lambda n: (n, 0, 0, 0)),
            scratch_shapes=[pltpu.VMEM((Hm, Wm, Cmid), jnp.float32)],
        ),
        compiler_params=pltpu.CompilerParams(
            dimension_semantics=("parallel",),
        ),
    )(xp, w1_hwio, sb1, w2_hwio, sb2)

    # NHWC -> NCHW to match the PyTorch module
    return jnp.transpose(out_nhwc, (0, 3, 1, 2))


# --------------------------- pure-JAX reference ---------------------------
def _convbn_ref(x, w, b, bn, stride, pad, dilation, eps=_BN_EPS):
    p = dilation if dilation > 1 else pad
    y = lax.conv_general_dilated(
        x, w, window_strides=(stride, stride), padding=((p, p), (p, p)),
        rhs_dilation=(dilation, dilation),
        dimension_numbers=("NCHW", "OIHW", "NCHW"))
    y = y + b[None, :, None, None]
    g, be, m, v = bn
    scale = (g / jnp.sqrt(v + eps))[None, :, None, None]
    return (y - m[None, :, None, None]) * scale + be[None, :, None, None]


def basic_block_ref(x, w1, b1, bn1, w2, b2, bn2, *,
                    stride=1, pad=1, dilation=1, negative_slope=0.2):
    out = _convbn_ref(x, w1, b1, bn1, stride, pad, dilation)
    out = jnp.where(out >= 0, out, negative_slope * out)
    out = _convbn_ref(out, w2, b2, bn2, 1, pad, dilation)
    return out + x


if __name__ == "__main__":
    key = jax.random.PRNGKey(0)
    N, Cin, H, W = 2, 4, 16, 16
    planes = 4

    ks = jax.random.split(key, 13)
    x = jax.random.normal(ks[0], (N, Cin, H, W), jnp.float32)

    w1 = jax.random.normal(ks[1], (planes, Cin, 3, 3), jnp.float32) * 0.2
    b1 = jax.random.normal(ks[2], (planes,), jnp.float32) * 0.1
    bn1 = (jax.random.normal(ks[3], (planes,), jnp.float32) * 0.1 + 1.0,   # gamma
           jax.random.normal(ks[4], (planes,), jnp.float32) * 0.1,         # beta
           jax.random.normal(ks[5], (planes,), jnp.float32) * 0.1,         # mean
           jax.random.uniform(ks[6], (planes,), jnp.float32, 0.5, 1.5))    # var

    w2 = jax.random.normal(ks[7], (planes, planes, 3, 3), jnp.float32) * 0.2
    b2 = jax.random.normal(ks[8], (planes,), jnp.float32) * 0.1
    bn2 = (jax.random.normal(ks[9], (planes,), jnp.float32) * 0.1 + 1.0,
           jax.random.normal(ks[10], (planes,), jnp.float32) * 0.1,
           jax.random.normal(ks[11], (planes,), jnp.float32) * 0.1,
           jax.random.uniform(ks[12], (planes,), jnp.float32, 0.5, 1.5))

    out = basic_block_forward(x, w1, b1, bn1, w2, b2, bn2,
                              stride=1, pad=1, dilation=1, downsample=None)
    out = jax.block_until_ready(out)

    ref = basic_block_ref(x, w1, b1, bn1, w2, b2, bn2,
                          stride=1, pad=1, dilation=1)

    assert out.shape == (N, planes, H, W)
    assert jnp.allclose(out, ref, atol=1e-4, rtol=1e-4), (
        float(jnp.max(jnp.abs(out - ref))))

    print("KERNEL_OK")
</pallas_src>

<mosaic_0001>
module attributes {stable_mosaic.version = 11 : i64} {
  func.func @kernel(%arg0: i32, %arg1: memref<1x18x18x4xf32, #tpu.memory_space<vmem>>, %arg2: memref<3x3x4x4xf32, #tpu.memory_space<vmem>>, %arg3: memref<2x4xf32, #tpu.memory_space<vmem>>, %arg4: memref<3x3x4x4xf32, #tpu.memory_space<vmem>>, %arg5: memref<2x4xf32, #tpu.memory_space<vmem>>, %arg6: memref<1x16x16x4xf32, #tpu.memory_space<vmem>>, %arg7: memref<18x18x4xf32, #tpu.memory_space<vmem>>) attributes {dimension_semantics = [#tpu.dimension_semantics<parallel>], iteration_bounds = array<i64: 2>, scalar_prefetch = 0 : i64, scratch_operands = 1 : i64, tpu.core_type = #tpu.core_type<tc>, window_params = [{transform_indices = @transform_0, window_bounds = array<i64: 1, 18, 18, 4>}, {pipeline_mode = #tpu.pipeline_mode<synchronous>, transform_indices = @transform_1, window_bounds = array<i64: 3, 3, 4, 4>}, {pipeline_mode = #tpu.pipeline_mode<synchronous>, transform_indices = @transform_2, window_bounds = array<i64: 2, 4>}, {pipeline_mode = #tpu.pipeline_mode<synchronous>, transform_indices = @transform_3, window_bounds = array<i64: 3, 3, 4, 4>}, {pipeline_mode = #tpu.pipeline_mode<synchronous>, transform_indices = @transform_4, window_bounds = array<i64: 2, 4>}, {transform_indices = @transform_5, window_bounds = array<i64: 1, 16, 16, 4>}]} {
    %cst = arith.constant 0.000000e+00 : f32
    %0 = vector.broadcast %cst : f32 to vector<256x4xf32>
    %c0 = arith.constant 0 : index
    %c0_0 = arith.constant 0 : index
    %c0_1 = arith.constant 0 : index
    %c0_2 = arith.constant 0 : index
    %1 = vector.load %arg1[%c0, %c0_0, %c0_1, %c0_2] : memref<1x18x18x4xf32, #tpu.memory_space<vmem>>, vector<1x16x16x4xf32>
    %2 = vector.shape_cast %1 : vector<1x16x16x4xf32> to vector<16x16x4xf32>
    %3 = vector.shape_cast %2 : vector<16x16x4xf32> to vector<256x4xf32>
    %c0_3 = arith.constant 0 : index
    %c0_4 = arith.constant 0 : index
    %c0_5 = arith.constant 0 : index
    %c0_6 = arith.constant 0 : index
    %4 = vector.load %arg2[%c0_3, %c0_4, %c0_5, %c0_6] : memref<3x3x4x4xf32, #tpu.memory_space<vmem>>, vector<1x1x4x4xf32>
    %5 = vector.shape_cast %4 : vector<1x1x4x4xf32> to vector<4x4xf32>
    %cst_7 = arith.constant dense<0.000000e+00> : vector<256x4xf32>
    %6 = tpu.matmul %3, %5, %cst_7 {dimension_numbers = #tpu.dot_dimension_numbers<[1], [0], [0], [1], [0, 0, 1, 1], [], []>} : vector<256x4xf32>, vector<4x4xf32>, vector<256x4xf32> -> vector<256x4xf32>
    %7 = arith.addf %0, %6 : vector<256x4xf32>
    %c0_8 = arith.constant 0 : index
    %c0_9 = arith.constant 0 : index
    %c1 = arith.constant 1 : index
    %c0_10 = arith.constant 0 : index
    %8 = vector.load %arg1[%c0_8, %c0_9, %c1, %c0_10] : memref<1x18x18x4xf32, #tpu.memory_space<vmem>>, vector<1x16x16x4xf32>
    %9 = vector.shape_cast %8 : vector<1x16x16x4xf32> to vector<16x16x4xf32>
    %10 = vector.shape_cast %9 : vector<16x16x4xf32> to vector<256x4xf32>
    %c0_11 = arith.constant 0 : index
    %c1_12 = arith.constant 1 : index
    %c0_13 = arith.constant 0 : index
    %c0_14 = arith.constant 0 : index
    %11 = vector.load %arg2[%c0_11, %c1_12, %c0_13, %c0_14] : memref<3x3x4x4xf32, #tpu.memory_space<vmem>>, vector<1x1x4x4xf32>
    %12 = vector.shape_cast %11 : vector<1x1x4x4xf32> to vector<4x4xf32>
    %cst_15 = arith.constant dense<0.000000e+00> : vector<256x4xf32>
    %13 = tpu.matmul %10, %12, %cst_15 {dimension_numbers = #tpu.dot_dimension_numbers<[1], [0], [0], [1], [0, 0, 1, 1], [], []>} : vector<256x4xf32>, vector<4x4xf32>, vector<256x4xf32> -> vector<256x4xf32>
    %14 = arith.addf %7, %13 : vector<256x4xf32>
    %c0_16 = arith.constant 0 : index
    %c0_17 = arith.constant 0 : index
    %c2 = arith.constant 2 : index
    %c0_18 = arith.constant 0 : index
    %15 = vector.load %arg1[%c0_16, %c0_17, %c2, %c0_18] : memref<1x18x18x4xf32, #tpu.memory_space<vmem>>, vector<1x16x16x4xf32>
    %16 = vector.shape_cast %15 : vector<1x16x16x4xf32> to vector<16x16x4xf32>
    %17 = vector.shape_cast %16 : vector<16x16x4xf32> to vector<256x4xf32>
    %c0_19 = arith.constant 0 : index
    %c2_20 = arith.constant 2 : index
    %c0_21 = arith.constant 0 : index
    %c0_22 = arith.constant 0 : index
    %18 = vector.load %arg2[%c0_19, %c2_20, %c0_21, %c0_22] : memref<3x3x4x4xf32, #tpu.memory_space<vmem>>, vector<1x1x4x4xf32>
    %19 = vector.shape_cast %18 : vector<1x1x4x4xf32> to vector<4x4xf32>
    %cst_23 = arith.constant dense<0.000000e+00> : vector<256x4xf32>
    %20 = tpu.matmul %17, %19, %cst_23 {dimension_numbers = #tpu.dot_dimension_numbers<[1], [0], [0], [1], [0, 0, 1, 1], [], []>} : vector<256x4xf32>, vector<4x4xf32>, vector<256x4xf32> -> vector<256x4xf32>
    %21 = arith.addf %14, %20 : vector<256x4xf32>
    %c0_24 = arith.constant 0 : index
    %c1_25 = arith.constant 1 : index
    %c0_26 = arith.constant 0 : index
    %c0_27 = arith.constant 0 : index
    %22 = vector.load %arg1[%c0_24, %c1_25, %c0_26, %c0_27] : memref<1x18x18x4xf32, #tpu.memory_space<vmem>>, vector<1x16x16x4xf32>
    %23 = vector.shape_cast %22 : vector<1x16x16x4xf32> to vector<16x16x4xf32>
    %24 = vector.shape_cast %23 : vector<16x16x4xf32> to vector<256x4xf32>
    %c1_28 = arith.constant 1 : index
    %c0_29 = arith.constant 0 : index
    %c0_30 = arith.constant 0 : index
    %c0_31 = arith.constant 0 : index
    %25 = vector.load %arg2[%c1_28, %c0_29, %c0_30, %c0_31] : memref<3x3x4x4xf32, #tpu.memory_space<vmem>>, vector<1x1x4x4xf32>
    %26 = vector.shape_cast %25 : vector<1x1x4x4xf32> to vector<4x4xf32>
    %cst_32 = arith.constant dense<0.000000e+00> : vector<256x4xf32>
    %27 = tpu.matmul %24, %26, %cst_32 {dimension_numbers = #tpu.dot_dimension_numbers<[1], [0], [0], [1], [0, 0, 1, 1], [], []>} : vector<256x4xf32>, vector<4x4xf32>, vector<256x4xf32> -> vector<256x4xf32>
    %28 = arith.addf %21, %27 : vector<256x4xf32>
    %c0_33 = arith.constant 0 : index
    %c1_34 = arith.constant 1 : index
    %c1_35 = arith.constant 1 : index
    %c0_36 = arith.constant 0 : index
    %29 = vector.load %arg1[%c0_33, %c1_34, %c1_35, %c0_36] : memref<1x18x18x4xf32, #tpu.memory_space<vmem>>, vector<1x16x16x4xf32>
    %30 = vector.shape_cast %29 : vector<1x16x16x4xf32> to vector<16x16x4xf32>
    %31 = vector.shape_cast %30 : vector<16x16x4xf32> to vector<256x4xf32>
    %c1_37 = arith.constant 1 : index
    %c1_38 = arith.constant 1 : index
    %c0_39 = arith.constant 0 : index
    %c0_40 = arith.constant 0 : index
    %32 = vector.load %arg2[%c1_37, %c1_38, %c0_39, %c0_40] : memref<3x3x4x4xf32, #tpu.memory_space<vmem>>, vector<1x1x4x4xf32>
    %33 = vector.shape_cast %32 : vector<1x1x4x4xf32> to vector<4x4xf32>
    %cst_41 = arith.constant dense<0.000000e+00> : vector<256x4xf32>
    %34 = tpu.matmul %31, %33, %cst_41 {dimension_numbers = #tpu.dot_dimension_numbers<[1], [0], [0], [1], [0, 0, 1, 1], [], []>} : vector<256x4xf32>, vector<4x4xf32>, vector<256x4xf32> -> vector<256x4xf32>
    %35 = arith.addf %28, %34 : vector<256x4xf32>
    %c0_42 = arith.constant 0 : index
    %c1_43 = arith.constant 1 : index
    %c2_44 = arith.constant 2 : index
    %c0_45 = arith.constant 0 : index
    %36 = vector.load %arg1[%c0_42, %c1_43, %c2_44, %c0_45] : memref<1x18x18x4xf32, #tpu.memory_space<vmem>>, vector<1x16x16x4xf32>
    %37 = vector.shape_cast %36 : vector<1x16x16x4xf32> to vector<16x16x4xf32>
    %38 = vector.shape_cast %37 : vector<16x16x4xf32> to vector<256x4xf32>
    %c1_46 = arith.constant 1 : index
    %c2_47 = arith.constant 2 : index
    %c0_48 = arith.constant 0 : index
    %c0_49 = arith.constant 0 : index
    %39 = vector.load %arg2[%c1_46, %c2_47, %c0_48, %c0_49] : memref<3x3x4x4xf32, #tpu.memory_space<vmem>>, vector<1x1x4x4xf32>
    %40 = vector.shape_cast %39 : vector<1x1x4x4xf32> to vector<4x4xf32>
    %cst_50 = arith.constant dense<0.000000e+00> : vector<256x4xf32>
    %41 = tpu.matmul %38, %40, %cst_50 {dimension_numbers = #tpu.dot_dimension_numbers<[1], [0], [0], [1], [0, 0, 1, 1], [], []>} : vector<256x4xf32>, vector<4x4xf32>, vector<256x4xf32> -> vector<256x4xf32>
    %42 = arith.addf %35, %41 : vector<256x4xf32>
    %c0_51 = arith.constant 0 : index
    %c2_52 = arith.constant 2 : index
    %c0_53 = arith.constant 0 : index
    %c0_54 = arith.constant 0 : index
    %43 = vector.load %arg1[%c0_51, %c2_52, %c0_53, %c0_54] : memref<1x18x18x4xf32, #tpu.memory_space<vmem>>, vector<1x16x16x4xf32>
    %44 = vector.shape_cast %43 : vector<1x16x16x4xf32> to vector<16x16x4xf32>
    %45 = vector.shape_cast %44 : vector<16x16x4xf32> to vector<256x4xf32>
    %c2_55 = arith.constant 2 : index
    %c0_56 = arith.constant 0 : index
    %c0_57 = arith.constant 0 : index
    %c0_58 = arith.constant 0 : index
    %46 = vector.load %arg2[%c2_55, %c0_56, %c0_57, %c0_58] : memref<3x3x4x4xf32, #tpu.memory_space<vmem>>, vector<1x1x4x4xf32>
    %47 = vector.shape_cast %46 : vector<1x1x4x4xf32> to vector<4x4xf32>
    %cst_59 = arith.constant dense<0.000000e+00> : vector<256x4xf32>
    %48 = tpu.matmul %45, %47, %cst_59 {dimension_numbers = #tpu.dot_dimension_numbers<[1], [0], [0], [1], [0, 0, 1, 1], [], []>} : vector<256x4xf32>, vector<4x4xf32>, vector<256x4xf32> -> vector<256x4xf32>
    %49 = arith.addf %42, %48 : vector<256x4xf32>
    %c0_60 = arith.constant 0 : index
    %c2_61 = arith.constant 2 : index
    %c1_62 = arith.constant 1 : index
    %c0_63 = arith.constant 0 : index
    %50 = vector.load %arg1[%c0_60, %c2_61, %c1_62, %c0_63] : memref<1x18x18x4xf32, #tpu.memory_space<vmem>>, vector<1x16x16x4xf32>
    %51 = vector.shape_cast %50 : vector<1x16x16x4xf32> to vector<16x16x4xf32>
    %52 = vector.shape_cast %51 : vector<16x16x4xf32> to vector<256x4xf32>
    %c2_64 = arith.constant 2 : index
    %c1_65 = arith.constant 1 : index
    %c0_66 = arith.constant 0 : index
    %c0_67 = arith.constant 0 : index
    %53 = vector.load %arg2[%c2_64, %c1_65, %c0_66, %c0_67] : memref<3x3x4x4xf32, #tpu.memory_space<vmem>>, vector<1x1x4x4xf32>
    %54 = vector.shape_cast %53 : vector<1x1x4x4xf32> to vector<4x4xf32>
    %cst_68 = arith.constant dense<0.000000e+00> : vector<256x4xf32>
    %55 = tpu.matmul %52, %54, %cst_68 {dimension_numbers = #tpu.dot_dimension_numbers<[1], [0], [0], [1], [0, 0, 1, 1], [], []>} : vector<256x4xf32>, vector<4x4xf32>, vector<256x4xf32> -> vector<256x4xf32>
    %56 = arith.addf %49, %55 : vector<256x4xf32>
    %c0_69 = arith.constant 0 : index
    %c2_70 = arith.constant 2 : index
    %c2_71 = arith.constant 2 : index
    %c0_72 = arith.constant 0 : index
    %57 = vector.load %arg1[%c0_69, %c2_70, %c2_71, %c0_72] : memref<1x18x18x4xf32, #tpu.memory_space<vmem>>, vector<1x16x16x4xf32>
    %58 = vector.shape_cast %57 : vector<1x16x16x4xf32> to vector<16x16x4xf32>
    %59 = vector.shape_cast %58 : vector<16x16x4xf32> to vector<256x4xf32>
    %c2_73 = arith.constant 2 : index
    %c2_74 = arith.constant 2 : index
    %c0_75 = arith.constant 0 : index
    %c0_76 = arith.constant 0 : index
    %60 = vector.load %arg2[%c2_73, %c2_74, %c0_75, %c0_76] : memref<3x3x4x4xf32, #tpu.memory_space<vmem>>, vector<1x1x4x4xf32>
    %61 = vector.shape_cast %60 : vector<1x1x4x4xf32> to vector<4x4xf32>
    %cst_77 = arith.constant dense<0.000000e+00> : vector<256x4xf32>
    %62 = tpu.matmul %59, %61, %cst_77 {dimension_numbers = #tpu.dot_dimension_numbers<[1], [0], [0], [1], [0, 0, 1, 1], [], []>} : vector<256x4xf32>, vector<4x4xf32>, vector<256x4xf32> -> vector<256x4xf32>
    %63 = arith.addf %56, %62 : vector<256x4xf32>
    %c0_78 = arith.constant 0 : index
    %c0_79 = arith.constant 0 : index
    %64 = vector.load %arg3[%c0_78, %c0_79] : memref<2x4xf32, #tpu.memory_space<vmem>>, vector<1x4xf32>
    %65 = vector.broadcast %64 : vector<1x4xf32> to vector<256x4xf32>
    %66 = arith.mulf %63, %65 : vector<256x4xf32>
    %c1_80 = arith.constant 1 : index
    %c0_81 = arith.constant 0 : index
    %67 = vector.load %arg3[%c1_80, %c0_81] : memref<2x4xf32, #tpu.memory_space<vmem>>, vector<1x4xf32>
    %68 = vector.broadcast %67 : vector<1x4xf32> to vector<256x4xf32>
    %69 = arith.addf %66, %68 : vector<256x4xf32>
    %cst_82 = arith.constant 0.000000e+00 : f32
    %70 = vector.broadcast %cst_82 : f32 to vector<256x4xf32>
    %71 = arith.cmpf oge, %69, %70 : vector<256x4xf32>
    %cst_83 = arith.constant 2.000000e-01 : f32
    %72 = vector.broadcast %cst_83 : f32 to vector<256x4xf32>
    %73 = arith.mulf %72, %69 : vector<256x4xf32>
    %74 = arith.select %71, %69, %73 : vector<256x4xi1>, vector<256x4xf32>
    %cst_84 = arith.constant 0.000000e+00 : f32
    %75 = vector.broadcast %cst_84 : f32 to vector<18x18x4xf32>
    %c0_85 = arith.constant 0 : index
    %c0_86 = arith.constant 0 : index
    %c0_87 = arith.constant 0 : index
    %76 = vector.load %arg7[%c0_85, %c0_86, %c0_87] : memref<18x18x4xf32, #tpu.memory_space<vmem>>, vector<18x18x4xf32>
    tpu.vector_store %arg7[%c0_85, %c0_86, %c0_87], %75 {strides = array<i32>} : memref<18x18x4xf32, #tpu.memory_space<vmem>>, vector<18x18x4xf32>,
    %77 = vector.shape_cast %74 : vector<256x4xf32> to vector<16x16x4xf32>
    %c1_88 = arith.constant 1 : index
    %c1_89 = arith.constant 1 : index
    %c0_90 = arith.constant 0 : index
    %78 = vector.load %arg7[%c1_88, %c1_89, %c0_90] : memref<18x18x4xf32, #tpu.memory_space<vmem>>, vector<16x16x4xf32>
    tpu.vector_store %arg7[%c1_88, %c1_89, %c0_90], %77 {strides = array<i32>} : memref<18x18x4xf32, #tpu.memory_space<vmem>>, vector<16x16x4xf32>,
    %cst_91 = arith.constant 0.000000e+00 : f32
    %79 = vector.broadcast %cst_91 : f32 to vector<256x4xf32>
    %c0_92 = arith.constant 0 : index
    %c0_93 = arith.constant 0 : index
    %c0_94 = arith.constant 0 : index
    %80 = vector.load %arg7[%c0_92, %c0_93, %c0_94] : memref<18x18x4xf32, #tpu.memory_space<vmem>>, vector<16x16x4xf32>
    %81 = vector.shape_cast %80 : vector<16x16x4xf32> to vector<256x4xf32>
    %c0_95 = arith.constant 0 : index
    %c0_96 = arith.constant 0 : index
    %c0_97 = arith.constant 0 : index
    %c0_98 = arith.constant 0 : index
    %82 = vector.load %arg4[%c0_95, %c0_96, %c0_97, %c0_98] : memref<3x3x4x4xf32, #tpu.memory_space<vmem>>, vector<1x1x4x4xf32>
    %83 = vector.shape_cast %82 : vector<1x1x4x4xf32> to vector<4x4xf32>
    %cst_99 = arith.constant dense<0.000000e+00> : vector<256x4xf32>
    %84 = tpu.matmul %81, %83, %cst_99 {dimension_numbers = #tpu.dot_dimension_numbers<[1], [0], [0], [1], [0, 0, 1, 1], [], []>} : vector<256x4xf32>, vector<4x4xf32>, vector<256x4xf32> -> vector<256x4xf32>
    %85 = arith.addf %79, %84 : vector<256x4xf32>
    %c0_100 = arith.constant 0 : index
    %c1_101 = arith.constant 1 : index
    %c0_102 = arith.constant 0 : index
    %86 = vector.load %arg7[%c0_100, %c1_101, %c0_102] : memref<18x18x4xf32, #tpu.memory_space<vmem>>, vector<16x16x4xf32>
    %87 = vector.shape_cast %86 : vector<16x16x4xf32> to vector<256x4xf32>
    %c0_103 = arith.constant 0 : index
    %c1_104 = arith.constant 1 : index
    %c0_105 = arith.constant 0 : index
    %c0_106 = arith.constant 0 : index
    %88 = vector.load %arg4[%c0_103, %c1_104, %c0_105, %c0_106] : memref<3x3x4x4xf32, #tpu.memory_space<vmem>>, vector<1x1x4x4xf32>
    %89 = vector.shape_cast %88 : vector<1x1x4x4xf32> to vector<4x4xf32>
    %cst_107 = arith.constant dense<0.000000e+00> : vector<256x4xf32>
    %90 = tpu.matmul %87, %89, %cst_107 {dimension_numbers = #tpu.dot_dimension_numbers<[1], [0], [0], [1], [0, 0, 1, 1], [], []>} : vector<256x4xf32>, vector<4x4xf32>, vector<256x4xf32> -> vector<256x4xf32>
    %91 = arith.addf %85, %90 : vector<256x4xf32>
    %c0_108 = arith.constant 0 : index
    %c2_109 = arith.constant 2 : index
    %c0_110 = arith.constant 0 : index
    %92 = vector.load %arg7[%c0_108, %c2_109, %c0_110] : memref<18x18x4xf32, #tpu.memory_space<vmem>>, vector<16x16x4xf32>
    %93 = vector.shape_cast %92 : vector<16x16x4xf32> to vector<256x4xf32>
    %c0_111 = arith.constant 0 : index
    %c2_112 = arith.constant 2 : index
    %c0_113 = arith.constant 0 : index
    %c0_114 = arith.constant 0 : index
    %94 = vector.load %arg4[%c0_111, %c2_112, %c0_113, %c0_114] : memref<3x3x4x4xf32, #tpu.memory_space<vmem>>, vector<1x1x4x4xf32>
    %95 = vector.shape_cast %94 : vector<1x1x4x4xf32> to vector<4x4xf32>
    %cst_115 = arith.constant dense<0.000000e+00> : vector<256x4xf32>
    %96 = tpu.matmul %93, %95, %cst_115 {dimension_numbers = #tpu.dot_dimension_numbers<[1], [0], [0], [1], [0, 0, 1, 1], [], []>} : vector<256x4xf32>, vector<4x4xf32>, vector<256x4xf32> -> vector<256x4xf32>
    %97 = arith.addf %91, %96 : vector<256x4xf32>
    %c1_116 = arith.constant 1 : index
    %c0_117 = arith.constant 0 : index
    %c0_118 = arith.constant 0 : index
    %98 = vector.load %arg7[%c1_116, %c0_117, %c0_118] : memref<18x18x4xf32, #tpu.memory_space<vmem>>, vector<16x16x4xf32>
    %99 = vector.shape_cast %98 : vector<16x16x4xf32> to vector<256x4xf32>
    %c1_119 = arith.constant 1 : index
    %c0_120 = arith.constant 0 : index
    %c0_121 = arith.constant 0 : index
    %c0_122 = arith.constant 0 : index
    %100 = vector.load %arg4[%c1_119, %c0_120, %c0_121, %c0_122] : memref<3x3x4x4xf32, #tpu.memory_space<vmem>>, vector<1x1x4x4xf32>
    %101 = vector.shape_cast %100 : vector<1x1x4x4xf32> to vector<4x4xf32>
    %cst_123 = arith.constant dense<0.000000e+00> : vector<256x4xf32>
    %102 = tpu.matmul %99, %101, %cst_123 {dimension_numbers = #tpu.dot_dimension_numbers<[1], [0], [0], [1], [0, 0, 1, 1], [], []>} : vector<256x4xf32>, vector<4x4xf32>, vector<256x4xf32> -> vector<256x4xf32>
    %103 = arith.addf %97, %102 : vector<256x4xf32>
    %c1_124 = arith.constant 1 : index
    %c1_125 = arith.constant 1 : index
    %c0_126 = arith.constant 0 : index
    %104 = vector.load %arg7[%c1_124, %c1_125, %c0_126] : memref<18x18x4xf32, #tpu.memory_space<vmem>>, vector<16x16x4xf32>
    %105 = vector.shape_cast %104 : vector<16x16x4xf32> to vector<256x4xf32>
    %c1_127 = arith.constant 1 : index
    %c1_128 = arith.constant 1 : index
    %c0_129 = arith.constant 0 : index
    %c0_130 = arith.constant 0 : index
    %106 = vector.load %arg4[%c1_127, %c1_128, %c0_129, %c0_130] : memref<3x3x4x4xf32, #tpu.memory_space<vmem>>, vector<1x1x4x4xf32>
    %107 = vector.shape_cast %106 : vector<1x1x4x4xf32> to vector<4x4xf32>
    %cst_131 = arith.constant dense<0.000000e+00> : vector<256x4xf32>
    %108 = tpu.matmul %105, %107, %cst_131 {dimension_numbers = #tpu.dot_dimension_numbers<[1], [0], [0], [1], [0, 0, 1, 1], [], []>} : vector<256x4xf32>, vector<4x4xf32>, vector<256x4xf32> -> vector<256x4xf32>
    %109 = arith.addf %103, %108 : vector<256x4xf32>
    %c1_132 = arith.constant 1 : index
    %c2_133 = arith.constant 2 : index
    %c0_134 = arith.constant 0 : index
    %110 = vector.load %arg7[%c1_132, %c2_133, %c0_134] : memref<18x18x4xf32, #tpu.memory_space<vmem>>, vector<16x16x4xf32>
    %111 = vector.shape_cast %110 : vector<16x16x4xf32> to vector<256x4xf32>
    %c1_135 = arith.constant 1 : index
    %c2_136 = arith.constant 2 : index
    %c0_137 = arith.constant 0 : index
    %c0_138 = arith.constant 0 : index
    %112 = vector.load %arg4[%c1_135, %c2_136, %c0_137, %c0_138] : memref<3x3x4x4xf32, #tpu.memory_space<vmem>>, vector<1x1x4x4xf32>
    %113 = vector.shape_cast %112 : vector<1x1x4x4xf32> to vector<4x4xf32>
    %cst_139 = arith.constant dense<0.000000e+00> : vector<256x4xf32>
    %114 = tpu.matmul %111, %113, %cst_139 {dimension_numbers = #tpu.dot_dimension_numbers<[1], [0], [0], [1], [0, 0, 1, 1], [], []>} : vector<256x4xf32>, vector<4x4xf32>, vector<256x4xf32> -> vector<256x4xf32>
    %115 = arith.addf %109, %114 : vector<256x4xf32>
    %c2_140 = arith.constant 2 : index
    %c0_141 = arith.constant 0 : index
    %c0_142 = arith.constant 0 : index
    %116 = vector.load %arg7[%c2_140, %c0_141, %c0_142] : memref<18x18x4xf32, #tpu.memory_space<vmem>>, vector<16x16x4xf32>
    %117 = vector.shape_cast %116 : vector<16x16x4xf32> to vector<256x4xf32>
    %c2_143 = arith.constant 2 : index
    %c0_144 = arith.constant 0 : index
    %c0_145 = arith.constant 0 : index
    %c0_146 = arith.constant 0 : index
    %118 = vector.load %arg4[%c2_143, %c0_144, %c0_145, %c0_146] : memref<3x3x4x4xf32, #tpu.memory_space<vmem>>, vector<1x1x4x4xf32>
    %119 = vector.shape_cast %118 : vector<1x1x4x4xf32> to vector<4x4xf32>
    %cst_147 = arith.constant dense<0.000000e+00> : vector<256x4xf32>
    %120 = tpu.matmul %117, %119, %cst_147 {dimension_numbers = #tpu.dot_dimension_numbers<[1], [0], [0], [1], [0, 0, 1, 1], [], []>} : vector<256x4xf32>, vector<4x4xf32>, vector<256x4xf32> -> vector<256x4xf32>
    %121 = arith.addf %115, %120 : vector<256x4xf32>
    %c2_148 = arith.constant 2 : index
    %c1_149 = arith.constant 1 : index
    %c0_150 = arith.constant 0 : index
    %122 = vector.load %arg7[%c2_148, %c1_149, %c0_150] : memref<18x18x4xf32, #tpu.memory_space<vmem>>, vector<16x16x4xf32>
    %123 = vector.shape_cast %122 : vector<16x16x4xf32> to vector<256x4xf32>
    %c2_151 = arith.constant 2 : index
    %c1_152 = arith.constant 1 : index
    %c0_153 = arith.constant 0 : index
    %c0_154 = arith.constant 0 : index
    %124 = vector.load %arg4[%c2_151, %c1_152, %c0_153, %c0_154] : memref<3x3x4x4xf32, #tpu.memory_space<vmem>>, vector<1x1x4x4xf32>
    %125 = vector.shape_cast %124 : vector<1x1x4x4xf32> to vector<4x4xf32>
    %cst_155 = arith.constant dense<0.000000e+00> : vector<256x4xf32>
    %126 = tpu.matmul %123, %125, %cst_155 {dimension_numbers = #tpu.dot_dimension_numbers<[1], [0], [0], [1], [0, 0, 1, 1], [], []>} : vector<256x4xf32>, vector<4x4xf32>, vector<256x4xf32> -> vector<256x4xf32>
    %127 = arith.addf %121, %126 : vector<256x4xf32>
    %c2_156 = arith.constant 2 : index
    %c2_157 = arith.constant 2 : index
    %c0_158 = arith.constant 0 : index
    %128 = vector.load %arg7[%c2_156, %c2_157, %c0_158] : memref<18x18x4xf32, #tpu.memory_space<vmem>>, vector<16x16x4xf32>
    %129 = vector.shape_cast %128 : vector<16x16x4xf32> to vector<256x4xf32>
    %c2_159 = arith.constant 2 : index
    %c2_160 = arith.constant 2 : index
    %c0_161 = arith.constant 0 : index
    %c0_162 = arith.constant 0 : index
    %130 = vector.load %arg4[%c2_159, %c2_160, %c0_161, %c0_162] : memref<3x3x4x4xf32, #tpu.memory_space<vmem>>, vector<1x1x4x4xf32>
    %131 = vector.shape_cast %130 : vector<1x1x4x4xf32> to vector<4x4xf32>
    %cst_163 = arith.constant dense<0.000000e+00> : vector<256x4xf32>
    %132 = tpu.matmul %129, %131, %cst_163 {dimension_numbers = #tpu.dot_dimension_numbers<[1], [0], [0], [1], [0, 0, 1, 1], [], []>} : vector<256x4xf32>, vector<4x4xf32>, vector<256x4xf32> -> vector<256x4xf32>
    %133 = arith.addf %127, %132 : vector<256x4xf32>
    %c0_164 = arith.constant 0 : index
    %c0_165 = arith.constant 0 : index
    %134 = vector.load %arg5[%c0_164, %c0_165] : memref<2x4xf32, #tpu.memory_space<vmem>>, vector<1x4xf32>
    %135 = vector.broadcast %134 : vector<1x4xf32> to vector<256x4xf32>
    %136 = arith.mulf %133, %135 : vector<256x4xf32>
    %c1_166 = arith.constant 1 : index
    %c0_167 = arith.constant 0 : index
    %137 = vector.load %arg5[%c1_166, %c0_167] : memref<2x4xf32, #tpu.memory_space<vmem>>, vector<1x4xf32>
    %138 = vector.broadcast %137 : vector<1x4xf32> to vector<256x4xf32>
    %139 = arith.addf %136, %138 : vector<256x4xf32>
    %c0_168 = arith.constant 0 : index
    %c1_169 = arith.constant 1 : index
    %c1_170 = arith.constant 1 : index
    %c0_171 = arith.constant 0 : index
    %140 = vector.load %arg1[%c0_168, %c1_169, %c1_170, %c0_171] : memref<1x18x18x4xf32, #tpu.memory_space<vmem>>, vector<1x16x16x4xf32>
    %141 = vector.shape_cast %140 : vector<1x16x16x4xf32> to vector<16x16x4xf32>
    %142 = vector.shape_cast %141 : vector<16x16x4xf32> to vector<256x4xf32>
    %143 = arith.addf %139, %142 : vector<256x4xf32>
    %144 = vector.shape_cast %143 : vector<256x4xf32> to vector<16x16x4xf32>
    %c0_172 = arith.constant 0 : index
    %c0_173 = arith.constant 0 : index
    %c0_174 = arith.constant 0 : index
    %c0_175 = arith.constant 0 : index
    %145 = vector.load %arg6[%c0_172, %c0_173, %c0_174, %c0_175] : memref<1x16x16x4xf32, #tpu.memory_space<vmem>>, vector<1x16x16x4xf32>
    %146 = vector.shape_cast %145 : vector<1x16x16x4xf32> to vector<16x16x4xf32>
    %147 = vector.shape_cast %144 : vector<16x16x4xf32> to vector<1x16x16x4xf32>
    tpu.vector_store %arg6[%c0_172, %c0_173, %c0_174, %c0_175], %147 {strides = array<i32>} : memref<1x16x16x4xf32, #tpu.memory_space<vmem>>, vector<1x16x16x4xf32>,
    return
  }
  func.func @transform_0(%arg0: i32) -> (i32, i32, i32, i32) {
    %c0_i32 = arith.constant 0 : i32
    %c0_i32_0 = arith.constant 0 : i32
    %c0_i32_1 = arith.constant 0 : i32
    %c0_i32_2 = arith.constant 0 : i32
    return %arg0, %c0_i32, %c0_i32_0, %c0_i32_1 : i32, i32, i32, i32
  }
  func.func @transform_1(%arg0: i32) -> (i32, i32, i32, i32) {
    %c0_i32 = arith.constant 0 : i32
    %c0_i32_0 = arith.constant 0 : i32
    %c0_i32_1 = arith.constant 0 : i32
    %c0_i32_2 = arith.constant 0 : i32
    %c0_i32_3 = arith.constant 0 : i32
    return %c0_i32, %c0_i32_0, %c0_i32_1, %c0_i32_2 : i32, i32, i32, i32
  }
  func.func @transform_2(%arg0: i32) -> (i32, i32) {
    %c0_i32 = arith.constant 0 : i32
    %c0_i32_0 = arith.constant 0 : i32
    %c0_i32_1 = arith.constant 0 : i32
    return %c0_i32, %c0_i32_0 : i32, i32
  }
  func.func @transform_3(%arg0: i32) -> (i32, i32, i32, i32) {
    %c0_i32 = arith.constant 0 : i32
    %c0_i32_0 = arith.constant 0 : i32
    %c0_i32_1 = arith.constant 0 : i32
    %c0_i32_2 = arith.constant 0 : i32
    %c0_i32_3 = arith.constant 0 : i32
    return %c0_i32, %c0_i32_0, %c0_i32_1, %c0_i32_2 : i32, i32, i32, i32
  }
  func.func @transform_4(%arg0: i32) -> (i32, i32) {
    %c0_i32 = arith.constant 0 : i32
    %c0_i32_0 = arith.constant 0 : i32
    %c0_i32_1 = arith.constant 0 : i32
    return %c0_i32, %c0_i32_0 : i32, i32
  }
  func.func @transform_5(%arg0: i32) -> (i32, i32, i32, i32) {
    %c0_i32 = arith.constant 0 : i32
    %c0_i32_0 = arith.constant 0 : i32
    %c0_i32_1 = arith.constant 0 : i32
    %c0_i32_2 = arith.constant 0 : i32
    return %arg0, %c0_i32, %c0_i32_0, %c0_i32_1 : i32, i32, i32, i32
  }
}

</mosaic_0001>

<bundles_post_ra>
// kernel: tpu_custom_call.1
= control target key start
LH: loop header
LB: loop body
LE: loop exit
PB: predicated region body
PF: predicated region fallthrough
CT: control target
= control target key end

     0   :  { %s6478_s18 = smov 0   ;;  %s9130_s0 = inlined_call_operand.vmem [shape: f32[2,18,18,4], index: 0, kind: input, shape index: {}]   ;;  %s9131_s1 = inlined_call_operand.vmem [shape: f32[3,3,4,4], index: 1, kind: input, shape index: {}]   ;;  %s9132_s2 = inlined_call_operand.vmem [shape: f32[2,4], index: 2, kind: input, shape index: {}]   ;;  %s9133_s3 = inlined_call_operand.vmem [shape: f32[3,3,4,4], index: 3, kind: input, shape index: {}]   ;;  %s9134_s4 = inlined_call_operand.vmem [shape: f32[2,4], index: 4, kind: input, shape index: {}]   ;;  %s9135_s5 = inlined_call_operand.vmem [shape: f32[2,16,16,4], index: 5, kind: output, shape index: {}]  }
   0x1 LB: > { %s5575_s19 = sadd.s32 4294967295, %s6445_s18   ;;  %p5579_p0 = scmp.ge.s32.totalorder %s6445_s18, 1  ;;  %s6445_s18 = sphi %s6478_s18, %s15_s18  }
   0x2   : > { %p187_p1 = scmp.lt.s32.totalorder %s6445_s18, 3 }
   0x4   : > { %p188_p2 = pnand %p5579_p0, %p187_p1 }
   0x6   : > { %191 = sbr.rel (%p188_p2) target bundleno = 1436 (0x59c), region = 40 }
   0xb   : > { %v5583_v0 = vld [vmem:[%s9131_s1 + $0x4] sm:$0xf]  ;;  %vm389_vm0 = vcmask 1043456   ;;  %v257_v1 = vld [vmem:[%s9131_s1] sm:$0xf]  ;;  %p215_p3 = scmp.lt.s32.totalorder %s5575_s19, 1 }
   0xc   : > { %5584 = vmatpush.msk.msra.mxu0 %vm389_vm0, %v5583_v0  ;;  %6420 = vmatpush.msk.msra.mxu2 %vm389_vm0, %v5583_v0  ;;  %v5650_v2 = vld [vmem:[%s9131_s1 + $0x8] sm:$0xf]  ;;  %v5716_v3 = vld [vmem:[%s9131_s1 + $0xc] sm:$0xf]  ;;  %v5782_v4 = vld [vmem:[%s9131_s1 + $0x10] sm:$0xf] }
   0xd   : > { %6421 = vmatpush.msk.msra.mxu3 %vm389_vm0, %v257_v1  ;;  %s9408_s19 = smov (!%p215_p3, %s5575_s19), 1  ;;  %5617 = vmatpush.msk.msra.mxu1 %vm389_vm0, %v257_v1  ;;  %vm292_vm1 = vcmask 31744   ;;  %v5914_v57 = vld [vmem:[%s9131_s1 + $0x18] sm:$0xf]  ;;  %v5980_v58 = vld [vmem:[%s9131_s1 + $0x1c] sm:$0xf] }
   0xe   : > { %5651 = vmatpush.msk.msrb.mxu2 %vm389_vm0, %v5650_v2  ;;  %s6422_s30 = smul.u32 432, %s9408_s19  ;;  %5783 = vmatpush.msk.msrb.mxu0 %vm389_vm0, %v5782_v4  ;;  %v5848_v63 = vld [vmem:[%s9131_s1 + $0x14] sm:$0xf]  ;;  %v6046_v0 = vld [vmem:[%s9131_s1 + $0x20] sm:$0xf]  ;;  %vm2832_vm2 = vcmask 25600  }
   0xf   : > { %5717 = vmatpush.msk.msrb.mxu3 %vm389_vm0, %v5716_v3  ;;  %5849 = vmatpush.msk.msrb.mxu1 %vm389_vm0, %v5848_v63  ;;  %s6419_s27 = sshll.u32 %s9408_s19, 8 }
  0x10   : > { %s6514_s8 = scalar_lea.vmem %s9130_s0, %s6422_s30  ;;  %s8829_s30 = scalar_lea.vmem %s9135_s5, %s6419_s27 }
  0x11   : > { %v258_v5 = vld [vmem:[%s6514_s8 + $0x1] sm:$0xff]  ;;  %v259_v9 = vld [vmem:[%s6514_s8 + $0x9] sm:$0xff]  ;;  %v6545_v13 = vld [vmem:[%s6514_s8 + $0x19] sm:$0xff] }
  0x12   : > { %v6518_v6 = vld [vmem:[%s6514_s8 + $0xc1] sm:$0xff]  ;;  %5585 = vmatmul.msk.f32.vlgmr.msra.gmra.mxu0 %vm292_vm1, %v258_v5  ;;  %v6532_v10 = vld [vmem:[%s6514_s8 + $0xc9] sm:$0xff]  ;;  %v6548_v14 = vld [vmem:[%s6514_s8 + $0xd9] sm:$0xff] }
  0x13   : > { %v6521_v7 = vld [vmem:[%s6514_s8 + $0xc0] sm:$0xff]  ;;  %5601 = vmatmul.msk.f32.vlgmr.msra.gmra.mxu2 %vm292_vm1, %v6518_v6  ;;  %v6535_v11 = vld [vmem:[%s6514_s8 + $0xc8] sm:$0xff]  ;;  %v6551_v15 = vld [vmem:[%s6514_s8 + $0xd8] sm:$0xff]  ;;  %6047 = vmatpush.msk.msra.mxu0 %vm389_vm0, %v6046_v0 }
  0x14   : > { %5634 = vmatmul.msk.f32.vlgmr.msra.gmra.mxu3 %vm292_vm1, %v6521_v7  ;;  %v225_v8 = vld [vmem:[%s6514_s8] sm:$0xff]  ;;  %v226_v12 = vld [vmem:[%s6514_s8 + $0x8] sm:$0xff]  ;;  %v6554_v16 = vld [vmem:[%s6514_s8 + $0x18] sm:$0xff]  ;;  %5915 = vmatpush.msk.msra.mxu2 %vm389_vm0, %v5914_v57 }
  0x15   : > { %5618 = vmatmul.msk.f32.vlgmr.msra.gmra.mxu1 %vm292_vm1, %v225_v8  ;;  %v6565_v17 = vld [vmem:[%s6514_s8 + $0x21] sm:$0xff]  ;;  %v6585_v21 = vld [vmem:[%s6514_s8 + $0x31] sm:$0xff]  ;;  %v6605_v25 = vld [vmem:[%s6514_s8 + $0x39] sm:$0xff]  ;;  %5981 = vmatpush.msk.msra.mxu3 %vm389_vm0, %v5980_v58 }
  0x16   : > { %v6568_v18 = vld [vmem:[%s6514_s8 + $0xe1] sm:$0xff]  ;;  %v6588_v22 = vld [vmem:[%s6514_s8 + $0xf1] sm:$0xff]  ;;  %v6608_v26 = vld [vmem:[%s6514_s8 + $0xf9] sm:$0xff] }
  0x17   : > { %v6571_v19 = vld [vmem:[%s6514_s8 + $0xe0] sm:$0xff]  ;;  %v6591_v23 = vld [vmem:[%s6514_s8 + $0xf0] sm:$0xff]  ;;  %v6611_v27 = vld [vmem:[%s6514_s8 + $0xf8] sm:$0xff] }
  0x18   : > { %v6574_v20 = vld [vmem:[%s6514_s8 + $0x20] sm:$0xff]  ;;  %v6594_v24 = vld [vmem:[%s6514_s8 + $0x30] sm:$0xff]  ;;  %v6614_v28 = vld [vmem:[%s6514_s8 + $0x38] sm:$0xff] }
  0x19   : > { %v6625_v29 = vld [vmem:[%s6514_s8 + $0x49] sm:$0xff]  ;;  %v6645_v33 = vld [vmem:[%s6514_s8 + $0x51] sm:$0xff]  ;;  %v6665_v37 = vld [vmem:[%s6514_s8 + $0x61] sm:$0xff] }
  0x1a   : > { %5586 = vmatmul.msk.f32.gmra.mxu0 %vm292_vm1, %v259_v9  ;;  %v6628_v30 = vld [vmem:[%s6514_s8 + $0x109] sm:$0xff]  ;;  %v6648_v34 = vld [vmem:[%s6514_s8 + $0x111] sm:$0xff]  ;;  %v6668_v38 = vld [vmem:[%s6514_s8 + $0x121] sm:$0xff] }
  0x1b   : > { %5602 = vmatmul.msk.f32.gmra.mxu2 %vm292_vm1, %v6532_v10  ;;  %v6631_v31 = vld [vmem:[%s6514_s8 + $0x108] sm:$0xff]  ;;  %v6651_v35 = vld [vmem:[%s6514_s8 + $0x110] sm:$0xff]  ;;  %v6671_v39 = vld [vmem:[%s6514_s8 + $0x120] sm:$0xff] }
  0x1c   : > { %5635 = vmatmul.msk.f32.gmra.mxu3 %vm292_vm1, %v6535_v11  ;;  %v6634_v32 = vld [vmem:[%s6514_s8 + $0x48] sm:$0xff]  ;;  %v6654_v36 = vld [vmem:[%s6514_s8 + $0x50] sm:$0xff]  ;;  %v6674_v40 = vld [vmem:[%s6514_s8 + $0x60] sm:$0xff] }
  0x1d   : > { %5619 = vmatmul.msk.f32.gmra.mxu1 %vm292_vm1, %v226_v12  ;;  %v6685_v41 = vld [vmem:[%s6514_s8 + $0x69] sm:$0xff]  ;;  %v6705_v45 = vld [vmem:[%s6514_s8 + $0x79] sm:$0xff]  ;;  %v6725_v49 = vld [vmem:[%s6514_s8 + $0x81] sm:$0xff] }
  0x1e   : > { %v6688_v42 = vld [vmem:[%s6514_s8 + $0x129] sm:$0xff]  ;;  %v6708_v46 = vld [vmem:[%s6514_s8 + $0x139] sm:$0xff]  ;;  %v6728_v50 = vld [vmem:[%s6514_s8 + $0x141] sm:$0xff] }
  0x1f   : > { %v6691_v43 = vld [vmem:[%s6514_s8 + $0x128] sm:$0xff]  ;;  %v6711_v47 = vld [vmem:[%s6514_s8 + $0x138] sm:$0xff]  ;;  %v6731_v51 = vld [vmem:[%s6514_s8 + $0x140] sm:$0xff] }
  0x20   : > { %v6694_v44 = vld [vmem:[%s6514_s8 + $0x68] sm:$0xff]  ;;  %v6714_v48 = vld [vmem:[%s6514_s8 + $0x78] sm:$0xff]  ;;  %v6734_v52 = vld [vmem:[%s6514_s8 + $0x80] sm:$0xff] }
  0x21   : > { %v6745_v53 = vld [vmem:[%s6514_s8 + $0x91] sm:$0xff]  ;;  %v6773_v59 = vld [vmem:[%s6514_s8 + $0x99] sm:$0xff]  ;;  %v6801_v1 = vld [vmem:[%s6514_s8 + $0xa9] sm:$0xff] }
  0x22   : > { %5587 = vmatmul.msk.f32.gmra.mxu0 %vm292_vm1, %v6545_v13  ;;  %v6748_v54 = vld [vmem:[%s6514_s8 + $0x151] sm:$0xff]  ;;  %v6776_v60 = vld [vmem:[%s6514_s8 + $0x159] sm:$0xff]  ;;  %v6804_v2 = vld [vmem:[%s6514_s8 + $0x169] sm:$0xff] }
  0x23   : > { %5603 = vmatmul.msk.f32.gmra.mxu2 %vm292_vm1, %v6548_v14  ;;  %v6751_v55 = vld [vmem:[%s6514_s8 + $0x150] sm:$0xff]  ;;  %9198 = vst [vmem:[#allocation4_spill] sm:$0xff] %v6776_v60  ;;  %v6779_v61 = vld [vmem:[%s6514_s8 + $0x158] sm:$0xff]  ;;  %v6807_v3 = vld [vmem:[%s6514_s8 + $0x168] sm:$0xff] }
  0x24   : > { %5636 = vmatmul.msk.f32.gmra.mxu3 %vm292_vm1, %v6551_v15  ;;  %9197 = vst [vmem:[#allocation3_spill] sm:$0xff] %v6751_v55  ;;  %v6754_v56 = vld [vmem:[%s6514_s8 + $0x90] sm:$0xff]  ;;  %v6782_v62 = vld [vmem:[%s6514_s8 + $0x98] sm:$0xff]  ;;  %v6810_v4 = vld [vmem:[%s6514_s8 + $0xa8] sm:$0xff] }
  0x25   : > { %5620 = vmatmul.msk.f32.gmra.mxu1 %vm292_vm1, %v6554_v16  ;;  %9199 = vst [vmem:[#allocation5_spill] sm:$0xff] %v6779_v61  ;;  %v6821_v5 = vld [vmem:[%s6514_s8 + $0xb1] sm:$0xff]  ;;  %v718_v58 = vld [vmem:[%s6514_s8 + $0x2] sm:$0xff]  ;;  %v5816_v0 = vld [vmem:[%s6514_s8 + $0x1a] sm:$0xff] }
  0x26   : > { %9200 = vst [vmem:[#allocation6_spill] sm:$0xff] %v6804_v2  ;;  %v6824_v8 = vld [vmem:[%s6514_s8 + $0x171] sm:$0xff] }
  0x27   : > { %9201 = vst [vmem:[#allocation7_spill] sm:$0xff] %v6807_v3  ;;  %v6827_v9 = vld [vmem:[%s6514_s8 + $0x170] sm:$0xff] }
  0x28   : > { %9202 = vst [vmem:[#allocation8_spill] sm:$0xff] %v6824_v8  ;;  %v6830_v12 = vld [vmem:[%s6514_s8 + $0xb0] sm:$0xff] }
  0x29   : > { %9203 = vst [vmem:[#allocation9_spill] sm:$0xff] %v6827_v9 }
  0x2a   : > { %5588 = vmatmul.msk.f32.gmra.mxu0 %vm292_vm1, %v6565_v17 }
  0x2b   : > { %5604 = vmatmul.msk.f32.gmra.mxu2 %vm292_vm1, %v6568_v18 }
  0x2c   : > { %5637 = vmatmul.msk.f32.gmra.mxu3 %vm292_vm1, %v6571_v19 }
  0x2d   : > { %5621 = vmatmul.msk.f32.gmra.mxu1 %vm292_vm1, %v6574_v20 }
  0x32   : > { %5589 = vmatmul.msk.f32.gmra.mxu0 %vm292_vm1, %v6585_v21 }
  0x33   : > { %5605 = vmatmul.msk.f32.gmra.mxu2 %vm292_vm1, %v6588_v22 }
  0x34   : > { %5638 = vmatmul.msk.f32.gmra.mxu3 %vm292_vm1, %v6591_v23 }
  0x35   : > { %5622 = vmatmul.msk.f32.gmra.mxu1 %vm292_vm1, %v6594_v24 }
  0x3a   : > { %5590 = vmatmul.msk.f32.gmra.mxu0 %vm292_vm1, %v6605_v25 }
  0x3b   : > { %5606 = vmatmul.msk.f32.gmra.mxu2 %vm292_vm1, %v6608_v26 }
  0x3c   : > { %5639 = vmatmul.msk.f32.gmra.mxu3 %vm292_vm1, %v6611_v27 }
  0x3d   : > { %5623 = vmatmul.msk.f32.gmra.mxu1 %vm292_vm1, %v6614_v28 }
  0x42   : > { %5591 = vmatmul.msk.f32.gmra.mxu0 %vm292_vm1, %v6625_v29 }
  0x43   : > { %5607 = vmatmul.msk.f32.gmra.mxu2 %vm292_vm1, %v6628_v30 }
  0x44   : > { %5640 = vmatmul.msk.f32.gmra.mxu3 %vm292_vm1, %v6631_v31 }
  0x45   : > { %5624 = vmatmul.msk.f32.gmra.mxu1 %vm292_vm1, %v6634_v32 }
  0x4a   : > { %5592 = vmatmul.msk.f32.gmra.mxu0 %vm292_vm1, %v6645_v33 }
  0x4b   : > { %5608 = vmatmul.msk.f32.gmra.mxu2 %vm292_vm1, %v6648_v34 }
  0x4c   : > { %5641 = vmatmul.msk.f32.gmra.mxu3 %vm292_vm1, %v6651_v35 }
  0x4d   : > { %5625 = vmatmul.msk.f32.gmra.mxu1 %vm292_vm1, %v6654_v36 }
  0x52   : > { %5593 = vmatmul.msk.f32.gmra.mxu0 %vm292_vm1, %v6665_v37 }
  0x53   : > { %5609 = vmatmul.msk.f32.gmra.mxu2 %vm292_vm1, %v6668_v38 }
  0x54   : > { %5642 = vmatmul.msk.f32.gmra.mxu3 %vm292_vm1, %v6671_v39 }
  0x55   : > { %5626 = vmatmul.msk.f32.gmra.mxu1 %vm292_vm1, %v6674_v40 }
  0x5a   : > { %5594 = vmatmul.msk.f32.gmra.mxu0 %vm292_vm1, %v6685_v41 }
  0x5b   : > { %5610 = vmatmul.msk.f32.gmra.mxu2 %vm292_vm1, %v6688_v42 }
  0x5c   : > { %5643 = vmatmul.msk.f32.gmra.mxu3 %vm292_vm1, %v6691_v43 }
  0x5d   : > { %5627 = vmatmul.msk.f32.gmra.mxu1 %vm292_vm1, %v6694_v44 }
  0x62   : > { %5595 = vmatmul.msk.f32.gmra.mxu0 %vm292_vm1, %v6705_v45 }
  0x63   : > { %5611 = vmatmul.msk.f32.gmra.mxu2 %vm292_vm1, %v6708_v46 }
  0x64   : > { %5644 = vmatmul.msk.f32.gmra.mxu3 %vm292_vm1, %v6711_v47 }
  0x65   : > { %5628 = vmatmul.msk.f32.gmra.mxu1 %vm292_vm1, %v6714_v48 }
  0x6a   : > { %5596 = vmatmul.msk.f32.gmra.mxu0 %vm292_vm1, %v6725_v49 }
  0x6b   : > { %5612 = vmatmul.msk.f32.gmra.mxu2 %vm292_vm1, %v6728_v50 }
  0x6c   : > { %5645 = vmatmul.msk.f32.gmra.mxu3 %vm292_vm1, %v6731_v51 }
  0x6d   : > { %5629 = vmatmul.msk.f32.gmra.mxu1 %vm292_vm1, %v6734_v52 }
  0x72   : > { %5597 = vmatmul.msk.f32.gmra.mxu0 %vm292_vm1, %v6745_v53 }
  0x73   : > { %5613 = vmatmul.msk.f32.gmra.mxu2 %vm292_vm1, %v6748_v54 }
  0x74   : > { %5646 = vmatmul.msk.f32.gmra.mxu3 %vm292_vm1, %v6751_v55  ;;  %v5817_v55 = vld [vmem:[%s6514_s8 + $0x22] sm:$0xff] }
  0x75   : > { %5630 = vmatmul.msk.f32.gmra.mxu1 %vm292_vm1, %v6754_v56 }
  0x7a   : > { %5598 = vmatmul.msk.f32.gmra.mxu0 %vm292_vm1, %v6773_v59 }
  0x7b   : > { %5614 = vmatmul.msk.f32.gmra.mxu2 %vm292_vm1, %v6776_v60 }
  0x7c   : > { %5647 = vmatmul.msk.f32.gmra.mxu3 %vm292_vm1, %v6779_v61  ;;  %v719_v61 = vld [vmem:[%s6514_s8 + $0xa] sm:$0xff] }
  0x7d   : > { %5631 = vmatmul.msk.f32.gmra.mxu1 %vm292_vm1, %v6782_v62 }
  0x82   : > { %5599 = vmatmul.msk.f32.gmra.mxu0 %vm292_vm1, %v6801_v1 }
  0x83   : > { %5615 = vmatmul.msk.f32.gmra.mxu2 %vm292_vm1, %v6804_v2 }
  0x84   : > { %5648 = vmatmul.msk.f32.gmra.mxu3 %vm292_vm1, %v6807_v3 }
  0x85   : > { %5632 = vmatmul.msk.f32.gmra.mxu1 %vm292_vm1, %v6810_v4 }
  0x8a   : > { %5600 = vmatmul.msk.f32.gmra.mxu0 %vm292_vm1, %v6821_v5 }
  0x8b   : > { %5616 = vmatmul.msk.f32.gmra.mxu2 %vm292_vm1, %v6824_v8 }
  0x8c   : > { %5649 = vmatmul.msk.f32.gmra.mxu3 %vm292_vm1, %v6827_v9 }
  0x8d   : > { %5633 = vmatmul.msk.f32.gmra.mxu1 %vm292_vm1, %v6830_v12 }
  0x8f   : > { %v6840_v57 = vpop.f32.mrf.mxu0 }
  0x92   : > { %v6843_v63 = vpop.f32.mrf.mxu1  ;;  %5784 = vmatmul.msk.f32.vlgmr.msrb.gmra.mxu0 %vm292_vm1, %v6545_v13 }
  0x93   : > { %5652 = vmatmul.msk.f32.vlgmr.msrb.gmra.mxu2 %vm292_vm1, %v718_v58 }
  0x94   : > { %5718 = vmatmul.msk.f32.vlgmr.msrb.gmra.mxu3 %vm292_vm1, %v6554_v16 }
  0x95   : > { %5850 = vmatmul.msk.f32.vlgmr.msrb.gmra.mxu1 %vm292_vm1, %v5816_v0 }
  0x96   : > { %v458_v9 = vpop.f32.mrf.mxu2 }
  0x97   : > { %v670_v8 = vpop.f32.mrf.mxu3  ;;  %v6854_v2 = vpop.f32.mrf.mxu0 }
  0x98   : > { %v6852_v3 = vadd.f32 %v670_v8, %v458_v9 }
  0x9a   : > { %9204 = vst [vmem:[#allocation10_spill] sm:$0xff] %v6852_v3  ;;  %v6857_v60 = vpop.f32.mrf.mxu1  ;;  %5785 = vmatmul.msk.f32.gmra.mxu0 %vm292_vm1, %v6565_v17  ;;  %v6873_v3 = vld [vmem:[%s6514_s8 + $0x32] sm:$0xff] }
  0x9b   : > { %5653 = vmatmul.msk.f32.gmra.mxu2 %vm292_vm1, %v719_v61  ;;  %9206 = vst [vmem:[#allocation12_spill] sm:$0xff] %v6873_v3 }
  0x9c   : > { %5719 = vmatmul.msk.f32.gmra.mxu3 %vm292_vm1, %v6574_v20 }
  0x9d   : > { %5851 = vmatmul.msk.f32.gmra.mxu1 %vm292_vm1, %v5817_v55 }
  0x9e   : > { %v461_v13 = vpop.f32.mrf.mxu2 }
  0x9f   : > { %v673_v16 = vpop.f32.mrf.mxu3  ;;  %v6868_v9 = vpop.f32.mrf.mxu0 }
  0xa0   : > { %v6866_v8 = vadd.f32 %v673_v16, %v461_v13 }
  0xa2   : > { %9205 = vst [vmem:[#allocation11_spill] sm:$0xff] %v6866_v8  ;;  %v6870_v58 = vpop.f32.mrf.mxu1  ;;  %5786 = vmatmul.msk.f32.gmra.mxu0 %vm292_vm1, %v6585_v21  ;;  %v6889_v8 = vld [vmem:[%s6514_s8 + $0x3a] sm:$0xff] }
  0xa3   : > { %5654 = vmatmul.msk.f32.gmra.mxu2 %vm292_vm1, %v5816_v0  ;;  %9208 = vst [vmem:[#allocation14_spill] sm:$0xff] %v6889_v8 }
  0xa4   : > { %5720 = vmatmul.msk.f32.gmra.mxu3 %vm292_vm1, %v6594_v24 }
  0xa5   : > { %5852 = vmatmul.msk.f32.gmra.mxu1 %vm292_vm1, %v6873_v3 }
  0xa6   : > { %v464_v17 = vpop.f32.mrf.mxu2 }
  0xa7   : > { %v676_v20 = vpop.f32.mrf.mxu3  ;;  %v6884_v13 = vpop.f32.mrf.mxu0 }
  0xa8   : > { %v6882_v61 = vadd.f32 %v676_v20, %v464_v17 }
  0xaa   : > { %9207 = vst [vmem:[#allocation13_spill] sm:$0xff] %v6882_v61  ;;  %v6886_v16 = vpop.f32.mrf.mxu1  ;;  %5787 = vmatmul.msk.f32.gmra.mxu0 %vm292_vm1, %v6605_v25  ;;  %v6905_v61 = vld [vmem:[%s6514_s8 + $0x4a] sm:$0xff] }
  0xab   : > { %5655 = vmatmul.msk.f32.gmra.mxu2 %vm292_vm1, %v5817_v55  ;;  %9210 = vst [vmem:[#allocation16_spill] sm:$0xff] %v6905_v61 }
  0xac   : > { %5721 = vmatmul.msk.f32.gmra.mxu3 %vm292_vm1, %v6614_v28 }
  0xad   : > { %5853 = vmatmul.msk.f32.gmra.mxu1 %vm292_vm1, %v6889_v8 }
  0xae   : > { %v467_v21 = vpop.f32.mrf.mxu2 }
  0xaf   : > { %v679_v24 = vpop.f32.mrf.mxu3  ;;  %v6900_v17 = vpop.f32.mrf.mxu0 }
  0xb0   : > { %v6898_v0 = vadd.f32 %v679_v24, %v467_v21 }
  0xb2   : > { %9209 = vst [vmem:[#allocation15_spill] sm:$0xff] %v6898_v0  ;;  %v6902_v20 = vpop.f32.mrf.mxu1  ;;  %5788 = vmatmul.msk.f32.gmra.mxu0 %vm292_vm1, %v6625_v29  ;;  %v6922_v0 = vld [vmem:[%s6514_s8 + $0x52] sm:$0xff] }
  0xb3   : > { %5656 = vmatmul.msk.f32.gmra.mxu2 %vm292_vm1, %v6873_v3  ;;  %9212 = vst [vmem:[#allocation18_spill] sm:$0xff] %v6922_v0  ;;  %v6939_v3 = vld [vmem:[%s6514_s8 + $0x62] sm:$0xff] }
  0xb4   : > { %5722 = vmatmul.msk.f32.gmra.mxu3 %vm292_vm1, %v6634_v32  ;;  %9214 = vst [vmem:[#allocation20_spill] sm:$0xff] %v6939_v3 }
  0xb5   : > { %5854 = vmatmul.msk.f32.gmra.mxu1 %vm292_vm1, %v6905_v61 }
  0xb6   : > { %v470_v25 = vpop.f32.mrf.mxu2 }
  0xb7   : > { %v682_v28 = vpop.f32.mrf.mxu3  ;;  %v6917_v21 = vpop.f32.mrf.mxu0 }
  0xb8   : > { %v6915_v55 = vadd.f32 %v682_v28, %v470_v25 }
  0xba   : > { %9211 = vst [vmem:[#allocation17_spill] sm:$0xff] %v6915_v55  ;;  %v6919_v24 = vpop.f32.mrf.mxu1  ;;  %5789 = vmatmul.msk.f32.gmra.mxu0 %vm292_vm1, %v6645_v33 }
  0xbb   : > { %5657 = vmatmul.msk.f32.gmra.mxu2 %vm292_vm1, %v6889_v8  ;;  %v6956_v8 = vld [vmem:[%s6514_s8 + $0x6a] sm:$0xff] }
  0xbc   : > { %5723 = vmatmul.msk.f32.gmra.mxu3 %vm292_vm1, %v6654_v36  ;;  %9216 = vst [vmem:[#allocation22_spill] sm:$0xff] %v6956_v8 }
  0xbd   : > { %5855 = vmatmul.msk.f32.gmra.mxu1 %vm292_vm1, %v6922_v0 }
  0xbe   : > { %v473_v29 = vpop.f32.mrf.mxu2 }
  0xbf   : > { %v685_v32 = vpop.f32.mrf.mxu3  ;;  %v6934_v28 = vpop.f32.mrf.mxu0 }
  0xc0   : > { %v6932_v25 = vadd.f32 %v685_v32, %v473_v29 }
  0xc2   : > { %9213 = vst [vmem:[#allocation19_spill] sm:$0xff] %v6932_v25  ;;  %v6936_v55 = vpop.f32.mrf.mxu1  ;;  %5790 = vmatmul.msk.f32.gmra.mxu0 %vm292_vm1, %v6665_v37 }
  0xc3   : > { %5658 = vmatmul.msk.f32.gmra.mxu2 %vm292_vm1, %v6905_v61  ;;  %v6973_v61 = vld [vmem:[%s6514_s8 + $0x7a] sm:$0xff] }
  0xc4   : > { %5724 = vmatmul.msk.f32.gmra.mxu3 %vm292_vm1, %v6674_v40  ;;  %9218 = vst [vmem:[#allocation24_spill] sm:$0xff] %v6973_v61 }
  0xc5   : > { %5856 = vmatmul.msk.f32.gmra.mxu1 %vm292_vm1, %v6939_v3 }
  0xc6   : > { %v476_v33 = vpop.f32.mrf.mxu2 }
  0xc7   : > { %v688_v36 = vpop.f32.mrf.mxu3  ;;  %v6951_v32 = vpop.f32.mrf.mxu0 }
  0xc8   : > { %v6949_v29 = vadd.f32 %v688_v36, %v476_v33 }
  0xca   : > { %9215 = vst [vmem:[#allocation21_spill] sm:$0xff] %v6949_v29  ;;  %v6953_v25 = vpop.f32.mrf.mxu1  ;;  %5791 = vmatmul.msk.f32.gmra.mxu0 %vm292_vm1, %v6685_v41 }
  0xcb   : > { %5659 = vmatmul.msk.f32.gmra.mxu2 %vm292_vm1, %v6922_v0  ;;  %v6990_v0 = vld [vmem:[%s6514_s8 + $0x82] sm:$0xff] }
  0xcc   : > { %5725 = vmatmul.msk.f32.gmra.mxu3 %vm292_vm1, %v6694_v44  ;;  %9220 = vst [vmem:[#allocation26_spill] sm:$0xff] %v6990_v0 }
  0xcd   : > { %5857 = vmatmul.msk.f32.gmra.mxu1 %vm292_vm1, %v6956_v8 }
  0xce   : > { %v479_v37 = vpop.f32.mrf.mxu2 }
  0xcf   : > { %v691_v40 = vpop.f32.mrf.mxu3  ;;  %v6968_v36 = vpop.f32.mrf.mxu0 }
  0xd0   : > { %v6966_v33 = vadd.f32 %v691_v40, %v479_v37 }
  0xd2   : > { %9217 = vst [vmem:[#allocation23_spill] sm:$0xff] %v6966_v33  ;;  %v6970_v29 = vpop.f32.mrf.mxu1  ;;  %5792 = vmatmul.msk.f32.gmra.mxu0 %vm292_vm1, %v6705_v45 }
  0xd3   : > { %5660 = vmatmul.msk.f32.gmra.mxu2 %vm292_vm1, %v6939_v3  ;;  %v7007_v3 = vld [vmem:[%s6514_s8 + $0x92] sm:$0xff] }
  0xd4   : > { %5726 = vmatmul.msk.f32.gmra.mxu3 %vm292_vm1, %v6714_v48  ;;  %9222 = vst [vmem:[#allocation28_spill] sm:$0xff] %v7007_v3 }
  0xd5   : > { %5858 = vmatmul.msk.f32.gmra.mxu1 %vm292_vm1, %v6973_v61 }
  0xd6   : > { %v482_v41 = vpop.f32.mrf.mxu2 }
  0xd7   : > { %v694_v44 = vpop.f32.mrf.mxu3  ;;  %v6985_v40 = vpop.f32.mrf.mxu0 }
  0xd8   : > { %v6983_v37 = vadd.f32 %v694_v44, %v482_v41 }
  0xda   : > { %9219 = vst [vmem:[#allocation25_spill] sm:$0xff] %v6983_v37  ;;  %v6987_v33 = vpop.f32.mrf.mxu1  ;;  %5793 = vmatmul.msk.f32.gmra.mxu0 %vm292_vm1, %v6725_v49 }
  0xdb   : > { %5661 = vmatmul.msk.f32.gmra.mxu2 %vm292_vm1, %v6956_v8  ;;  %v7024_v8 = vld [vmem:[%s6514_s8 + $0x9a] sm:$0xff] }
  0xdc   : > { %5727 = vmatmul.msk.f32.gmra.mxu3 %vm292_vm1, %v6734_v52  ;;  %9224 = vst [vmem:[#allocation30_spill] sm:$0xff] %v7024_v8 }
  0xdd   : > { %5859 = vmatmul.msk.f32.gmra.mxu1 %vm292_vm1, %v6990_v0 }
  0xde   : > { %v485_v45 = vpop.f32.mrf.mxu2 }
  0xdf   : > { %v697_v48 = vpop.f32.mrf.mxu3  ;;  %v7002_v44 = vpop.f32.mrf.mxu0 }
  0xe0   : > { %v7000_v41 = vadd.f32 %v697_v48, %v485_v45 }
  0xe2   : > { %9221 = vst [vmem:[#allocation27_spill] sm:$0xff] %v7000_v41  ;;  %v7004_v37 = vpop.f32.mrf.mxu1  ;;  %5794 = vmatmul.msk.f32.gmra.mxu0 %vm292_vm1, %v6745_v53 }
  0xe3   : > { %5662 = vmatmul.msk.f32.gmra.mxu2 %vm292_vm1, %v6973_v61  ;;  %v7041_v61 = vld [vmem:[%s6514_s8 + $0xaa] sm:$0xff] }
  0xe4   : > { %5728 = vmatmul.msk.f32.gmra.mxu3 %vm292_vm1, %v6754_v56  ;;  %9226 = vst [vmem:[#allocation32_spill] sm:$0xff] %v7041_v61 }
  0xe5   : > { %5860 = vmatmul.msk.f32.gmra.mxu1 %vm292_vm1, %v7007_v3 }
  0xe6   : > { %v488_v49 = vpop.f32.mrf.mxu2 }
  0xe7   : > { %v700_v52 = vpop.f32.mrf.mxu3  ;;  %v7019_v48 = vpop.f32.mrf.mxu0 }
  0xe8   : > { %v7017_v45 = vadd.f32 %v700_v52, %v488_v49 }
  0xea   : > { %9223 = vst [vmem:[#allocation29_spill] sm:$0xff] %v7017_v45  ;;  %v7021_v41 = vpop.f32.mrf.mxu1  ;;  %5795 = vmatmul.msk.f32.gmra.mxu0 %vm292_vm1, %v6773_v59 }
  0xeb   : > { %5663 = vmatmul.msk.f32.gmra.mxu2 %vm292_vm1, %v6990_v0  ;;  %v7058_v0 = vld [vmem:[%s6514_s8 + $0xb2] sm:$0xff] }
  0xec   : > { %5729 = vmatmul.msk.f32.gmra.mxu3 %vm292_vm1, %v6782_v62  ;;  %9228 = vst [vmem:[#allocation34_spill] sm:$0xff] %v7058_v0 }
  0xed   : > { %5861 = vmatmul.msk.f32.gmra.mxu1 %vm292_vm1, %v7024_v8 }
  0xee   : > { %v491_v53 = vpop.f32.mrf.mxu2 }
  0xef   : > { %v703_v56 = vpop.f32.mrf.mxu3  ;;  %v7036_v52 = vpop.f32.mrf.mxu0 }
  0xf0   : > { %v7034_v49 = vadd.f32 %v703_v56, %v491_v53 }
  0xf2   : > { %9225 = vst [vmem:[#allocation31_spill] sm:$0xff] %v7034_v49  ;;  %v7038_v45 = vpop.f32.mrf.mxu1  ;;  %5796 = vmatmul.msk.f32.gmra.mxu0 %vm292_vm1, %v6801_v1  ;;  %v6080_v1 = vld [vmem:[%s9133_s3 + $0x4] sm:$0xf] }
  0xf3   : > { %5664 = vmatmul.msk.f32.gmra.mxu2 %vm292_vm1, %v7007_v3  ;;  %6081 = vmatpush.msk.msra.mxu1 %vm389_vm0, %v6080_v1  ;;  %v7096_v3 = vld [vmem:[%s6514_s8 + $0xca] sm:$0xff] }
  0xf4   : > { %5730 = vmatmul.msk.f32.gmra.mxu3 %vm292_vm1, %v6810_v4  ;;  %9233 = vst [vmem:[#allocation39_spill] sm:$0xff] %v7096_v3 }
  0xf5   : > { %5862 = vmatmul.msk.f32.gmra.mxu1 %vm292_vm1, %v7041_v61 }
  0xf6   : > { %v494_v59 = vpop.f32.mrf.mxu2 }
  0xf7   : > { %v706_v62 = vpop.f32.mrf.mxu3  ;;  %v7053_v56 = vpop.f32.mrf.mxu0 }
  0xf8   : > { %v7051_v53 = vadd.f32 %v706_v62, %v494_v59 }
  0xfa   : > { %9227 = vst [vmem:[#allocation33_spill] sm:$0xff] %v7051_v53  ;;  %v7055_v49 = vpop.f32.mrf.mxu1  ;;  %5797 = vmatmul.msk.f32.gmra.mxu0 %vm292_vm1, %v6821_v5 }
  0xfb   : > { %5665 = vmatmul.msk.f32.gmra.mxu2 %vm292_vm1, %v7024_v8  ;;  %v7079_v8 = vld [vmem:[%s6514_s8 + $0xc2] sm:$0xff] }
  0xfc   : > { %5731 = vmatmul.msk.f32.gmra.mxu3 %vm292_vm1, %v6830_v12  ;;  %9230 = vst [vmem:[#allocation36_spill] sm:$0xff] %v7079_v8 }
  0xfd   : > { %5863 = vmatmul.msk.f32.gmra.mxu1 %vm292_vm1, %v7058_v0 }
  0xfe   : > { %v497_v4 = vpop.f32.mrf.mxu2 }
  0xff   : > { %v709_v59 = vpop.f32.mrf.mxu3  ;;  %v7074_v53 = vpop.f32.mrf.mxu0 }
 0x100   : > { %v7072_v62 = vadd.f32 %v709_v59, %v497_v4 }
 0x102   : > { %9229 = vst [vmem:[#allocation35_spill] sm:$0xff] %v7072_v62  ;;  %v7076_v5 = vpop.f32.mrf.mxu1  ;;  %5798 = vmatmul.msk.f32.gmra.mxu0 %vm292_vm1, %v6518_v6 }
 0x103   : > { %5666 = vmatmul.msk.f32.gmra.mxu2 %vm292_vm1, %v7041_v61  ;;  %v7109_v61 = vld [vmem:[%s6514_s8 + $0xda] sm:$0xff] }
 0x104   : > { %5732 = vmatmul.msk.f32.gmra.mxu3 %vm292_vm1, %v6521_v7 }
 0x105   : > { %5864 = vmatmul.msk.f32.gmra.mxu1 %vm292_vm1, %v7079_v8 }
 0x106   : > { %v500_v12 = vpop.f32.mrf.mxu2 }
 0x107   : > { %v712_v1 = vpop.f32.mrf.mxu3  ;;  %v7091_v59 = vpop.f32.mrf.mxu0 }
 0x108   : > { %v7089_v4 = vadd.f32 %v712_v1, %v500_v12 }
 0x10a   : > { %9231 = vst [vmem:[#allocation37_spill] sm:$0xff] %v7089_v4  ;;  %v7093_v62 = vpop.f32.mrf.mxu1  ;;  %5799 = vmatmul.msk.f32.gmra.mxu0 %vm292_vm1, %v6532_v10  ;;  %v623_v10 = vadd.f32 %v6843_v63, %v6840_v57 }
 0x10b   : > { %9232 = vst [vmem:[#allocation38_spill] sm:$0xff] %v7093_v62  ;;  %5667 = vmatmul.msk.f32.gmra.mxu2 %vm292_vm1, %v7058_v0 }
 0x10c   : > { %5733 = vmatmul.msk.f32.gmra.mxu3 %vm292_vm1, %v6535_v11 }
 0x10d   : > { %5865 = vmatmul.msk.f32.gmra.mxu1 %vm292_vm1, %v7096_v3 }
 0x10e   : > { %v503_v6 = vpop.f32.mrf.mxu2 }
 0x10f   : > { %v715_v7 = vpop.f32.mrf.mxu3  ;;  %v1425_v1 = vpop.f32.mrf.mxu0 }
 0x110   : > { %v7106_v12 = vadd.f32 %v715_v7, %v503_v6 }
 0x112   : > { %9234 = vst [vmem:[#allocation40_spill] sm:$0xff] %v7106_v12  ;;  %v1703_v4 = vpop.f32.mrf.mxu1  ;;  %5800 = vmatmul.msk.f32.gmra.mxu0 %vm292_vm1, %v6548_v14 }
 0x113   : > { %5668 = vmatmul.msk.f32.gmra.mxu2 %vm292_vm1, %v7079_v8  ;;  %v7122_v8 = vld [vmem:[%s6514_s8 + $0xe2] sm:$0xff] }
 0x114   : > { %5734 = vmatmul.msk.f32.gmra.mxu3 %vm292_vm1, %v6551_v15  ;;  %v626_v15 = vadd.f32 %v6857_v60, %v6854_v2  ;;  %v629_v60 = vadd.f32 %v6870_v58, %v6868_v9  ;;  %v632_v9 = vadd.f32 %v6886_v16, %v6884_v13 }
 0x115   : > { %5866 = vmatmul.msk.f32.gmra.mxu1 %vm292_vm1, %v7109_v61 }
 0x116   : > { %v868_v11 = vpop.f32.mrf.mxu2 }
 0x117   : > { %v964_v6 = vadd.f32 %v868_v11, %v623_v10  ;;  %v1147_v7 = vpop.f32.mrf.mxu3  ;;  %v1428_v12 = vpop.f32.mrf.mxu0 }
 0x119   : > { %v1243_v0 = vadd.f32 %v1147_v7, %v964_v6 }
 0x11a   : > { %v1706_v62 = vpop.f32.mrf.mxu1  ;;  %5801 = vmatmul.msk.f32.gmra.mxu0 %vm292_vm1, %v6568_v18  ;;  %v7137_v18 = vld [vmem:[%s6514_s8 + $0xf2] sm:$0xff] }
 0x11b   : > { %5669 = vmatmul.msk.f32.gmra.mxu2 %vm292_vm1, %v7096_v3  ;;  %v1521_v14 = vadd.f32 %v1425_v1, %v1243_v0 }
 0x11c   : > { %5735 = vmatmul.msk.f32.gmra.mxu3 %vm292_vm1, %v6571_v19 }
 0x11d   : > { %v7132_v57 = vadd.f32 %v1703_v4, %v1521_v14  ;;  %5867 = vmatmul.msk.f32.gmra.mxu1 %vm292_vm1, %v7122_v8 }
 0x11e   : > { %v871_v63 = vpop.f32.mrf.mxu2 }
 0x11f   : > { %v965_v10 = vadd.f32 %v871_v63, %v626_v15  ;;  %v1150_v11 = vpop.f32.mrf.mxu3  ;;  %v1431_v6 = vpop.f32.mrf.mxu0 }
 0x121   : > { %v1244_v7 = vadd.f32 %v1150_v11, %v965_v10 }
 0x122   : > { %v1709_v3 = vpop.f32.mrf.mxu1  ;;  %5802 = vmatmul.msk.f32.gmra.mxu0 %vm292_vm1, %v6588_v22  ;;  %v7152_v22 = vld [vmem:[%s6514_s8 + $0xfa] sm:$0xff] }
 0x123   : > { %5670 = vmatmul.msk.f32.gmra.mxu2 %vm292_vm1, %v7109_v61  ;;  %v1522_v19 = vadd.f32 %v1428_v12, %v1244_v7 }
 0x124   : > { %5736 = vmatmul.msk.f32.gmra.mxu3 %vm292_vm1, %v6591_v23 }
 0x125   : > { %v7147_v2 = vadd.f32 %v1706_v62, %v1522_v19  ;;  %5868 = vmatmul.msk.f32.gmra.mxu1 %vm292_vm1, %v7137_v18  ;;  %v7167_v19 = vld [vmem:[%s6514_s8 + $0x10a] sm:$0xff] }
 0x126   : > { %v874_v0 = vpop.f32.mrf.mxu2 }
 0x127   : > { %v966_v4 = vadd.f32 %v874_v0, %v629_v60  ;;  %v1153_v1 = vpop.f32.mrf.mxu3  ;;  %v1434_v14 = vpop.f32.mrf.mxu0 }
 0x129   : > { %v1245_v15 = vadd.f32 %v1153_v1, %v966_v4 }
 0x12a   : > { %v1712_v63 = vpop.f32.mrf.mxu1  ;;  %5803 = vmatmul.msk.f32.gmra.mxu0 %vm292_vm1, %v6608_v26 }
 0x12b   : > { %5671 = vmatmul.msk.f32.gmra.mxu2 %vm292_vm1, %v7122_v8  ;;  %v1523_v23 = vadd.f32 %v1431_v6, %v1245_v15 }
 0x12c   : > { %5737 = vmatmul.msk.f32.gmra.mxu3 %vm292_vm1, %v6611_v27 }
 0x12d   : > { %v7162_v58 = vadd.f32 %v1709_v3, %v1523_v23  ;;  %5869 = vmatmul.msk.f32.gmra.mxu1 %vm292_vm1, %v7152_v22  ;;  %v635_v3 = vadd.f32 %v6902_v20, %v6900_v17  ;;  %v638_v17 = vadd.f32 %v6919_v24, %v6917_v21  ;;  %v641_v21 = vadd.f32 %v6936_v55, %v6934_v28 }
 0x12e   : > { %v877_v62 = vpop.f32.mrf.mxu2  ;;  %v644_v55 = vadd.f32 %v6953_v25, %v6951_v32 }
 0x12f   : > { %v967_v12 = vadd.f32 %v877_v62, %v632_v9  ;;  %v1156_v10 = vpop.f32.mrf.mxu3  ;;  %v1437_v11 = vpop.f32.mrf.mxu0 }
 0x131   : > { %v1246_v7 = vadd.f32 %v1156_v10, %v967_v12 }
 0x132   : > { %5804 = vmatmul.msk.f32.gmra.mxu0 %vm292_vm1, %v6628_v30  ;;  %v1715_v27 = vpop.f32.mrf.mxu1  ;;  %v7182_v30 = vld [vmem:[%s6514_s8 + $0x112] sm:$0xff] }
 0x133   : > { %5672 = vmatmul.msk.f32.gmra.mxu2 %vm292_vm1, %v7137_v18  ;;  %v1524_v26 = vadd.f32 %v1434_v14, %v1246_v7 }
 0x134   : > { %5738 = vmatmul.msk.f32.gmra.mxu3 %vm292_vm1, %v6631_v31 }
 0x135   : > { %v7177_v13 = vadd.f32 %v1712_v63, %v1524_v26  ;;  %5870 = vmatmul.msk.f32.gmra.mxu1 %vm292_vm1, %v7167_v19 }
 0x136   : > { %v880_v16 = vpop.f32.mrf.mxu2 }
 0x137   : > { %v968_v6 = vadd.f32 %v880_v16, %v635_v3  ;;  %v1159_v60 = vpop.f32.mrf.mxu3  ;;  %v1440_v0 = vpop.f32.mrf.mxu0 }
 0x139   : > { %v1247_v4 = vadd.f32 %v1159_v60, %v968_v6 }
 0x13a   : > { %5805 = vmatmul.msk.f32.gmra.mxu0 %vm292_vm1, %v6648_v34  ;;  %v1718_v14 = vpop.f32.mrf.mxu1  ;;  %v7197_v34 = vld [vmem:[%s6514_s8 + $0x122] sm:$0xff] }
 0x13b   : > { %5673 = vmatmul.msk.f32.gmra.mxu2 %vm292_vm1, %v7152_v22  ;;  %v1525_v31 = vadd.f32 %v1437_v11, %v1247_v4  ;;  %v5840_v4 = vld [vmem:[%s6514_s8 + $0x13a] sm:$0xff] }
 0x13c   : > { %5739 = vmatmul.msk.f32.gmra.mxu3 %vm292_vm1, %v6651_v35 }
 0x13d   : > { %v7192_v20 = vadd.f32 %v1715_v27, %v1525_v31  ;;  %5871 = vmatmul.msk.f32.gmra.mxu1 %vm292_vm1, %v7182_v30 }
 0x13e   : > { %v883_v1 = vpop.f32.mrf.mxu2 }
 0x13f   : > { %v969_v15 = vadd.f32 %v883_v1, %v638_v17  ;;  %v1162_v63 = vpop.f32.mrf.mxu3  ;;  %v1443_v23 = vpop.f32.mrf.mxu0 }
 0x141   : > { %v1248_v9 = vadd.f32 %v1162_v63, %v969_v15  ;;  %v5841_v15 = vld [vmem:[%s6514_s8 + $0x142] sm:$0xff] }
 0x142   : > { %5806 = vmatmul.msk.f32.gmra.mxu0 %vm292_vm1, %v6668_v38  ;;  %v1721_v7 = vpop.f32.mrf.mxu1  ;;  %v5839_v38 = vld [vmem:[%s6514_s8 + $0x12a] sm:$0xff] }
 0x143   : > { %5674 = vmatmul.msk.f32.gmra.mxu2 %vm292_vm1, %v7167_v19  ;;  %v1526_v35 = vadd.f32 %v1440_v0, %v1248_v9 }
 0x144   : > { %5740 = vmatmul.msk.f32.gmra.mxu3 %vm292_vm1, %v6671_v39 }
 0x145   : > { %v7207_v24 = vadd.f32 %v1718_v14, %v1526_v35  ;;  %5872 = vmatmul.msk.f32.gmra.mxu1 %vm292_vm1, %v7197_v34  ;;  %v5842_v35 = vld [vmem:[%s6514_s8 + $0x152] sm:$0xff] }
 0x146   : > { %v886_v62 = vpop.f32.mrf.mxu2 }
 0x147   : > { %v970_v12 = vadd.f32 %v886_v62, %v641_v21  ;;  %v1165_v10 = vpop.f32.mrf.mxu3  ;;  %v1446_v11 = vpop.f32.mrf.mxu0 }
 0x149   : > { %v1249_v26 = vadd.f32 %v1165_v10, %v970_v12 }
 0x14a   : > { %5807 = vmatmul.msk.f32.gmra.mxu0 %vm292_vm1, %v6688_v42  ;;  %v1724_v0 = vpop.f32.mrf.mxu1 }
 0x14b   : > { %5675 = vmatmul.msk.f32.gmra.mxu2 %vm292_vm1, %v7182_v30  ;;  %v1527_v39 = vadd.f32 %v1443_v23, %v1249_v26  ;;  %v9237_v26 = vld [vmem:[#allocation5_spill] sm:$0xff] }
 0x14c   : > { %5741 = vmatmul.msk.f32.gmra.mxu3 %vm292_vm1, %v6691_v43  ;;  %v647_v43 = vadd.f32 %v6970_v29, %v6968_v36 }
 0x14d   : > { %v7220_v28 = vadd.f32 %v1721_v7, %v1527_v39  ;;  %5873 = vmatmul.msk.f32.gmra.mxu1 %vm292_vm1, %v5839_v38 }
 0x14e   : > { %v889_v27 = vpop.f32.mrf.mxu2 }
 0x14f   : > { %v971_v3 = vadd.f32 %v889_v27, %v644_v55  ;;  %v1168_v16 = vpop.f32.mrf.mxu3  ;;  %v1449_v6 = vpop.f32.mrf.mxu0 }
 0x151   : > { %v1250_v60 = vadd.f32 %v1168_v16, %v971_v3  ;;  %v5844_v3 = vld [vmem:[%s6514_s8 + $0x16a] sm:$0xff] }
 0x152   : > { %5808 = vmatmul.msk.f32.gmra.mxu0 %vm292_vm1, %v6708_v46  ;;  %v9238_v16 = vld [vmem:[#allocation6_spill] sm:$0xff] }
 0x153   : > { %5676 = vmatmul.msk.f32.gmra.mxu2 %vm292_vm1, %v7197_v34  ;;  %v1528_v42 = vadd.f32 %v1446_v11, %v1250_v60  ;;  %v5843_v11 = vld [vmem:[%s6514_s8 + $0x15a] sm:$0xff]  ;;  %v9239_v60 = vld [vmem:[#allocation7_spill] sm:$0xff] }
 0x154   : > { %5742 = vmatmul.msk.f32.gmra.mxu3 %vm292_vm1, %v6711_v47  ;;  %v650_v47 = vadd.f32 %v6987_v33, %v6985_v40  ;;  %v653_v33 = vadd.f32 %v7004_v37, %v7002_v44  ;;  %v656_v37 = vadd.f32 %v7021_v41, %v7019_v48  ;;  %v659_v41 = vadd.f32 %v7038_v45, %v7036_v52 }
 0x155   : > { %v7232_v25 = vadd.f32 %v1724_v0, %v1528_v42  ;;  %5874 = vmatmul.msk.f32.gmra.mxu1 %vm292_vm1, %v5840_v4  ;;  %v662_v45 = vadd.f32 %v7055_v49, %v7053_v56  ;;  %v665_v49 = vadd.f32 %v7076_v5, %v7074_v53  ;;  %v9242_v53 = vld [vmem:[#allocation38_spill] sm:$0xff] }
 0x156   : > { %v892_v32 = vpop.f32.mrf.mxu2  ;;  %v668_v5 = vadd.f32 %v9242_v53, %v7091_v59 }
 0x157   : > { %v972_v31 = vadd.f32 %v892_v32, %v647_v43  ;;  %v1171_v17 = vpop.f32.mrf.mxu3  ;;  %v1452_v1 = vpop.f32.mrf.mxu0  ;;  %v5845_v32 = vld [vmem:[%s6514_s8 + $0x172] sm:$0xff] }
 0x159   : > { %v1251_v14 = vadd.f32 %v1171_v17, %v972_v31  ;;  %v9240_v31 = vld [vmem:[#allocation8_spill] sm:$0xff] }
 0x15a   : > { %5809 = vmatmul.msk.f32.gmra.mxu0 %vm292_vm1, %v6728_v50 }
 0x15b   : > { %5677 = vmatmul.msk.f32.gmra.mxu2 %vm292_vm1, %v5839_v38  ;;  %v7239_v46 = vadd.f32 %v1449_v6, %v1251_v14 }
 0x15c   : > { %5743 = vmatmul.msk.f32.gmra.mxu3 %vm292_vm1, %v6731_v51  ;;  %v9235_v51 = vld [vmem:[#allocation3_spill] sm:$0xff] }
 0x15d   : > { %5875 = vmatmul.msk.f32.gmra.mxu1 %vm292_vm1, %v5841_v15 }
 0x15e   : > { %v895_v29 = vpop.f32.mrf.mxu2 }
 0x15f   : > { %v973_v36 = vadd.f32 %v895_v29, %v650_v47  ;;  %v1174_v63 = vpop.f32.mrf.mxu3  ;;  %v1455_v23 = vpop.f32.mrf.mxu0  ;;  %v5780_v29 = vld [vmem:[%s6514_s8 + $0x181] sm:$0xff] }
 0x161   : > { %v1252_v9 = vadd.f32 %v1174_v63, %v973_v36  ;;  %v5714_v63 = vld [vmem:[%s6514_s8 + $0x180] sm:$0xff] }
 0x162   : > { %5810 = vmatmul.msk.f32.gmra.mxu0 %vm292_vm1, %v6748_v54  ;;  %v9236_v54 = vld [vmem:[#allocation4_spill] sm:$0xff] }
 0x163   : > { %5678 = vmatmul.msk.f32.gmra.mxu2 %vm292_vm1, %v5840_v4  ;;  %v7250_v50 = vadd.f32 %v1452_v1, %v1252_v9  ;;  %v9241_v1 = vld [vmem:[#allocation9_spill] sm:$0xff] }
 0x164   : > { %5744 = vmatmul.msk.f32.gmra.mxu3 %vm292_vm1, %v9235_v51 }
 0x165   : > { %5876 = vmatmul.msk.f32.gmra.mxu1 %vm292_vm1, %v5842_v35 }
 0x166   : > { %v898_v40 = vpop.f32.mrf.mxu2 }
 0x167   : > { %v974_v21 = vadd.f32 %v898_v40, %v653_v33  ;;  %v1177_v62 = vpop.f32.mrf.mxu3  ;;  %v1458_v12 = vpop.f32.mrf.mxu0  ;;  %v5781_v40 = vld [vmem:[%s6514_s8 + $0x189] sm:$0xff] }
 0x169   : > { %v1253_v10 = vadd.f32 %v1177_v62, %v974_v21  ;;  %v5715_v62 = vld [vmem:[%s6514_s8 + $0x188] sm:$0xff] }
 0x16a   : > { %5811 = vmatmul.msk.f32.gmra.mxu0 %vm292_vm1, %v9236_v54 }
 0x16b   : > { %5679 = vmatmul.msk.f32.gmra.mxu2 %vm292_vm1, %v5841_v15  ;;  %v7261_v7 = vadd.f32 %v1455_v23, %v1253_v10  ;;  %v5846_v23 = vld [vmem:[%s6514_s8 + $0x182] sm:$0xff] }
 0x16c   : > { %5745 = vmatmul.msk.f32.gmra.mxu3 %vm292_vm1, %v9237_v26 }
 0x16d   : > { %5877 = vmatmul.msk.f32.gmra.mxu1 %vm292_vm1, %v5843_v11 }
 0x16e   : > { %v901_v44 = vpop.f32.mrf.mxu2 }
 0x16f   : > { %v975_v38 = vadd.f32 %v901_v44, %v656_v37  ;;  %v1180_v39 = vpop.f32.mrf.mxu3  ;;  %v1461_v55 = vpop.f32.mrf.mxu0  ;;  %v5882_v44 = vld [vmem:[%s6514_s8 + $0x30] sm:$0xff] }
 0x171   : > { %v1254_v27 = vadd.f32 %v1180_v39, %v975_v38  ;;  %v5948_v39 = vld [vmem:[%s6514_s8 + $0x31] sm:$0xff] }
 0x172   : > { %5812 = vmatmul.msk.f32.gmra.mxu0 %vm292_vm1, %v9238_v16 }
 0x173   : > { %5680 = vmatmul.msk.f32.gmra.mxu2 %vm292_vm1, %v5842_v35  ;;  %v7272_v6 = vadd.f32 %v1458_v12, %v1254_v27  ;;  %v5847_v12 = vld [vmem:[%s6514_s8 + $0x18a] sm:$0xff] }
 0x174   : > { %5746 = vmatmul.msk.f32.gmra.mxu3 %vm292_vm1, %v9239_v60 }
 0x175   : > { %5878 = vmatmul.msk.f32.gmra.mxu1 %vm292_vm1, %v5844_v3 }
 0x176   : > { %v904_v48 = vpop.f32.mrf.mxu2 }
 0x177   : > { %v976_v0 = vadd.f32 %v904_v48, %v659_v41  ;;  %v1183_v4 = vpop.f32.mrf.mxu3  ;;  %v1464_v42 = vpop.f32.mrf.mxu0  ;;  %v5883_v48 = vld [vmem:[%s6514_s8 + $0x38] sm:$0xff] }
 0x179   : > { %v1255_v43 = vadd.f32 %v1183_v4, %v976_v0  ;;  %v5949_v4 = vld [vmem:[%s6514_s8 + $0x39] sm:$0xff] }
 0x17a   : > { %5813 = vmatmul.msk.f32.gmra.mxu0 %vm292_vm1, %v9240_v31  ;;  %v9246_v31 = vld [vmem:[#allocation11_spill] sm:$0xff] }
 0x17b   : > { %5681 = vmatmul.msk.f32.gmra.mxu2 %vm292_vm1, %v5843_v11  ;;  %v7283_v17 = vadd.f32 %v1461_v55, %v1255_v43  ;;  %v9243_v55 = vld [vmem:[#allocation12_spill] sm:$0xff] }
 0x17c   : > { %5747 = vmatmul.msk.f32.gmra.mxu3 %vm292_vm1, %v9241_v1 }
 0x17d   : > { %5879 = vmatmul.msk.f32.gmra.mxu1 %vm292_vm1, %v5845_v32 }
 0x17e   : > { %v907_v52 = vpop.f32.mrf.mxu2 }
 0x17f   : > { %v977_v14 = vadd.f32 %v907_v52, %v662_v45  ;;  %v1186_v15 = vpop.f32.mrf.mxu3  ;;  %v1467_v47 = vpop.f32.mrf.mxu0 }
 0x181   : > { %v1256_v36 = vadd.f32 %v1186_v15, %v977_v14  ;;  %v5884_v14 = vld [vmem:[%s6514_s8 + $0x48] sm:$0xff] }
 0x182   : > { %5814 = vmatmul.msk.f32.gmra.mxu0 %vm292_vm1, %v5780_v29  ;;  %v9247_v29 = vld [vmem:[#allocation16_spill] sm:$0xff] }
 0x183   : > { %5682 = vmatmul.msk.f32.gmra.mxu2 %vm292_vm1, %v5844_v3  ;;  %v7295_v9 = vadd.f32 %v1464_v42, %v1256_v36  ;;  %v9244_v3 = vld [vmem:[#allocation10_spill] sm:$0xff] }
 0x184   : > { %5748 = vmatmul.msk.f32.gmra.mxu3 %vm292_vm1, %v5714_v63  ;;  %v9245_v42 = vld [vmem:[#allocation14_spill] sm:$0xff] }
 0x185   : > { %5880 = vmatmul.msk.f32.gmra.mxu1 %vm292_vm1, %v5846_v23  ;;  %v7338_v23 = vpop.f32.mrf.mxu1 }
 0x186   : > { %v910_v56 = vpop.f32.mrf.mxu2 }
 0x187   : > { %v978_v35 = vadd.f32 %v910_v56, %v665_v49  ;;  %v1189_v51 = vpop.f32.mrf.mxu3  ;;  %v1470_v33 = vpop.f32.mrf.mxu0  ;;  %v9248_v49 = vld [vmem:[#allocation13_spill] sm:$0xff] }
 0x189   : > { %v1257_v21 = vadd.f32 %v1189_v51, %v978_v35 }
 0x18a   : > { %5815 = vmatmul.msk.f32.gmra.mxu0 %vm292_vm1, %v5781_v40 }
 0x18b   : > { %5683 = vmatmul.msk.f32.gmra.mxu2 %vm292_vm1, %v5845_v32  ;;  %v7306_v10 = vadd.f32 %v1467_v47, %v1257_v21  ;;  %v5950_v47 = vld [vmem:[%s6514_s8 + $0x49] sm:$0xff]  ;;  %v5951_v21 = vld [vmem:[%s6514_s8 + $0x51] sm:$0xff] }
 0x18c   : > { %5749 = vmatmul.msk.f32.gmra.mxu3 %vm292_vm1, %v5715_v62  ;;  %v9249_v62 = vld [vmem:[#allocation18_spill] sm:$0xff] }
 0x18d   : > { %5881 = vmatmul.msk.f32.gmra.mxu1 %vm292_vm1, %v5847_v12 }
 0x18e   : > { %v913_v11 = vpop.f32.mrf.mxu2 }
 0x18f   : > { %v979_v54 = vadd.f32 %v913_v11, %v668_v5  ;;  %v1192_v26 = vpop.f32.mrf.mxu3  ;;  %v1473_v37 = vpop.f32.mrf.mxu0  ;;  %v9250_v5 = vld [vmem:[#allocation15_spill] sm:$0xff] }
 0x191   : > { %v1258_v38 = vadd.f32 %v1192_v26, %v979_v54 }
 0x192   : > { %6048 = vmatmul.msk.f32.vlgmr.msra.gmra.mxu0 %vm292_vm1, %v9243_v55  ;;  %v9251_v55 = vld [vmem:[#allocation20_spill] sm:$0xff] }
 0x193   : > { %5916 = vmatmul.msk.f32.vlgmr.msra.gmra.mxu2 %vm292_vm1, %v5882_v44  ;;  %v7317_v27 = vadd.f32 %v1470_v33, %v1258_v38  ;;  %v5885_v33 = vld [vmem:[%s6514_s8 + $0x50] sm:$0xff]  ;;  %v7351_v44 = vpop.f32.mrf.mxu1 }
 0x194   : > { %5982 = vmatmul.msk.f32.vlgmr.msra.gmra.mxu3 %vm292_vm1, %v5948_v39  ;;  %v5952_v39 = vld [vmem:[%s6514_s8 + $0x61] sm:$0xff] }
 0x196   : > { %v916_v59 = vpop.f32.mrf.mxu2 }
 0x197   : > { %v980_v16 = vadd.f32 %v916_v59, %v9244_v3  ;;  %v1195_v60 = vpop.f32.mrf.mxu3  ;;  %v1476_v41 = vpop.f32.mrf.mxu0 }
 0x199   : > { %v1259_v0 = vadd.f32 %v1195_v60, %v980_v16  ;;  %v9252_v16 = vld [vmem:[#allocation17_spill] sm:$0xff] }
 0x19a   : > { %6049 = vmatmul.msk.f32.gmra.mxu0 %vm292_vm1, %v9245_v42  ;;  %v5953_v42 = vld [vmem:[%s6514_s8 + $0x69] sm:$0xff] }
 0x19b   : > { %5917 = vmatmul.msk.f32.gmra.mxu2 %vm292_vm1, %v5883_v48  ;;  %v7326_v43 = vadd.f32 %v1473_v37, %v1259_v0  ;;  %v5886_v37 = vld [vmem:[%s6514_s8 + $0x60] sm:$0xff]  ;;  %v5887_v0 = vld [vmem:[%s6514_s8 + $0x68] sm:$0xff] }
 0x19c   : > { %5983 = vmatmul.msk.f32.gmra.mxu3 %vm292_vm1, %v5949_v4 }
 0x19e   : > { %v919_v32 = vpop.f32.mrf.mxu2 }
 0x19f   : > { %v981_v1 = vadd.f32 %v919_v32, %v9246_v31  ;;  %v1198_v45 = vpop.f32.mrf.mxu3  ;;  %v1479_v52 = vpop.f32.mrf.mxu0  ;;  %v9253_v31 = vld [vmem:[#allocation22_spill] sm:$0xff] }
 0x1a0   : > { %v7363_v32 = vpop.f32.mrf.mxu1 }
 0x1a1   : > { %v1260_v15 = vadd.f32 %v1198_v45, %v981_v1 }
 0x1a2   : > { %6050 = vmatmul.msk.f32.gmra.mxu0 %vm292_vm1, %v9247_v29  ;;  %v5888_v29 = vld [vmem:[%s6514_s8 + $0x78] sm:$0xff] }
 0x1a3   : > { %5918 = vmatmul.msk.f32.gmra.mxu2 %vm292_vm1, %v5884_v14  ;;  %v7335_v36 = vadd.f32 %v1476_v41, %v1260_v15 }
 0x1a4   : > { %5984 = vmatmul.msk.f32.gmra.mxu3 %vm292_vm1, %v5950_v47 }
 0x1a6   : > { %v922_v63 = vpop.f32.mrf.mxu2 }
 0x1a7   : > { %v982_v56 = vadd.f32 %v922_v63, %v9248_v49  ;;  %v1201_v35 = vpop.f32.mrf.mxu3  ;;  %v1482_v51 = vpop.f32.mrf.mxu0  ;;  %v5954_v49 = vld [vmem:[%s6514_s8 + $0x79] sm:$0xff] }
 0x1a9   : > { %v1261_v40 = vadd.f32 %v1201_v35, %v982_v56  ;;  %v9255_v56 = vld [vmem:[#allocation24_spill] sm:$0xff] }
 0x1aa   : > { %6051 = vmatmul.msk.f32.gmra.mxu0 %vm292_vm1, %v9249_v62 }
 0x1ab   : > { %5919 = vmatmul.msk.f32.gmra.mxu2 %vm292_vm1, %v5885_v33  ;;  %v7346_v12 = vadd.f32 %v1479_v52, %v1261_v40  ;;  %v9254_v52 = vld [vmem:[#allocation19_spill] sm:$0xff]  ;;  %v9256_v40 = vld [vmem:[#allocation21_spill] sm:$0xff] }
 0x1ac   : > { %5985 = vmatmul.msk.f32.gmra.mxu3 %vm292_vm1, %v5951_v21 }
 0x1ae   : > { %v925_v53 = vpop.f32.mrf.mxu2 }
 0x1af   : > { %v983_v11 = vadd.f32 %v925_v53, %v9250_v5  ;;  %v1204_v54 = vpop.f32.mrf.mxu3  ;;  %v1485_v26 = vpop.f32.mrf.mxu0  ;;  %v5889_v5 = vld [vmem:[%s6514_s8 + $0x80] sm:$0xff] }
 0x1b1   : > { %v1262_v38 = vadd.f32 %v1204_v54, %v983_v11  ;;  %v5955_v54 = vld [vmem:[%s6514_s8 + $0x81] sm:$0xff] }
 0x1b2   : > { %6052 = vmatmul.msk.f32.gmra.mxu0 %vm292_vm1, %v9251_v55  ;;  %v9258_v55 = vld [vmem:[#allocation23_spill] sm:$0xff] }
 0x1b3   : > { %5920 = vmatmul.msk.f32.gmra.mxu2 %vm292_vm1, %v5886_v37  ;;  %v7357_v59 = vadd.f32 %v1482_v51, %v1262_v38  ;;  %v7380_v51 = vpop.f32.mrf.mxu1 }
 0x1b4   : > { %5986 = vmatmul.msk.f32.gmra.mxu3 %vm292_vm1, %v5952_v39 }
 0x1b6   : > { %v928_v3 = vpop.f32.mrf.mxu2 }
 0x1b7   : > { %v984_v60 = vadd.f32 %v928_v3, %v9252_v16  ;;  %v1207_v41 = vpop.f32.mrf.mxu3  ;;  %v1488_v48 = vpop.f32.mrf.mxu0 }
 0x1b9   : > { %v1263_v4 = vadd.f32 %v1207_v41, %v984_v60  ;;  %v5890_v41 = vld [vmem:[%s6514_s8 + $0x90] sm:$0xff] }
 0x1ba   : > { %6053 = vmatmul.msk.f32.gmra.mxu0 %vm292_vm1, %v9253_v31 }
 0x1bb   : > { %5921 = vmatmul.msk.f32.gmra.mxu2 %vm292_vm1, %v5887_v0  ;;  %v7368_v1 = vadd.f32 %v1485_v26, %v1263_v4  ;;  %v9257_v26 = vld [vmem:[#allocation26_spill] sm:$0xff]  ;;  %v7391_v39 = vpop.f32.mrf.mxu1  ;;  %v5956_v0 = vld [vmem:[%s6514_s8 + $0x91] sm:$0xff] }
 0x1bc   : > { %5987 = vmatmul.msk.f32.gmra.mxu3 %vm292_vm1, %v5953_v42  ;;  %v9259_v4 = vld [vmem:[#allocation28_spill] sm:$0xff] }
 0x1be   : > { %v931_v45 = vpop.f32.mrf.mxu2 }
 0x1bf   : > { %v985_v14 = vadd.f32 %v931_v45, %v9254_v52  ;;  %v1210_v15 = vpop.f32.mrf.mxu3  ;;  %v1491_v47 = vpop.f32.mrf.mxu0  ;;  %v9260_v45 = vld [vmem:[#allocation25_spill] sm:$0xff] }
 0x1c1   : > { %v1264_v63 = vadd.f32 %v1210_v15, %v985_v14 }
 0x1c2   : > { %6054 = vmatmul.msk.f32.gmra.mxu0 %vm292_vm1, %v9255_v56  ;;  %v9261_v56 = vld [vmem:[#allocation30_spill] sm:$0xff] }
 0x1c3   : > { %5922 = vmatmul.msk.f32.gmra.mxu2 %vm292_vm1, %v5888_v29  ;;  %v7377_v35 = vadd.f32 %v1488_v48, %v1264_v63  ;;  %v7404_v29 = vpop.f32.mrf.mxu1 }
 0x1c4   : > { %5988 = vmatmul.msk.f32.gmra.mxu3 %vm292_vm1, %v5954_v49  ;;  %v5957_v49 = vld [vmem:[%s6514_s8 + $0x99] sm:$0xff] }
 0x1c6   : > { %v934_v33 = vpop.f32.mrf.mxu2 }
 0x1c7   : > { %v986_v21 = vadd.f32 %v934_v33, %v9256_v40  ;;  %v1213_v62 = vpop.f32.mrf.mxu3  ;;  %v1494_v53 = vpop.f32.mrf.mxu0 }
 0x1c9   : > { %v1265_v11 = vadd.f32 %v1213_v62, %v986_v21  ;;  %v9262_v21 = vld [vmem:[#allocation27_spill] sm:$0xff] }
 0x1ca   : > { %6055 = vmatmul.msk.f32.gmra.mxu0 %vm292_vm1, %v9257_v26  ;;  %v5958_v26 = vld [vmem:[%s6514_s8 + $0xa9] sm:$0xff] }
 0x1cb   : > { %5923 = vmatmul.msk.f32.gmra.mxu2 %vm292_vm1, %v5889_v5  ;;  %v7388_v37 = vadd.f32 %v1491_v47, %v1265_v11  ;;  %v5891_v47 = vld [vmem:[%s6514_s8 + $0x98] sm:$0xff]  ;;  %v5892_v11 = vld [vmem:[%s6514_s8 + $0xa8] sm:$0xff] }
 0x1cc   : > { %5989 = vmatmul.msk.f32.gmra.mxu3 %vm292_vm1, %v5955_v54 }
 0x1ce   : > { %v937_v38 = vpop.f32.mrf.mxu2 }
 0x1cf   : > { %v987_v3 = vadd.f32 %v937_v38, %v9258_v55  ;;  %v1216_v16 = vpop.f32.mrf.mxu3  ;;  %v1497_v60 = vpop.f32.mrf.mxu0  ;;  %v9263_v55 = vld [vmem:[#allocation32_spill] sm:$0xff] }
 0x1d0   : > { %v7416_v38 = vpop.f32.mrf.mxu1 }
 0x1d1   : > { %v1266_v48 = vadd.f32 %v1216_v16, %v987_v3 }
 0x1d2   : > { %6056 = vmatmul.msk.f32.gmra.mxu0 %vm292_vm1, %v9259_v4  ;;  %v5893_v4 = vld [vmem:[%s6514_s8 + $0xb0] sm:$0xff] }
 0x1d3   : > { %5924 = vmatmul.msk.f32.gmra.mxu2 %vm292_vm1, %v5890_v41  ;;  %v7399_v42 = vadd.f32 %v1494_v53, %v1266_v48 }
 0x1d4   : > { %5990 = vmatmul.msk.f32.gmra.mxu3 %vm292_vm1, %v5956_v0 }
 0x1d6   : > { %v940_v31 = vpop.f32.mrf.mxu2 }
 0x1d7   : > { %v988_v52 = vadd.f32 %v940_v31, %v9260_v45  ;;  %v1219_v14 = vpop.f32.mrf.mxu3  ;;  %v1500_v15 = vpop.f32.mrf.mxu0  ;;  %v5959_v45 = vld [vmem:[%s6514_s8 + $0xb1] sm:$0xff] }
 0x1d9   : > { %v1267_v63 = vadd.f32 %v1219_v14, %v988_v52  ;;  %v9265_v52 = vld [vmem:[#allocation34_spill] sm:$0xff] }
 0x1da   : > { %6057 = vmatmul.msk.f32.gmra.mxu0 %vm292_vm1, %v9261_v56 }
 0x1db   : > { %5925 = vmatmul.msk.f32.gmra.mxu2 %vm292_vm1, %v5891_v47  ;;  %v7410_v33 = vadd.f32 %v1497_v60, %v1267_v63  ;;  %v9264_v60 = vld [vmem:[#allocation29_spill] sm:$0xff]  ;;  %v9266_v63 = vld [vmem:[#allocation31_spill] sm:$0xff] }
 0x1dc   : > { %5991 = vmatmul.msk.f32.gmra.mxu3 %vm292_vm1, %v5957_v49 }
 0x1de   : > { %v943_v40 = vpop.f32.mrf.mxu2 }
 0x1df   : > { %v989_v62 = vadd.f32 %v943_v40, %v9262_v21  ;;  %v1222_v53 = vpop.f32.mrf.mxu3  ;;  %v1503_v5 = vpop.f32.mrf.mxu0  ;;  %v5894_v21 = vld [vmem:[%s6514_s8 + $0xc0] sm:$0xff] }
 0x1e1   : > { %v1268_v54 = vadd.f32 %v1222_v53, %v989_v62  ;;  %v5960_v53 = vld [vmem:[%s6514_s8 + $0xc1] sm:$0xff] }
 0x1e2   : > { %6058 = vmatmul.msk.f32.gmra.mxu0 %vm292_vm1, %v9263_v55  ;;  %v6447_v55 = vmov 0.0  }
 0x1e3   : > { %5926 = vmatmul.msk.f32.gmra.mxu2 %vm292_vm1, %v5892_v11  ;;  %v7421_v3 = vadd.f32 %v1500_v15, %v1268_v54  ;;  %v7433_v15 = vpop.f32.mrf.mxu1  ;;  %v2950_v11 = vld [vmem:[%s9133_s3] sm:$0xf]  ;;  %v9267_v54 = vld [vmem:[#allocation36_spill] sm:$0xff]  ;;  %2834 = vst.msk [vmem:[#allocation2 + $0x18] sm:$0xff] %vm292_vm1, %v6447_v55 }
 0x1e4   : > { %5992 = vmatmul.msk.f32.gmra.mxu3 %vm292_vm1, %v5958_v26  ;;  %6114 = vmatpush.msk.msrb.mxu2 %vm389_vm0, %v2950_v11  ;;  %2835 = vst.msk [vmem:[#allocation2 + $0x20] sm:$0xff] %vm292_vm1, %v6447_v55  ;;  %v5896_v11 = vld [vmem:[%s6514_s8 + $0xd8] sm:$0xff] }
 0x1e5   : > { %2830 = vst.msk [vmem:[#allocation2] sm:$0xff] %vm292_vm1, %v6447_v55 }
 0x1e6   : > { %v946_v16 = vpop.f32.mrf.mxu2  ;;  %2831 = vst.msk [vmem:[#allocation2 + $0x8] sm:$0xff] %vm292_vm1, %v6447_v55 }
 0x1e7   : > { %v990_v41 = vadd.f32 %v946_v16, %v9264_v60  ;;  %v1225_v48 = vpop.f32.mrf.mxu3  ;;  %v1506_v0 = vpop.f32.mrf.mxu0  ;;  %2837 = vst.msk [vmem:[#allocation2 + $0x30] sm:$0xff] %vm292_vm1, %v6447_v55 }
 0x1e8   : > { %2838 = vst.msk [vmem:[#allocation2 + $0x38] sm:$0xff] %vm292_vm1, %v6447_v55 }
 0x1e9   : > { %v1269_v31 = vadd.f32 %v1225_v48, %v990_v41  ;;  %v9268_v41 = vld [vmem:[#allocation33_spill] sm:$0xff]  ;;  %2840 = vst.msk [vmem:[#allocation2 + $0x48] sm:$0xff] %vm292_vm1, %v6447_v55 }
 0x1ea   : > { %6059 = vmatmul.msk.f32.gmra.mxu0 %vm292_vm1, %v9265_v52  ;;  %v5961_v52 = vld [vmem:[%s6514_s8 + $0xc9] sm:$0xff]  ;;  %2841 = vst.msk [vmem:[#allocation2 + $0x50] sm:$0xff] %vm292_vm1, %v6447_v55 }
 0x1eb   : > { %5927 = vmatmul.msk.f32.gmra.mxu2 %vm292_vm1, %v5893_v4  ;;  %v7430_v14 = vadd.f32 %v1503_v5, %v1269_v31  ;;  %v6147_v5 = vld [vmem:[%s9133_s3 + $0x8] sm:$0xf]  ;;  %v7456_v60 = vpop.f32.mrf.mxu1  ;;  %2843 = vst.msk [vmem:[#allocation2 + $0x60] sm:$0xff] %vm292_vm1, %v6447_v55 }
 0x1ec   : > { %5993 = vmatmul.msk.f32.gmra.mxu3 %vm292_vm1, %v5959_v45  ;;  %v5895_v31 = vld [vmem:[%s6514_s8 + $0xc8] sm:$0xff]  ;;  %2844 = vst.msk [vmem:[#allocation2 + $0x68] sm:$0xff] %vm292_vm1, %v6447_v55 }
 0x1ed   : > { %6148 = vmatpush.msk.msrb.mxu3 %vm389_vm0, %v6147_v5  ;;  %2846 = vst.msk [vmem:[#allocation2 + $0x78] sm:$0xff] %vm292_vm1, %v6447_v55 }
 0x1ee   : > { %v949_v47 = vpop.f32.mrf.mxu2  ;;  %2847 = vst.msk [vmem:[#allocation2 + $0x80] sm:$0xff] %vm292_vm1, %v6447_v55 }
 0x1ef   : > { %v991_v49 = vadd.f32 %v949_v47, %v9266_v63  ;;  %v1228_v56 = vpop.f32.mrf.mxu3  ;;  %v1509_v40 = vpop.f32.mrf.mxu0  ;;  %v9269_v47 = vld [vmem:[#allocation39_spill] sm:$0xff]  ;;  %2849 = vst.msk [vmem:[#allocation2 + $0x90] sm:$0xff] %vm292_vm1, %v6447_v55 }
 0x1f0   : > { %2850 = vst.msk [vmem:[#allocation2 + $0x98] sm:$0xff] %vm292_vm1, %v6447_v55 }
 0x1f1   : > { %v1270_v62 = vadd.f32 %v1228_v56, %v991_v49  ;;  %v9270_v56 = vld [vmem:[#allocation35_spill] sm:$0xff]  ;;  %2852 = vst.msk [vmem:[#allocation2 + $0xa8] sm:$0xff] %vm292_vm1, %v6447_v55 }
 0x1f2   : > { %6060 = vmatmul.msk.f32.gmra.mxu0 %vm292_vm1, %v9267_v54  ;;  %2853 = vst.msk [vmem:[#allocation2 + $0xb0] sm:$0xff] %vm292_vm1, %v6447_v55 }
 0x1f3   : > { %5928 = vmatmul.msk.f32.gmra.mxu2 %vm292_vm1, %v5894_v21  ;;  %v7449_v26 = vadd.f32 %v1506_v0, %v1270_v62  ;;  %v2951_v62 = vld [vmem:[#allocation2 + $0x1] sm:$0xff]  ;;  %v7490_v5 = vpop.f32.mrf.mxu1  ;;  %2855 = vst.msk [vmem:[#allocation2 + $0xc0] sm:$0xff] %vm292_vm1, %v6447_v55 }
 0x1f4   : > { %5994 = vmatmul.msk.f32.gmra.mxu3 %vm292_vm1, %v5960_v53  ;;  %6082 = vmatmul.msk.f32.vlgmr.msra.gmra.mxu1 %vm292_vm1, %v2951_v62  ;;  %2856 = vst.msk [vmem:[#allocation2 + $0xc8] sm:$0xff] %vm292_vm1, %v6447_v55 }
 0x1f5   : > { %2858 = vst.msk [vmem:[#allocation2 + $0xd8] sm:$0xff] %vm292_vm1, %v6447_v55 }
 0x1f6   : > { %v952_v16 = vpop.f32.mrf.mxu2  ;;  %2859 = vst.msk [vmem:[#allocation2 + $0xe0] sm:$0xff] %vm292_vm1, %v6447_v55 }
 0x1f7   : > { %v992_v48 = vadd.f32 %v952_v16, %v9268_v41  ;;  %v1231_v4 = vpop.f32.mrf.mxu3  ;;  %v1512_v0 = vpop.f32.mrf.mxu0  ;;  %v5962_v16 = vld [vmem:[%s6514_s8 + $0xd9] sm:$0xff]  ;;  %2861 = vst.msk [vmem:[#allocation2 + $0xf0] sm:$0xff] %vm292_vm1, %v6447_v55 }
 0x1f8   : > { %2862 = vst.msk [vmem:[#allocation2 + $0xf8] sm:$0xff] %vm292_vm1, %v6447_v55 }
 0x1f9   : > { %v1271_v45 = vadd.f32 %v1231_v4, %v992_v48  ;;  %v6181_v48 = vld [vmem:[%s9133_s3 + $0xc] sm:$0xf]  ;;  %2864 = vst.msk [vmem:[#allocation2 + $0x108] sm:$0xff] %vm292_vm1, %v6447_v55 }
 0x1fa   : > { %6061 = vmatmul.msk.f32.gmra.mxu0 %vm292_vm1, %v9269_v47  ;;  %v5897_v47 = vld [vmem:[%s6514_s8 + $0xe0] sm:$0xff]  ;;  %2865 = vst.msk [vmem:[#allocation2 + $0x110] sm:$0xff] %vm292_vm1, %v6447_v55 }
 0x1fb   : > { %5929 = vmatmul.msk.f32.gmra.mxu2 %vm292_vm1, %v5895_v31  ;;  %v7472_v63 = vadd.f32 %v1509_v40, %v1271_v45  ;;  %6182 = vmatpush.msk.msrb.mxu0 %vm389_vm0, %v6181_v48  ;;  %2867 = vst.msk [vmem:[#allocation2 + $0x120] sm:$0xff] %vm292_vm1, %v6447_v55 }
 0x1fc   : > { %5995 = vmatmul.msk.f32.gmra.mxu3 %vm292_vm1, %v5961_v52  ;;  %2868 = vst.msk [vmem:[#allocation2 + $0x128] sm:$0xff] %vm292_vm1, %v6447_v55 }
 0x1fd   : > { %2870 = vst.msk [vmem:[#allocation2 + $0x138] sm:$0xff] %vm292_vm1, %v6447_v55 }
 0x1fe   : > { %v955_v49 = vpop.f32.mrf.mxu2  ;;  %2871 = vst.msk [vmem:[#allocation2 + $0x140] sm:$0xff] %vm292_vm1, %v6447_v55 }
 0x1ff   : > { %v993_v21 = vadd.f32 %v955_v49, %v9270_v56  ;;  %v1234_v40 = vpop.f32.mrf.mxu3  ;;  %v1515_v53 = vpop.f32.mrf.mxu0  ;;  %v5963_v56 = vld [vmem:[%s6514_s8 + $0xe1] sm:$0xff]  ;;  %2873 = vst.msk [vmem:[#allocation2 + $0x150] sm:$0xff] %vm292_vm1, %v6447_v55 }
 0x200   : > { %2874 = vst.msk [vmem:[#allocation2 + $0x158] sm:$0xff] %vm292_vm1, %v6447_v55 }
 0x201   : > { %v1272_v54 = vadd.f32 %v1234_v40, %v993_v21  ;;  %v7530_v21 = vpop.f32.mrf.mxu1  ;;  %2876 = vst.msk [vmem:[#allocation2 + $0x168] sm:$0xff] %vm292_vm1, %v6447_v55 }
 0x202   : > { %6062 = vmatmul.msk.f32.gmra.mxu0 %vm292_vm1, %v7109_v61  ;;  %v6215_v61 = vld [vmem:[%s9133_s3 + $0x10] sm:$0xf]  ;;  %2877 = vst.msk [vmem:[#allocation2 + $0x170] sm:$0xff] %vm292_vm1, %v6447_v55 }
 0x203   : > { %5930 = vmatmul.msk.f32.gmra.mxu2 %vm292_vm1, %v5896_v11  ;;  %v7500_v41 = vadd.f32 %v1512_v0, %v1272_v54  ;;  %6216 = vmatpush.msk.msrb.mxu1 %vm389_vm0, %v6215_v61  ;;  %v9271_v0 = vld [vmem:[#allocation37_spill] sm:$0xff]  ;;  %v9272_v11 = vld [vmem:[#allocation40_spill] sm:$0xff]  ;;  %2879 = vst.msk [vmem:[#allocation2 + $0x180] sm:$0xff] %vm292_vm1, %v6447_v55 }
 0x204   : > { %5996 = vmatmul.msk.f32.gmra.mxu3 %vm292_vm1, %v5962_v16  ;;  %v5898_v16 = vld [vmem:[%s6514_s8 + $0xf0] sm:$0xff]  ;;  %2880 = vst.msk [vmem:[#allocation2 + $0x188] sm:$0xff] %vm292_vm1, %v6447_v55 }
 0x205   : > { %v5964_v61 = vld [vmem:[%s6514_s8 + $0xf1] sm:$0xff]  ;;  %2882 = vst.msk [vmem:[#allocation2 + $0x198] sm:$0xff] %vm292_vm1, %v6447_v55 }
 0x206   : > { %v958_v4 = vpop.f32.mrf.mxu2  ;;  %2883 = vst.msk [vmem:[#allocation2 + $0x1a0] sm:$0xff] %vm292_vm1, %v6447_v55 }
 0x207   : > { %v994_v31 = vadd.f32 %v958_v4, %v9271_v0  ;;  %v1237_v45 = vpop.f32.mrf.mxu3  ;;  %v1518_v52 = vpop.f32.mrf.mxu0  ;;  %2836 = vst.msk [vmem:[#allocation2 + $0x28] sm:$0x3] %vm2832_vm2, %v6447_v55 }
 0x208   : > { %2833 = vst.msk [vmem:[#allocation2 + $0x10] sm:$0x3] %vm2832_vm2, %v6447_v55 }
 0x209   : > { %v1273_v49 = vadd.f32 %v1237_v45, %v994_v31  ;;  %v7567_v0 = vpop.f32.mrf.mxu1  ;;  %2839 = vst.msk [vmem:[#allocation2 + $0x40] sm:$0x3] %vm2832_vm2, %v6447_v55 }
 0x20a   : > { %6063 = vmatmul.msk.f32.gmra.mxu0 %vm292_vm1, %v7122_v8  ;;  %2842 = vst.msk [vmem:[#allocation2 + $0x58] sm:$0x3] %vm2832_vm2, %v6447_v55 }
 0x20b   : > { %5931 = vmatmul.msk.f32.gmra.mxu2 %vm292_vm1, %v5897_v47  ;;  %v7535_v40 = vadd.f32 %v1515_v53, %v1273_v49  ;;  %v5899_v47 = vld [vmem:[%s6514_s8 + $0xf8] sm:$0xff]  ;;  %2845 = vst.msk [vmem:[#allocation2 + $0x70] sm:$0x3] %vm2832_vm2, %v6447_v55 }
 0x20c   : > { %5997 = vmatmul.msk.f32.gmra.mxu3 %vm292_vm1, %v5963_v56  ;;  %v7582_v56 = vld [vmem:[%s9132_s2] ss:$0 sm:$0xff]  ;;  %2848 = vst.msk [vmem:[#allocation2 + $0x88] sm:$0x3] %vm2832_vm2, %v6447_v55 }
 0x20d   : > { %2851 = vst.msk [vmem:[#allocation2 + $0xa0] sm:$0x3] %vm2832_vm2, %v6447_v55 }
 0x20e   : > { %v961_v62 = vpop.f32.mrf.mxu2  ;;  %2854 = vst.msk [vmem:[#allocation2 + $0xb8] sm:$0x3] %vm2832_vm2, %v6447_v55 }
 0x20f   : > { %v995_v54 = vadd.f32 %v961_v62, %v9272_v11  ;;  %v1240_v8 = vpop.f32.mrf.mxu3  ;;  %v2538_v53 = vpop.f32.mrf.mxu0  ;;  %v5965_v62 = vld [vmem:[%s6514_s8 + $0xf9] sm:$0xff]  ;;  %v7592_v11 = vld [vmem:[%s9132_s2 + $0x1] ss:$0 sm:$0xff]  ;;  %2857 = vst.msk [vmem:[#allocation2 + $0xd0] sm:$0x3] %vm2832_vm2, %v6447_v55 }
 0x210   : > { %2860 = vst.msk [vmem:[#allocation2 + $0xe8] sm:$0x3] %vm2832_vm2, %v6447_v55 }
 0x211   : > { %v1274_v48 = vadd.f32 %v1240_v8, %v995_v54  ;;  %2863 = vst.msk [vmem:[#allocation2 + $0x100] sm:$0x3] %vm2832_vm2, %v6447_v55 }
 0x212   : > { %6064 = vmatmul.msk.f32.gmra.mxu0 %vm292_vm1, %v7137_v18  ;;  %2866 = vst.msk [vmem:[#allocation2 + $0x118] sm:$0x3] %vm2832_vm2, %v6447_v55 }
 0x213   : > { %5932 = vmatmul.msk.f32.gmra.mxu2 %vm292_vm1, %v5898_v16  ;;  %v7560_v4 = vadd.f32 %v1518_v52, %v1274_v48  ;;  %2869 = vst.msk [vmem:[#allocation2 + $0x130] sm:$0x3] %vm2832_vm2, %v6447_v55 }
 0x214   : > { %5998 = vmatmul.msk.f32.gmra.mxu3 %vm292_vm1, %v5964_v61  ;;  %2872 = vst.msk [vmem:[#allocation2 + $0x148] sm:$0x3] %vm2832_vm2, %v6447_v55 }
 0x215   : > { %2875 = vst.msk [vmem:[#allocation2 + $0x160] sm:$0x3] %vm2832_vm2, %v6447_v55 }
 0x216   : > { %v1982_v31 = vpop.f32.mrf.mxu2  ;;  %2878 = vst.msk [vmem:[#allocation2 + $0x178] sm:$0x3] %vm2832_vm2, %v6447_v55 }
 0x217   : > { %v2078_v18 = vadd.f32 %v1982_v31, %v7132_v57  ;;  %v2260_v45 = vpop.f32.mrf.mxu3  ;;  %v2541_v52 = vpop.f32.mrf.mxu0  ;;  %v5900_v31 = vld [vmem:[%s6514_s8 + $0x108] sm:$0xff]  ;;  %2881 = vst.msk [vmem:[#allocation2 + $0x190] sm:$0x3] %vm2832_vm2, %v6447_v55 }
 0x218   : > { %2884 = vst.msk [vmem:[#allocation2 + $0x1a8] sm:$0x3] %vm2832_vm2, %v6447_v55 }
 0x219   : > { %v2356_v49 = vadd.f32 %v2260_v45, %v2078_v18  ;;  %v5966_v18 = vld [vmem:[%s6514_s8 + $0x109] sm:$0xff] }
 0x21a   : > { %6065 = vmatmul.msk.f32.gmra.mxu0 %vm292_vm1, %v7152_v22 }
 0x21b   : > { %v2634_v57 = vadd.f32 %v2538_v53, %v2356_v49  ;;  %5933 = vmatmul.msk.f32.gmra.mxu2 %vm292_vm1, %v5899_v47  ;;  %v7607_v53 = vpop.f32.mrf.mxu1  ;;  %v2952_v49 = vld [vmem:[#allocation2 + $0x9] sm:$0xff] }
 0x21c   : > { %5999 = vmatmul.msk.f32.gmra.mxu3 %vm292_vm1, %v5965_v62  ;;  %6083 = vmatmul.msk.f32.gmra.mxu1 %vm292_vm1, %v2952_v49 }
 0x21d   : > { %v2668_v54 = vmul.f32 %v7582_v56, %v2634_v57 }
 0x21e   : > { %v1985_v8 = vpop.f32.mrf.mxu2 }
 0x21f   : > { %v2702_v22 = vadd.f32 %v7592_v11, %v2668_v54  ;;  %v2079_v16 = vadd.f32 %v1985_v8, %v7147_v2  ;;  %v2263_v48 = vpop.f32.mrf.mxu3  ;;  %v2544_v61 = vpop.f32.mrf.mxu0 }
 0x221   : > { %vm2734_vm3 = vcmp.ge.f32.partialorder %v2702_v22, 0.0  ;;  %v2766_v45 = vmul.f32 0.2, %v2702_v22  ;;  %v2357_v47 = vadd.f32 %v2263_v48, %v2079_v16  ;;  %v5901_v16 = vld [vmem:[%s6514_s8 + $0x110] sm:$0xff] }
 0x222   : > { %6066 = vmatmul.msk.f32.gmra.mxu0 %vm292_vm1, %v7167_v19 }
 0x223   : > { %v2798_v2 = vsel %vm2734_vm3, %v2702_v22, %v2766_v45  ;;  %v2635_v62 = vadd.f32 %v2541_v52, %v2357_v47  ;;  %5934 = vmatmul.msk.f32.gmra.mxu2 %vm292_vm1, %v5900_v31  ;;  %v7641_v48 = vpop.f32.mrf.mxu1  ;;  %v5967_v45 = vld [vmem:[%s6514_s8 + $0x111] sm:$0xff] }
 0x224   : > { %2886 = vst.msk [vmem:[#allocation2 + $0x19] sm:$0xff] %vm292_vm1, %v2798_v2  ;;  %6000 = vmatmul.msk.f32.gmra.mxu3 %vm292_vm1, %v5966_v18 }
 0x225   : > { %v2669_v57 = vmul.f32 %v7582_v56, %v2635_v62 }
 0x226   : > { %v1988_v52 = vpop.f32.mrf.mxu2 }
 0x227   : > { %v2703_v54 = vadd.f32 %v7592_v11, %v2669_v57  ;;  %v2080_v19 = vadd.f32 %v1988_v52, %v7162_v58  ;;  %v2266_v8 = vpop.f32.mrf.mxu3  ;;  %v2547_v22 = vpop.f32.mrf.mxu0 }
 0x229   : > { %vm2735_vm4 = vcmp.ge.f32.partialorder %v2703_v54, 0.0  ;;  %v2767_v31 = vmul.f32 0.2, %v2703_v54  ;;  %v2358_v18 = vadd.f32 %v2266_v8, %v2080_v19  ;;  %v5968_v8 = vld [vmem:[%s6514_s8 + $0x121] sm:$0xff] }
 0x22a   : > { %6067 = vmatmul.msk.f32.gmra.mxu0 %vm292_vm1, %v7182_v30 }
 0x22b   : > { %v2799_v58 = vsel %vm2735_vm4, %v2703_v54, %v2767_v31  ;;  %v2636_v47 = vadd.f32 %v2544_v61, %v2358_v18  ;;  %5935 = vmatmul.msk.f32.gmra.mxu2 %vm292_vm1, %v5901_v16  ;;  %v2953_v49 = vld [vmem:[#allocation2 + $0x19] sm:$0xff]  ;;  %v7661_v16 = vpop.f32.mrf.mxu1 }
 0x22c   : > { %2887 = vst.msk [vmem:[#allocation2 + $0x21] sm:$0xff] %vm292_vm1, %v2799_v58  ;;  %6001 = vmatmul.msk.f32.gmra.mxu3 %vm292_vm1, %v5967_v45  ;;  %6084 = vmatmul.msk.f32.gmra.mxu1 %vm292_vm1, %v2953_v49  ;;  %v5902_v54 = vld [vmem:[%s6514_s8 + $0x120] sm:$0xff] }
 0x22d   : > { %v2670_v2 = vmul.f32 %v7582_v56, %v2636_v47 }
 0x22e   : > { %v1991_v62 = vpop.f32.mrf.mxu2 }
 0x22f   : > { %v2704_v57 = vadd.f32 %v7592_v11, %v2670_v2  ;;  %v2081_v55 = vadd.f32 %v1991_v62, %v7177_v13  ;;  %v2269_v61 = vpop.f32.mrf.mxu3  ;;  %v2550_v52 = vpop.f32.mrf.mxu0  ;;  %v5903_v62 = vld [vmem:[%s6514_s8 + $0x128] sm:$0xff] }
 0x231   : > { %vm2736_vm5 = vcmp.ge.f32.partialorder %v2704_v57, 0.0  ;;  %v2768_v19 = vmul.f32 0.2, %v2704_v57  ;;  %v2359_v30 = vadd.f32 %v2269_v61, %v2081_v55  ;;  %v5969_v61 = vld [vmem:[%s6514_s8 + $0x129] sm:$0xff] }
 0x232   : > { %6068 = vmatmul.msk.f32.gmra.mxu0 %vm292_vm1, %v7197_v34 }
 0x233   : > { %v2800_v31 = vsel %vm2736_vm5, %v2704_v57, %v2768_v19  ;;  %v2637_v18 = vadd.f32 %v2547_v22, %v2359_v30  ;;  %5936 = vmatmul.msk.f32.gmra.mxu2 %vm292_vm1, %v5902_v54  ;;  %v2954_v13 = vld [vmem:[#allocation2 + $0x21] sm:$0xff]  ;;  %v6035_v57 = vld [vmem:[%s6514_s8 + $0x12a] sm:$0xff] }
 0x234   : > { %2888 = vst.msk [vmem:[#allocation2 + $0x31] sm:$0xff] %vm292_vm1, %v2800_v31  ;;  %6002 = vmatmul.msk.f32.gmra.mxu3 %vm292_vm1, %v5968_v8  ;;  %6085 = vmatmul.msk.f32.gmra.mxu1 %vm292_vm1, %v2954_v13 }
 0x235   : > { %v2671_v45 = vmul.f32 %v7582_v56, %v2637_v18 }
 0x236   : > { %v1994_v58 = vpop.f32.mrf.mxu2 }
 0x237   : > { %v2705_v47 = vadd.f32 %v7592_v11, %v2671_v45  ;;  %v2082_v22 = vadd.f32 %v1994_v58, %v7192_v20  ;;  %v2272_v49 = vpop.f32.mrf.mxu3  ;;  %v2553_v2 = vpop.f32.mrf.mxu0  ;;  %v5904_v58 = vld [vmem:[%s6514_s8 + $0x138] sm:$0xff] }
 0x238   : > { %v7680_v20 = vpop.f32.mrf.mxu1 }
 0x239   : > { %vm2737_vm6 = vcmp.ge.f32.partialorder %v2705_v47, 0.0  ;;  %v2769_v34 = vmul.f32 0.2, %v2705_v47  ;;  %v2360_v55 = vadd.f32 %v2272_v49, %v2082_v22 }
 0x23a   : > { %6069 = vmatmul.msk.f32.gmra.mxu0 %vm292_vm1, %v6035_v57 }
 0x23b   : > { %v2801_v54 = vsel %vm2737_vm6, %v2705_v47, %v2769_v34  ;;  %v2638_v19 = vadd.f32 %v2550_v52, %v2360_v55  ;;  %5937 = vmatmul.msk.f32.gmra.mxu2 %vm292_vm1, %v5903_v62  ;;  %v2955_v30 = vld [vmem:[#allocation2 + $0x31] sm:$0xff]  ;;  %v6036_v47 = vld [vmem:[%s6514_s8 + $0x13a] sm:$0xff] }
 0x23c   : > { %2889 = vst.msk [vmem:[#allocation2 + $0x39] sm:$0xff] %vm292_vm1, %v2801_v54  ;;  %6003 = vmatmul.msk.f32.gmra.mxu3 %vm292_vm1, %v5969_v61  ;;  %6086 = vmatmul.msk.f32.gmra.mxu1 %vm292_vm1, %v2955_v30  ;;  %v5970_v62 = vld [vmem:[%s6514_s8 + $0x139] sm:$0xff] }
 0x23d   : > { %v2672_v8 = vmul.f32 %v7582_v56, %v2638_v19 }
 0x23e   : > { %v1997_v31 = vpop.f32.mrf.mxu2 }
 0x23f   : > { %v2706_v18 = vadd.f32 %v7592_v11, %v2672_v8  ;;  %v2083_v52 = vadd.f32 %v1997_v31, %v7207_v24  ;;  %v2275_v13 = vpop.f32.mrf.mxu3  ;;  %v2556_v45 = vpop.f32.mrf.mxu0  ;;  %v5905_v31 = vld [vmem:[%s6514_s8 + $0x140] sm:$0xff] }
 0x240   : > { %v7694_v54 = vpop.f32.mrf.mxu1 }
 0x241   : > { %vm2738_vm7 = vcmp.ge.f32.partialorder %v2706_v18, 0.0  ;;  %v2770_v22 = vmul.f32 0.2, %v2706_v18  ;;  %v2361_v49 = vadd.f32 %v2275_v13, %v2083_v52 }
 0x242   : > { %6070 = vmatmul.msk.f32.gmra.mxu0 %vm292_vm1, %v6036_v47 }
 0x243   : > { %v2802_v57 = vsel %vm2738_vm7, %v2706_v18, %v2770_v22  ;;  %v2639_v34 = vadd.f32 %v2553_v2, %v2361_v49  ;;  %5938 = vmatmul.msk.f32.gmra.mxu2 %vm292_vm1, %v5904_v58  ;;  %v2956_v55 = vld [vmem:[#allocation2 + $0x39] sm:$0xff]  ;;  %v6037_v18 = vld [vmem:[%s6514_s8 + $0x142] sm:$0xff] }
 0x244   : > { %2890 = vst.msk [vmem:[#allocation2 + $0x49] sm:$0xff] %vm292_vm1, %v2802_v57  ;;  %6004 = vmatmul.msk.f32.gmra.mxu3 %vm292_vm1, %v5970_v62  ;;  %6087 = vmatmul.msk.f32.gmra.mxu1 %vm292_vm1, %v2956_v55  ;;  %v5971_v58 = vld [vmem:[%s6514_s8 + $0x141] sm:$0xff] }
 0x245   : > { %v2673_v24 = vmul.f32 %v7582_v56, %v2639_v34 }
 0x246   : > { %v2000_v61 = vpop.f32.mrf.mxu2 }
 0x247   : > { %v2707_v19 = vadd.f32 %v7592_v11, %v2673_v24  ;;  %v2084_v2 = vadd.f32 %v2000_v61, %v7220_v28  ;;  %v2278_v30 = vpop.f32.mrf.mxu3  ;;  %v2559_v8 = vpop.f32.mrf.mxu0  ;;  %v5906_v24 = vld [vmem:[%s6514_s8 + $0x150] sm:$0xff] }
 0x248   : > { %v6038_v61 = vld [vmem:[%s6514_s8 + $0x152] sm:$0xff] }
 0x249   : > { %vm2739_vm8 = vcmp.ge.f32.partialorder %v2707_v19, 0.0  ;;  %v2771_v52 = vmul.f32 0.2, %v2707_v19  ;;  %v2362_v13 = vadd.f32 %v2278_v30, %v2084_v2 }
 0x24a   : > { %6071 = vmatmul.msk.f32.gmra.mxu0 %vm292_vm1, %v6037_v18 }
 0x24b   : > { %v2803_v47 = vsel %vm2739_vm8, %v2707_v19, %v2771_v52  ;;  %v2640_v22 = vadd.f32 %v2556_v45, %v2362_v13  ;;  %5939 = vmatmul.msk.f32.gmra.mxu2 %vm292_vm1, %v5905_v31  ;;  %v2957_v49 = vld [vmem:[#allocation2 + $0x49] sm:$0xff]  ;;  %v7711_v19 = vpop.f32.mrf.mxu1  ;;  %v5972_v31 = vld [vmem:[%s6514_s8 + $0x151] sm:$0xff] }
 0x24c   : > { %2891 = vst.msk [vmem:[#allocation2 + $0x51] sm:$0xff] %vm292_vm1, %v2803_v47  ;;  %6005 = vmatmul.msk.f32.gmra.mxu3 %vm292_vm1, %v5971_v58  ;;  %6088 = vmatmul.msk.f32.gmra.mxu1 %vm292_vm1, %v2957_v49 }
 0x24d   : > { %v2674_v28 = vmul.f32 %v7582_v56, %v2640_v22 }
 0x24e   : > { %v2003_v62 = vpop.f32.mrf.mxu2 }
 0x24f   : > { %v2708_v57 = vadd.f32 %v7592_v11, %v2674_v28  ;;  %v2085_v34 = vadd.f32 %v2003_v62, %v7232_v25  ;;  %v2281_v45 = vpop.f32.mrf.mxu3  ;;  %v2562_v55 = vpop.f32.mrf.mxu0  ;;  %v1807_v25 = vadd.f32 %v7338_v23, %v7239_v46  ;;  %v5907_v62 = vld [vmem:[%s6514_s8 + $0x158] sm:$0xff] }
 0x251   : > { %vm2740_vm9 = vcmp.ge.f32.partialorder %v2708_v57, 0.0  ;;  %v2772_v2 = vmul.f32 0.2, %v2708_v57  ;;  %v2363_v30 = vadd.f32 %v2281_v45, %v2085_v34 }
 0x252   : > { %6072 = vmatmul.msk.f32.gmra.mxu0 %vm292_vm1, %v6038_v61 }
 0x253   : > { %v2804_v18 = vsel %vm2740_vm9, %v2708_v57, %v2772_v2  ;;  %v2641_v52 = vadd.f32 %v2559_v8, %v2363_v30  ;;  %5940 = vmatmul.msk.f32.gmra.mxu2 %vm292_vm1, %v5906_v24  ;;  %v2958_v13 = vld [vmem:[#allocation2 + $0x51] sm:$0xff]  ;;  %v6039_v57 = vld [vmem:[%s6514_s8 + $0x15a] sm:$0xff]  ;;  %v7726_v61 = vpop.f32.mrf.mxu1  ;;  %v1808_v30 = vadd.f32 %v7351_v44, %v7250_v50  ;;  %v1809_v44 = vadd.f32 %v7363_v32, %v7261_v7 }
 0x254   : > { %2892 = vst.msk [vmem:[#allocation2 + $0x61] sm:$0xff] %vm292_vm1, %v2804_v18  ;;  %6006 = vmatmul.msk.f32.gmra.mxu3 %vm292_vm1, %v5972_v31  ;;  %6089 = vmatmul.msk.f32.gmra.mxu1 %vm292_vm1, %v2958_v13  ;;  %v5973_v24 = vld [vmem:[%s6514_s8 + $0x159] sm:$0xff]  ;;  %v1810_v32 = vadd.f32 %v7380_v51, %v7272_v6 }
 0x255   : > { %v2675_v58 = vmul.f32 %v7582_v56, %v2641_v52 }
 0x256   : > { %v2006_v47 = vpop.f32.mrf.mxu2 }
 0x257   : > { %v2709_v8 = vadd.f32 %v7592_v11, %v2675_v58  ;;  %v2086_v22 = vadd.f32 %v2006_v47, %v1807_v25  ;;  %v2284_v49 = vpop.f32.mrf.mxu3  ;;  %v2565_v28 = vpop.f32.mrf.mxu0  ;;  %v5908_v58 = vld [vmem:[%s6514_s8 + $0x168] sm:$0xff] }
 0x258   : > { %v6040_v47 = vld [vmem:[%s6514_s8 + $0x16a] sm:$0xff] }
 0x259   : > { %vm2741_vm10 = vcmp.ge.f32.partialorder %v2709_v8, 0.0  ;;  %v2773_v34 = vmul.f32 0.2, %v2709_v8  ;;  %v2364_v45 = vadd.f32 %v2284_v49, %v2086_v22  ;;  %v5974_v49 = vld [vmem:[%s6514_s8 + $0x169] sm:$0xff] }
 0x25a   : > { %6073 = vmatmul.msk.f32.gmra.mxu0 %vm292_vm1, %v6039_v57 }
 0x25b   : > { %v2805_v2 = vsel %vm2741_vm10, %v2709_v8, %v2773_v34  ;;  %v2642_v46 = vadd.f32 %v2562_v55, %v2364_v45  ;;  %5941 = vmatmul.msk.f32.gmra.mxu2 %vm292_vm1, %v5907_v62  ;;  %v2959_v23 = vld [vmem:[#allocation2 + $0x61] sm:$0xff]  ;;  %v7747_v34 = vpop.f32.mrf.mxu1 }
 0x25c   : > { %2893 = vst.msk [vmem:[#allocation2 + $0x69] sm:$0xff] %vm292_vm1, %v2805_v2  ;;  %6007 = vmatmul.msk.f32.gmra.mxu3 %vm292_vm1, %v5973_v24  ;;  %6090 = vmatmul.msk.f32.gmra.mxu1 %vm292_vm1, %v2959_v23 }
 0x25d   : > { %v2676_v31 = vmul.f32 %v7582_v56, %v2642_v46 }
 0x25e   : > { %v2009_v18 = vpop.f32.mrf.mxu2 }
 0x25f   : > { %v2710_v55 = vadd.f32 %v7592_v11, %v2676_v31  ;;  %v2087_v52 = vadd.f32 %v2009_v18, %v1808_v30  ;;  %v2287_v13 = vpop.f32.mrf.mxu3  ;;  %v2568_v25 = vpop.f32.mrf.mxu0  ;;  %v5909_v30 = vld [vmem:[%s6514_s8 + $0x170] sm:$0xff] }
 0x260   : > { %v6041_v31 = vld [vmem:[%s6514_s8 + $0x172] sm:$0xff] }
 0x261   : > { %vm2742_vm11 = vcmp.ge.f32.partialorder %v2710_v55, 0.0  ;;  %v2774_v8 = vmul.f32 0.2, %v2710_v55  ;;  %v2365_v22 = vadd.f32 %v2287_v13, %v2087_v52  ;;  %v5975_v52 = vld [vmem:[%s6514_s8 + $0x171] sm:$0xff] }
 0x262   : > { %6074 = vmatmul.msk.f32.gmra.mxu0 %vm292_vm1, %v6040_v47 }
 0x263   : > { %v2806_v62 = vsel %vm2742_vm11, %v2710_v55, %v2774_v8  ;;  %v2643_v57 = vadd.f32 %v2565_v28, %v2365_v22  ;;  %5942 = vmatmul.msk.f32.gmra.mxu2 %vm292_vm1, %v5908_v58  ;;  %v2960_v50 = vld [vmem:[#allocation2 + $0x69] sm:$0xff] }
 0x264   : > { %2894 = vst.msk [vmem:[#allocation2 + $0x79] sm:$0xff] %vm292_vm1, %v2806_v62  ;;  %6008 = vmatmul.msk.f32.gmra.mxu3 %vm292_vm1, %v5974_v49  ;;  %6091 = vmatmul.msk.f32.gmra.mxu1 %vm292_vm1, %v2960_v50  ;;  %v5910_v50 = vld [vmem:[%s6514_s8 + $0x180] sm:$0xff] }
 0x265   : > { %v2677_v28 = vmul.f32 %v7582_v56, %v2643_v57 }
 0x266   : > { %v2012_v45 = vpop.f32.mrf.mxu2 }
 0x267   : > { %v2711_v24 = vadd.f32 %v7592_v11, %v2677_v28  ;;  %v2088_v2 = vadd.f32 %v2012_v45, %v1809_v44  ;;  %v2290_v46 = vpop.f32.mrf.mxu3  ;;  %v2571_v23 = vpop.f32.mrf.mxu0  ;;  %v6042_v44 = vld [vmem:[%s6514_s8 + $0x182] sm:$0xff] }
 0x269   : > { %vm2743_vm12 = vcmp.ge.f32.partialorder %v2711_v24, 0.0  ;;  %v2775_v18 = vmul.f32 0.2, %v2711_v24  ;;  %v2366_v55 = vadd.f32 %v2290_v46, %v2088_v2  ;;  %v1811_v46 = vadd.f32 %v7391_v39, %v7283_v17 }
 0x26a   : > { %6075 = vmatmul.msk.f32.gmra.mxu0 %vm292_vm1, %v6041_v31 }
 0x26b   : > { %v2807_v13 = vsel %vm2743_vm12, %v2711_v24, %v2775_v18  ;;  %v2644_v58 = vadd.f32 %v2568_v25, %v2366_v55  ;;  %5943 = vmatmul.msk.f32.gmra.mxu2 %vm292_vm1, %v5909_v30  ;;  %v2961_v7 = vld [vmem:[#allocation2 + $0x79] sm:$0xff]  ;;  %v7762_v25 = vpop.f32.mrf.mxu1  ;;  %v5976_v24 = vld [vmem:[%s6514_s8 + $0x181] sm:$0xff] }
 0x26c   : > { %2895 = vst.msk [vmem:[#allocation2 + $0x81] sm:$0xff] %vm292_vm1, %v2807_v13  ;;  %6009 = vmatmul.msk.f32.gmra.mxu3 %vm292_vm1, %v5975_v52  ;;  %6092 = vmatmul.msk.f32.gmra.mxu1 %vm292_vm1, %v2961_v7  ;;  %v5911_v13 = vld [vmem:[%s6514_s8 + $0x188] sm:$0xff] }
 0x26d   : > { %v2678_v47 = vmul.f32 %v7582_v56, %v2644_v58  ;;  %v6043_v58 = vld [vmem:[%s6514_s8 + $0x18a] sm:$0xff] }
 0x26e   : > { %v2015_v8 = vpop.f32.mrf.mxu2 }
 0x26f   : > { %v2712_v22 = vadd.f32 %v7592_v11, %v2678_v47  ;;  %v2089_v49 = vadd.f32 %v2015_v8, %v1810_v32  ;;  %v2293_v62 = vpop.f32.mrf.mxu3  ;;  %v2574_v57 = vpop.f32.mrf.mxu0  ;;  %v5977_v8 = vld [vmem:[%s6514_s8 + $0x189] sm:$0xff] }
 0x271   : > { %vm2744_vm13 = vcmp.ge.f32.partialorder %v2712_v22, 0.0  ;;  %v2776_v28 = vmul.f32 0.2, %v2712_v22  ;;  %v2367_v45 = vadd.f32 %v2293_v62, %v2089_v49  ;;  %v1812_v49 = vadd.f32 %v7404_v29, %v7295_v9 }
 0x272   : > { %6076 = vmatmul.msk.f32.gmra.mxu0 %vm292_vm1, %v6042_v44 }
 0x273   : > { %v2808_v2 = vsel %vm2744_vm13, %v2712_v22, %v2776_v28  ;;  %v2645_v6 = vadd.f32 %v2571_v23, %v2367_v45  ;;  %5944 = vmatmul.msk.f32.gmra.mxu2 %vm292_vm1, %v5910_v50  ;;  %v2962_v51 = vld [vmem:[#allocation2 + $0x81] sm:$0xff]  ;;  %v7779_v7 = vpop.f32.mrf.mxu1 }
 0x274   : > { %2896 = vst.msk [vmem:[#allocation2 + $0x91] sm:$0xff] %vm292_vm1, %v2808_v2  ;;  %6010 = vmatmul.msk.f32.gmra.mxu3 %vm292_vm1, %v5976_v24  ;;  %6093 = vmatmul.msk.f32.gmra.mxu1 %vm292_vm1, %v2962_v51  ;;  %v5912_v24 = vld [vmem:[%s6514_s8 + $0x198] sm:$0xff] }
 0x275   : > { %v2679_v30 = vmul.f32 %v7582_v56, %v2645_v6  ;;  %v6044_v2 = vld [vmem:[%s6514_s8 + $0x19a] sm:$0xff] }
 0x276   : > { %v2018_v31 = vpop.f32.mrf.mxu2 }
 0x277   : > { %v2713_v23 = vadd.f32 %v7592_v11, %v2679_v30  ;;  %v2090_v18 = vadd.f32 %v2018_v31, %v1811_v46  ;;  %v2296_v55 = vpop.f32.mrf.mxu3  ;;  %v2577_v52 = vpop.f32.mrf.mxu0  ;;  %v5978_v46 = vld [vmem:[%s6514_s8 + $0x199] sm:$0xff] }
 0x279   : > { %vm2745_vm14 = vcmp.ge.f32.partialorder %v2713_v23, 0.0  ;;  %v2777_v32 = vmul.f32 0.2, %v2713_v23  ;;  %v2368_v47 = vadd.f32 %v2296_v55, %v2090_v18 }
 0x27a   : > { %6077 = vmatmul.msk.f32.gmra.mxu0 %vm292_vm1, %v6043_v58 }
 0x27b   : > { %v2809_v22 = vsel %vm2745_vm14, %v2713_v23, %v2777_v32  ;;  %v2646_v17 = vadd.f32 %v2574_v57, %v2368_v47  ;;  %5945 = vmatmul.msk.f32.gmra.mxu2 %vm292_vm1, %v5911_v13  ;;  %v2963_v39 = vld [vmem:[#allocation2 + $0x91] sm:$0xff]  ;;  %v7794_v30 = vpop.f32.mrf.mxu1  ;;  %v1813_v23 = vadd.f32 %v7416_v38, %v7306_v10  ;;  %v5913_v47 = vld [vmem:[%s6514_s8 + $0x1a0] sm:$0xff]  ;;  %v1814_v38 = vadd.f32 %v7433_v15, %v7317_v27 }
 0x27c   : > { %2897 = vst.msk [vmem:[#allocation2 + $0x99] sm:$0xff] %vm292_vm1, %v2809_v22  ;;  %6011 = vmatmul.msk.f32.gmra.mxu3 %vm292_vm1, %v5977_v8  ;;  %6094 = vmatmul.msk.f32.gmra.mxu1 %vm292_vm1, %v2963_v39  ;;  %v6045_v8 = vld [vmem:[%s6514_s8 + $0x1a2] sm:$0xff]  ;;  %v1815_v15 = vadd.f32 %v7456_v60, %v7326_v43  ;;  %v1816_v60 = vadd.f32 %v7490_v5, %v7335_v36 }
 0x27d   : > { %v2680_v62 = vmul.f32 %v7582_v56, %v2646_v17  ;;  %v5979_v39 = vld [vmem:[%s6514_s8 + $0x1a1] sm:$0xff]  ;;  %v1817_v5 = vadd.f32 %v7530_v21, %v7346_v12  ;;  %v1818_v21 = vadd.f32 %v7567_v0, %v7357_v59  ;;  %v1819_v0 = vadd.f32 %v7607_v53, %v7368_v1 }
 0x27e   : > { %v2021_v50 = vpop.f32.mrf.mxu2  ;;  %v1820_v53 = vadd.f32 %v7641_v48, %v7377_v35  ;;  %v7894_v35 = vld [vmem:[#allocation2 + $0x4a] sm:$0xff] }
 0x27f   : > { %v2714_v57 = vadd.f32 %v7592_v11, %v2680_v62  ;;  %v2091_v44 = vadd.f32 %v2021_v50, %v1812_v49  ;;  %v2299_v28 = vpop.f32.mrf.mxu3  ;;  %v2580_v45 = vpop.f32.mrf.mxu0 }
 0x281   : > { %vm2746_vm15 = vcmp.ge.f32.partialorder %v2714_v57, 0.0  ;;  %v2778_v6 = vmul.f32 0.2, %v2714_v57  ;;  %v2369_v51 = vadd.f32 %v2299_v28, %v2091_v44 }
 0x282   : > { %6078 = vmatmul.msk.f32.gmra.mxu0 %vm292_vm1, %v6044_v2 }
 0x283   : > { %v2810_v31 = vsel %vm2746_vm15, %v2714_v57, %v2778_v6  ;;  %v2647_v9 = vadd.f32 %v2577_v52, %v2369_v51  ;;  %5946 = vmatmul.msk.f32.gmra.mxu2 %vm292_vm1, %v5912_v24  ;;  %v2964_v29 = vld [vmem:[#allocation2 + $0x99] sm:$0xff]  ;;  %v7815_v50 = vpop.f32.mrf.mxu1 }
 0x284   : > { %2898 = vst.msk [vmem:[#allocation2 + $0xa9] sm:$0xff] %vm292_vm1, %v2810_v31  ;;  %6012 = vmatmul.msk.f32.gmra.mxu3 %vm292_vm1, %v5978_v46  ;;  %6095 = vmatmul.msk.f32.gmra.mxu1 %vm292_vm1, %v2964_v29  ;;  %v2918_v6 = vld [vmem:[#allocation2] sm:$0xff] }
 0x285   : > { %v2681_v18 = vmul.f32 %v7582_v56, %v2647_v9  ;;  %v3409_v31 = vld [vmem:[#allocation2 + $0x2] sm:$0xff]  ;;  %v3687_v9 = vld [vmem:[#allocation2 + $0x18] sm:$0xff] }
 0x286   : > { %v2024_v55 = vpop.f32.mrf.mxu2 }
 0x287   : > { %v2715_v52 = vadd.f32 %v7592_v11, %v2681_v18  ;;  %v2092_v13 = vadd.f32 %v2024_v55, %v1813_v23  ;;  %v2302_v58 = vpop.f32.mrf.mxu3  ;;  %v2583_v32 = vpop.f32.mrf.mxu0 }
 0x289   : > { %vm2747_vm2 = vcmp.ge.f32.partialorder %v2715_v52, 0.0  ;;  %v2779_v22 = vmul.f32 0.2, %v2715_v52  ;;  %v2370_v17 = vadd.f32 %v2302_v58, %v2092_v13 }
 0x28a   : > { %6079 = vmatmul.msk.f32.gmra.mxu0 %vm292_vm1, %v6045_v8  ;;  %v2919_v8 = vld [vmem:[#allocation2 + $0x8] sm:$0xff] }
 0x28b   : > { %v2811_v49 = vsel %vm2747_vm2, %v2715_v52, %v2779_v22  ;;  %v2648_v62 = vadd.f32 %v2580_v45, %v2370_v17  ;;  %5947 = vmatmul.msk.f32.gmra.mxu2 %vm292_vm1, %v5913_v47  ;;  %v2965_v10 = vld [vmem:[#allocation2 + $0xa9] sm:$0xff]  ;;  %v7827_v55 = vpop.f32.mrf.mxu1 }
 0x28c   : > { %2899 = vst.msk [vmem:[#allocation2 + $0xb1] sm:$0xff] %vm292_vm1, %v2811_v49  ;;  %6013 = vmatmul.msk.f32.gmra.mxu3 %vm292_vm1, %v5979_v39  ;;  %6096 = vmatmul.msk.f32.gmra.mxu1 %vm292_vm1, %v2965_v10  ;;  %v3410_v39 = vld [vmem:[#allocation2 + $0xa] sm:$0xff]  ;;  %v3688_v49 = vld [vmem:[#allocation2 + $0x20] sm:$0xff] }
 0x28d   : > { %v2682_v57 = vmul.f32 %v7582_v56, %v2648_v62 }
 0x28e   : > { %v2027_v44 = vpop.f32.mrf.mxu2 }
 0x28f   : > { %v2716_v28 = vadd.f32 %v7592_v11, %v2682_v57  ;;  %v2093_v45 = vadd.f32 %v2027_v44, %v1814_v38  ;;  %v2305_v24 = vpop.f32.mrf.mxu3  ;;  %v2586_v2 = vpop.f32.mrf.mxu0 }
 0x291   : > { %vm2748_vm3 = vcmp.ge.f32.partialorder %v2716_v28, 0.0  ;;  %v2780_v51 = vmul.f32 0.2, %v2716_v28  ;;  %v2371_v46 = vadd.f32 %v2305_v24, %v2093_v45 }
 0x292   : > { %6183 = vmatmul.msk.f32.vlgmr.msrb.gmra.mxu0 %vm292_vm1, %v3687_v9 }
 0x293   : > { %v2812_v29 = vsel %vm2748_vm3, %v2716_v28, %v2780_v51  ;;  %v2649_v23 = vadd.f32 %v2583_v32, %v2371_v46  ;;  %6115 = vmatmul.msk.f32.vlgmr.msrb.gmra.mxu2 %vm292_vm1, %v2918_v6  ;;  %v2966_v27 = vld [vmem:[#allocation2 + $0xb1] sm:$0xff] }
 0x294   : > { %2900 = vst.msk [vmem:[#allocation2 + $0xc1] sm:$0xff] %vm292_vm1, %v2812_v29  ;;  %6149 = vmatmul.msk.f32.vlgmr.msrb.gmra.mxu3 %vm292_vm1, %v3409_v31  ;;  %6097 = vmatmul.msk.f32.gmra.mxu1 %vm292_vm1, %v2966_v27  ;;  %v3689_v46 = vld [vmem:[#allocation2 + $0x30] sm:$0xff] }
 0x295   : > { %v2683_v18 = vmul.f32 %v7582_v56, %v2649_v23  ;;  %v3411_v23 = vld [vmem:[#allocation2 + $0x1a] sm:$0xff] }
 0x296   : > { %v2030_v52 = vpop.f32.mrf.mxu2 }
 0x297   : > { %v2717_v13 = vadd.f32 %v7592_v11, %v2683_v18  ;;  %v2094_v58 = vadd.f32 %v2030_v52, %v1815_v15  ;;  %v2308_v32 = vpop.f32.mrf.mxu3  ;;  %v2589_v47 = vpop.f32.mrf.mxu0 }
 0x299   : > { %vm2749_vm4 = vcmp.ge.f32.partialorder %v2717_v13, 0.0  ;;  %v2781_v22 = vmul.f32 0.2, %v2717_v13  ;;  %v2372_v17 = vadd.f32 %v2308_v32, %v2094_v58  ;;  %v7839_v24 = vpop.f32.mrf.mxu1 }
 0x29a   : > { %6184 = vmatmul.msk.f32.gmra.mxu0 %vm292_vm1, %v3688_v49 }
 0x29b   : > { %v2813_v62 = vsel %vm2749_vm4, %v2717_v13, %v2781_v22  ;;  %v2650_v10 = vadd.f32 %v2586_v2, %v2372_v17  ;;  %6116 = vmatmul.msk.f32.gmra.mxu2 %vm292_vm1, %v2919_v8  ;;  %v2967_v43 = vld [vmem:[#allocation2 + $0xc1] sm:$0xff]  ;;  %v3690_v8 = vld [vmem:[#allocation2 + $0x38] sm:$0xff] }
 0x29c   : > { %2901 = vst.msk [vmem:[#allocation2 + $0xc9] sm:$0xff] %vm292_vm1, %v2813_v62  ;;  %6150 = vmatmul.msk.f32.gmra.mxu3 %vm292_vm1, %v3410_v39  ;;  %6098 = vmatmul.msk.f32.gmra.mxu1 %vm292_vm1, %v2967_v43  ;;  %v3412_v39 = vld [vmem:[#allocation2 + $0x22] sm:$0xff] }
 0x29d   : > { %v2684_v38 = vmul.f32 %v7582_v56, %v2650_v10 }
 0x29e   : > { %v2033_v57 = vpop.f32.mrf.mxu2 }
 0x29f   : > { %v2718_v44 = vadd.f32 %v7592_v11, %v2684_v38  ;;  %v2095_v28 = vadd.f32 %v2033_v57, %v1816_v60  ;;  %v2311_v45 = vpop.f32.mrf.mxu3  ;;  %v2592_v2 = vpop.f32.mrf.mxu0 }
 0x2a1   : > { %vm2750_vm5 = vcmp.ge.f32.partialorder %v2718_v44, 0.0  ;;  %v2782_v6 = vmul.f32 0.2, %v2718_v44  ;;  %v2373_v51 = vadd.f32 %v2311_v45, %v2095_v28  ;;  %v3691_v45 = vld [vmem:[#allocation2 + $0x48] sm:$0xff] }
 0x2a2   : > { %6185 = vmatmul.msk.f32.gmra.mxu0 %vm292_vm1, %v3689_v46 }
 0x2a3   : > { %v2814_v31 = vsel %vm2750_vm5, %v2718_v44, %v2782_v6  ;;  %v2651_v29 = vadd.f32 %v2589_v47, %v2373_v51  ;;  %6117 = vmatmul.msk.f32.gmra.mxu2 %vm292_vm1, %v3687_v9  ;;  %v2968_v36 = vld [vmem:[#allocation2 + $0xc9] sm:$0xff]  ;;  %v3413_v51 = vld [vmem:[#allocation2 + $0x32] sm:$0xff] }
 0x2a4   : > { %2902 = vst.msk [vmem:[#allocation2 + $0xd9] sm:$0xff] %vm292_vm1, %v2814_v31  ;;  %6151 = vmatmul.msk.f32.gmra.mxu3 %vm292_vm1, %v3411_v23  ;;  %6099 = vmatmul.msk.f32.gmra.mxu1 %vm292_vm1, %v2968_v36 }
 0x2a5   : > { %v2685_v27 = vmul.f32 %v7582_v56, %v2651_v29 }
 0x2a6   : > { %v2036_v15 = vpop.f32.mrf.mxu2 }
 0x2a7   : > { %v2719_v18 = vadd.f32 %v7592_v11, %v2685_v27  ;;  %v2096_v52 = vadd.f32 %v2036_v15, %v1817_v5  ;;  %v2314_v9 = vpop.f32.mrf.mxu3  ;;  %v2595_v13 = vpop.f32.mrf.mxu0 }
 0x2a9   : > { %vm2751_vm6 = vcmp.ge.f32.partialorder %v2719_v18, 0.0  ;;  %v2783_v58 = vmul.f32 0.2, %v2719_v18  ;;  %v2374_v32 = vadd.f32 %v2314_v9, %v2096_v52  ;;  %v7850_v47 = vpop.f32.mrf.mxu1  ;;  %v3692_v52 = vld [vmem:[#allocation2 + $0x50] sm:$0xff] }
 0x2aa   : > { %6186 = vmatmul.msk.f32.gmra.mxu0 %vm292_vm1, %v3690_v8 }
 0x2ab   : > { %v2815_v22 = vsel %vm2751_vm6, %v2719_v18, %v2783_v58  ;;  %v2652_v17 = vadd.f32 %v2592_v2, %v2374_v32  ;;  %6118 = vmatmul.msk.f32.gmra.mxu2 %vm292_vm1, %v3688_v49  ;;  %v2969_v12 = vld [vmem:[#allocation2 + $0xd9] sm:$0xff] }
 0x2ac   : > { %2903 = vst.msk [vmem:[#allocation2 + $0xe1] sm:$0xff] %vm292_vm1, %v2815_v22  ;;  %6152 = vmatmul.msk.f32.gmra.mxu3 %vm292_vm1, %v3412_v39  ;;  %6100 = vmatmul.msk.f32.gmra.mxu1 %vm292_vm1, %v2969_v12  ;;  %v7875_v58 = vld [vmem:[#allocation2 + $0x3a] sm:$0xff] }
 0x2ad   : > { %v2686_v62 = vmul.f32 %v7582_v56, %v2652_v17 }
 0x2ae   : > { %v2039_v10 = vpop.f32.mrf.mxu2 }
 0x2af   : > { %v2720_v43 = vadd.f32 %v7592_v11, %v2686_v62  ;;  %v2097_v60 = vadd.f32 %v2039_v10, %v1818_v21  ;;  %v2317_v49 = vpop.f32.mrf.mxu3  ;;  %v2598_v38 = vpop.f32.mrf.mxu0 }
 0x2b1   : > { %vm2752_vm7 = vcmp.ge.f32.partialorder %v2720_v43, 0.0  ;;  %v2784_v57 = vmul.f32 0.2, %v2720_v43  ;;  %v2375_v44 = vadd.f32 %v2317_v49, %v2097_v60  ;;  %v7861_v28 = vpop.f32.mrf.mxu1 }
 0x2b2   : > { %6187 = vmatmul.msk.f32.gmra.mxu0 %vm292_vm1, %v3691_v45 }
 0x2b3   : > { %v2816_v2 = vsel %vm2752_vm7, %v2720_v43, %v2784_v57  ;;  %v2653_v6 = vadd.f32 %v2595_v13, %v2375_v44  ;;  %6119 = vmatmul.msk.f32.gmra.mxu2 %vm292_vm1, %v3689_v46  ;;  %v2970_v59 = vld [vmem:[#allocation2 + $0xe1] sm:$0xff] }
 0x2b4   : > { %2904 = vst.msk [vmem:[#allocation2 + $0xf1] sm:$0xff] %vm292_vm1, %v2816_v2  ;;  %6153 = vmatmul.msk.f32.gmra.mxu3 %vm292_vm1, %v3413_v51  ;;  %6101 = vmatmul.msk.f32.gmra.mxu1 %vm292_vm1, %v2970_v59  ;;  %v7891_v43 = vld [vmem:[#allocation2 + $0x60] sm:$0xff] }
 0x2b5   : > { %v2687_v31 = vmul.f32 %v7582_v56, %v2653_v6 }
 0x2b6   : > { %v2042_v29 = vpop.f32.mrf.mxu2 }
 0x2b7   : > { %v2721_v23 = vadd.f32 %v7592_v11, %v2687_v31  ;;  %v2098_v36 = vadd.f32 %v2042_v29, %v1819_v0  ;;  %v2320_v46 = vpop.f32.mrf.mxu3  ;;  %v2601_v5 = vpop.f32.mrf.mxu0  ;;  %v7911_v29 = vld [vmem:[#allocation2 + $0x68] sm:$0xff] }
 0x2b9   : > { %vm2753_vm8 = vcmp.ge.f32.partialorder %v2721_v23, 0.0  ;;  %v2785_v27 = vmul.f32 0.2, %v2721_v23  ;;  %v2376_v15 = vadd.f32 %v2320_v46, %v2098_v36  ;;  %v7872_v18 = vpop.f32.mrf.mxu1  ;;  %v1822_v46 = vadd.f32 %v7680_v20, %v7399_v42  ;;  %v7935_v42 = vld [vmem:[#allocation2 + $0x62] sm:$0xff] }
 0x2ba   : > { %6188 = vmatmul.msk.f32.gmra.mxu0 %vm292_vm1, %v3692_v52  ;;  %v1823_v20 = vadd.f32 %v7694_v54, %v7410_v33 }
 0x2bb   : > { %v2817_v9 = vsel %vm2753_vm8, %v2721_v23, %v2785_v27  ;;  %v2654_v13 = vadd.f32 %v2598_v38, %v2376_v15  ;;  %6120 = vmatmul.msk.f32.gmra.mxu2 %vm292_vm1, %v3690_v8  ;;  %v7878_v1 = vld [vmem:[#allocation2 + $0xf1] sm:$0xff]  ;;  %v1821_v38 = vadd.f32 %v7661_v16, %v7388_v37 }
 0x2bc   : > { %2905 = vst.msk [vmem:[#allocation2 + $0xf9] sm:$0xff] %vm292_vm1, %v2817_v9  ;;  %6154 = vmatmul.msk.f32.gmra.mxu3 %vm292_vm1, %v7875_v58  ;;  %6102 = vmatmul.msk.f32.gmra.mxu1 %vm292_vm1, %v7878_v1  ;;  %v7914_v37 = vld [vmem:[#allocation2 + $0x52] sm:$0xff] }
 0x2bd   : > { %v2688_v32 = vmul.f32 %v7582_v56, %v2654_v13 }
 0x2be   : > { %v2045_v8 = vpop.f32.mrf.mxu2 }
 0x2bf   : > { %v2722_v22 = vadd.f32 %v7592_v11, %v2688_v32  ;;  %v2099_v17 = vadd.f32 %v2045_v8, %v1820_v53  ;;  %v2323_v39 = vpop.f32.mrf.mxu3  ;;  %v2604_v12 = vpop.f32.mrf.mxu0 }
 0x2c1   : > { %vm2754_vm9 = vcmp.ge.f32.partialorder %v2722_v22, 0.0  ;;  %v2786_v21 = vmul.f32 0.2, %v2722_v22  ;;  %v2377_v62 = vadd.f32 %v2323_v39, %v2099_v17  ;;  %v7889_v10 = vpop.f32.mrf.mxu1 }
 0x2c2   : > { %6189 = vmatmul.msk.f32.gmra.mxu0 %vm292_vm1, %v7891_v43 }
 0x2c3   : > { %v2818_v60 = vsel %vm2754_vm9, %v2722_v22, %v2786_v21  ;;  %v2655_v49 = vadd.f32 %v2601_v5, %v2377_v62  ;;  %6121 = vmatmul.msk.f32.gmra.mxu2 %vm292_vm1, %v3691_v45  ;;  %v7898_v48 = vld [vmem:[#allocation2 + $0xf9] sm:$0xff] }
 0x2c4   : > { %2906 = vst.msk [vmem:[#allocation2 + $0x109] sm:$0xff] %vm292_vm1, %v2818_v60  ;;  %6155 = vmatmul.msk.f32.gmra.mxu3 %vm292_vm1, %v7894_v35  ;;  %6103 = vmatmul.msk.f32.gmra.mxu1 %vm292_vm1, %v7898_v48  ;;  %v7931_v22 = vld [vmem:[#allocation2 + $0x78] sm:$0xff] }
 0x2c5   : > { %v2689_v57 = vmul.f32 %v7582_v56, %v2655_v49 }
 0x2c6   : > { %v2048_v44 = vpop.f32.mrf.mxu2 }
 0x2c7   : > { %v2723_v45 = vadd.f32 %v7592_v11, %v2689_v57  ;;  %v2100_v2 = vadd.f32 %v2048_v44, %v1821_v38  ;;  %v2326_v6 = vpop.f32.mrf.mxu3  ;;  %v2607_v51 = vpop.f32.mrf.mxu0 }
 0x2c9   : > { %vm2755_vm10 = vcmp.ge.f32.partialorder %v2723_v45, 0.0  ;;  %v2787_v59 = vmul.f32 0.2, %v2723_v45  ;;  %v2378_v0 = vadd.f32 %v2326_v6, %v2100_v2  ;;  %v7909_v31 = vpop.f32.mrf.mxu1  ;;  %v7957_v6 = vld [vmem:[#allocation2 + $0x80] sm:$0xff] }
 0x2ca   : > { %6190 = vmatmul.msk.f32.gmra.mxu0 %vm292_vm1, %v7911_v29 }
 0x2cb   : > { %v2819_v23 = vsel %vm2755_vm10, %v2723_v45, %v2787_v59  ;;  %v2656_v36 = vadd.f32 %v2604_v12, %v2378_v0  ;;  %6122 = vmatmul.msk.f32.gmra.mxu2 %vm292_vm1, %v3692_v52  ;;  %v7918_v16 = vld [vmem:[#allocation2 + $0x109] sm:$0xff]  ;;  %v7951_v12 = vld [vmem:[%s9132_s2] ss:$0 sm:$0xff]  ;;  %v1824_v59 = vadd.f32 %v7711_v19, %v7421_v3 }
 0x2cc   : > { %2907 = vst.msk [vmem:[#allocation2 + $0x111] sm:$0xff] %vm292_vm1, %v2819_v23  ;;  %6156 = vmatmul.msk.f32.gmra.mxu3 %vm292_vm1, %v7914_v37  ;;  %6104 = vmatmul.msk.f32.gmra.mxu1 %vm292_vm1, %v7918_v16 }
 0x2cd   : > { %v2690_v5 = vmul.f32 %v7582_v56, %v2656_v36  ;;  %v7978_v36 = vld [vmem:[%s9132_s2 + $0x1] ss:$0 sm:$0xff] }
 0x2ce   : > { %v2051_v27 = vpop.f32.mrf.mxu2 }
 0x2cf   : > { %v2724_v15 = vadd.f32 %v7592_v11, %v2690_v5  ;;  %v2101_v52 = vadd.f32 %v2051_v27, %v1822_v46  ;;  %v2329_v9 = vpop.f32.mrf.mxu3  ;;  %v2610_v13 = vpop.f32.mrf.mxu0 }
 0x2d1   : > { %vm2756_vm11 = vcmp.ge.f32.partialorder %v2724_v15, 0.0  ;;  %v2788_v53 = vmul.f32 0.2, %v2724_v15  ;;  %v2379_v32 = vadd.f32 %v2329_v9, %v2101_v52  ;;  %v7929_v8 = vpop.f32.mrf.mxu1 }
 0x2d2   : > { %6191 = vmatmul.msk.f32.gmra.mxu0 %vm292_vm1, %v7931_v22 }
 0x2d3   : > { %v2820_v17 = vsel %vm2756_vm11, %v2724_v15, %v2788_v53  ;;  %v2657_v39 = vadd.f32 %v2607_v51, %v2379_v32  ;;  %6123 = vmatmul.msk.f32.gmra.mxu2 %vm292_vm1, %v7891_v43  ;;  %v7939_v56 = vld [vmem:[#allocation2 + $0x111] sm:$0xff]  ;;  %v7987_v32 = vld [vmem:[#allocation2 + $0x7a] sm:$0xff] }
 0x2d4   : > { %2908 = vst.msk [vmem:[#allocation2 + $0x121] sm:$0xff] %vm292_vm1, %v2820_v17  ;;  %6157 = vmatmul.msk.f32.gmra.mxu3 %vm292_vm1, %v7935_v42  ;;  %6105 = vmatmul.msk.f32.gmra.mxu1 %vm292_vm1, %v7939_v56  ;;  %v7961_v51 = vld [vmem:[#allocation2 + $0x6a] sm:$0xff] }
 0x2d5   : > { %v2691_v21 = vmul.f32 %v7951_v12, %v2657_v39  ;;  %v7983_v53 = vld [vmem:[#allocation2 + $0x90] sm:$0xff]  ;;  %v1825_v39 = vadd.f32 %v7726_v61, %v7430_v14  ;;  %v8008_v14 = vld [vmem:[#allocation2 + $0x82] sm:$0xff] }
 0x2d6   : > { %v2054_v62 = vpop.f32.mrf.mxu2 }
 0x2d7   : > { %v2725_v60 = vadd.f32 %v7592_v11, %v2691_v21  ;;  %v2102_v49 = vadd.f32 %v2054_v62, %v1823_v20  ;;  %v2332_v38 = vpop.f32.mrf.mxu3  ;;  %v2613_v57 = vpop.f32.mrf.mxu0 }
 0x2d9   : > { %vm2757_vm12 = vcmp.ge.f32.partialorder %v2725_v60, 0.0  ;;  %v2789_v44 = vmul.f32 0.2, %v2725_v60  ;;  %v2380_v45 = vadd.f32 %v2332_v38, %v2102_v49  ;;  %v7955_v2 = vpop.f32.mrf.mxu1 }
 0x2da   : > { %6192 = vmatmul.msk.f32.gmra.mxu0 %vm292_vm1, %v7957_v6 }
 0x2db   : > { %v2821_v33 = vsel %vm2757_vm12, %v2725_v60, %v2789_v44  ;;  %v2658_v54 = vadd.f32 %v2610_v13, %v2380_v45  ;;  %6124 = vmatmul.msk.f32.gmra.mxu2 %vm292_vm1, %v7911_v29  ;;  %v7965_v11 = vld [vmem:[#allocation2 + $0x121] sm:$0xff] }
 0x2dc   : > { %2909 = vst.msk [vmem:[#allocation2 + $0x129] sm:$0xff] %vm292_vm1, %v2821_v33  ;;  %6158 = vmatmul.msk.f32.gmra.mxu3 %vm292_vm1, %v7961_v51  ;;  %6106 = vmatmul.msk.f32.gmra.mxu1 %vm292_vm1, %v7965_v11  ;;  %v8004_v33 = vld [vmem:[#allocation2 + $0x98] sm:$0xff] }
 0x2dd   : > { %v2692_v0 = vmul.f32 %v7951_v12, %v2658_v54 }
 0x2de   : > { %v2057_v23 = vpop.f32.mrf.mxu2 }
 0x2df   : > { %v2726_v46 = vadd.f32 %v7978_v36, %v2692_v0  ;;  %v2103_v5 = vadd.f32 %v2057_v23, %v1824_v59  ;;  %v2335_v27 = vpop.f32.mrf.mxu3  ;;  %v2616_v15 = vpop.f32.mrf.mxu0  ;;  %v1826_v0 = vadd.f32 %v7747_v34, %v7449_v26  ;;  %v8029_v26 = vld [vmem:[#allocation2 + $0x92] sm:$0xff] }
 0x2e1   : > { %vm2758_vm13 = vcmp.ge.f32.partialorder %v2726_v46, 0.0  ;;  %v2790_v52 = vmul.f32 0.2, %v2726_v46  ;;  %v2381_v9 = vadd.f32 %v2335_v27, %v2103_v5  ;;  %v7981_v13 = vpop.f32.mrf.mxu1 }
 0x2e2   : > { %6193 = vmatmul.msk.f32.gmra.mxu0 %vm292_vm1, %v7983_v53 }
 0x2e3   : > { %v2822_v3 = vsel %vm2758_vm13, %v2726_v46, %v2790_v52  ;;  %v2659_v19 = vadd.f32 %v2613_v57, %v2381_v9  ;;  %6125 = vmatmul.msk.f32.gmra.mxu2 %vm292_vm1, %v7931_v22  ;;  %v7991_v17 = vld [vmem:[#allocation2 + $0x129] sm:$0xff] }
 0x2e4   : > { %2910 = vst.msk [vmem:[#allocation2 + $0x139] sm:$0xff] %vm292_vm1, %v2822_v3  ;;  %6159 = vmatmul.msk.f32.gmra.mxu3 %vm292_vm1, %v7987_v32  ;;  %6107 = vmatmul.msk.f32.gmra.mxu1 %vm292_vm1, %v7991_v17 }
 0x2e5   : > { %v2693_v20 = vmul.f32 %v7951_v12, %v2659_v19 }
 0x2e6   : > { %v2060_v21 = vpop.f32.mrf.mxu2 }
 0x2e7   : > { %v2727_v62 = vadd.f32 %v7978_v36, %v2693_v20  ;;  %v2104_v60 = vadd.f32 %v2060_v21, %v1825_v39  ;;  %v2338_v49 = vpop.f32.mrf.mxu3  ;;  %v2619_v38 = vpop.f32.mrf.mxu0  ;;  %v8025_v39 = vld [vmem:[#allocation2 + $0xa8] sm:$0xff] }
 0x2e9   : > { %vm2759_vm14 = vcmp.ge.f32.partialorder %v2727_v62, 0.0  ;;  %v2791_v57 = vmul.f32 0.2, %v2727_v62  ;;  %v2382_v44 = vadd.f32 %v2338_v49, %v2104_v60  ;;  %v8002_v45 = vpop.f32.mrf.mxu1 }
 0x2ea   : > { %6194 = vmatmul.msk.f32.gmra.mxu0 %vm292_vm1, %v8004_v33 }
 0x2eb   : > { %v2823_v54 = vsel %vm2759_vm14, %v2727_v62, %v2791_v57  ;;  %v2660_v59 = vadd.f32 %v2616_v15, %v2382_v44  ;;  %6126 = vmatmul.msk.f32.gmra.mxu2 %vm292_vm1, %v7957_v6  ;;  %v8012_v61 = vld [vmem:[#allocation2 + $0x139] sm:$0xff]  ;;  %v1827_v62 = vadd.f32 %v7762_v25, %v7472_v63 }
 0x2ec   : > { %2911 = vst.msk [vmem:[#allocation2 + $0x141] sm:$0xff] %vm292_vm1, %v2823_v54  ;;  %6160 = vmatmul.msk.f32.gmra.mxu3 %vm292_vm1, %v8008_v14  ;;  %6108 = vmatmul.msk.f32.gmra.mxu1 %vm292_vm1, %v8012_v61  ;;  %v8050_v63 = vld [vmem:[#allocation2 + $0x9a] sm:$0xff] }
 0x2ed   : > { %v2694_v23 = vmul.f32 %v7951_v12, %v2660_v59 }
 0x2ee   : > { %v2063_v46 = vpop.f32.mrf.mxu2 }
 0x2ef   : > { %v2728_v5 = vadd.f32 %v7978_v36, %v2694_v23  ;;  %v2105_v27 = vadd.f32 %v2063_v46, %v1826_v0  ;;  %v2341_v15 = vpop.f32.mrf.mxu3  ;;  %v2622_v52 = vpop.f32.mrf.mxu0  ;;  %v8046_v46 = vld [vmem:[#allocation2 + $0xb0] sm:$0xff] }
 0x2f1   : > { %vm2760_vm15 = vcmp.ge.f32.partialorder %v2728_v5, 0.0  ;;  %v2792_v9 = vmul.f32 0.2, %v2728_v5  ;;  %v2383_v3 = vadd.f32 %v2341_v15, %v2105_v27  ;;  %v8023_v19 = vpop.f32.mrf.mxu1  ;;  %v6249_v15 = vld [vmem:[%s9133_s3 + $0x14] sm:$0xf] }
 0x2f2   : > { %6195 = vmatmul.msk.f32.gmra.mxu0 %vm292_vm1, %v8025_v39  ;;  %6250 = vmatpush.msk.msra.mxu2 %vm389_vm0, %v6249_v15 }
 0x2f3   : > { %v2824_v20 = vsel %vm2760_vm15, %v2728_v5, %v2792_v9  ;;  %v2661_v21 = vadd.f32 %v2619_v38, %v2383_v3  ;;  %6127 = vmatmul.msk.f32.gmra.mxu2 %vm292_vm1, %v7983_v53  ;;  %v8033_v34 = vld [vmem:[#allocation2 + $0x141] sm:$0xff]  ;;  %v1828_v9 = vadd.f32 %v7779_v7, %v7500_v41 }
 0x2f4   : > { %2912 = vst.msk [vmem:[#allocation2 + $0x151] sm:$0xff] %vm292_vm1, %v2824_v20  ;;  %6161 = vmatmul.msk.f32.gmra.mxu3 %vm292_vm1, %v8029_v26  ;;  %6109 = vmatmul.msk.f32.gmra.mxu1 %vm292_vm1, %v8033_v34  ;;  %v6317_v20 = vld [vmem:[%s9133_s3 + $0x1c] sm:$0xf] }
 0x2f5   : > { %v2695_v60 = vmul.f32 %v7951_v12, %v2661_v21  ;;  %v6351_v21 = vld [vmem:[%s9133_s3 + $0x20] sm:$0xf]  ;;  %6318 = vmatpush.msk.msra.mxu0 %vm389_vm0, %v6317_v20 }
 0x2f6   : > { %v2066_v49 = vpop.f32.mrf.mxu2  ;;  %6352 = vmatpush.msk.msra.mxu1 %vm389_vm0, %v6351_v21 }
 0x2f7   : > { %v2729_v38 = vadd.f32 %v7978_v36, %v2695_v60  ;;  %v2106_v57 = vadd.f32 %v2066_v49, %v1827_v62  ;;  %v2344_v44 = vpop.f32.mrf.mxu3  ;;  %v2625_v54 = vpop.f32.mrf.mxu0 }
 0x2f9   : > { %vm2761_vm2 = vcmp.ge.f32.partialorder %v2729_v38, 0.0  ;;  %v2793_v59 = vmul.f32 0.2, %v2729_v38  ;;  %v2384_v0 = vadd.f32 %v2344_v44, %v2106_v57  ;;  %v8044_v23 = vpop.f32.mrf.mxu1 }
 0x2fa   : > { %6196 = vmatmul.msk.f32.gmra.mxu0 %vm292_vm1, %v8046_v46 }
 0x2fb   : > { %v2825_v5 = vsel %vm2761_vm2, %v2729_v38, %v2793_v59  ;;  %v2662_v27 = vadd.f32 %v2622_v52, %v2384_v0  ;;  %6128 = vmatmul.msk.f32.gmra.mxu2 %vm292_vm1, %v8004_v33  ;;  %v8054_v25 = vld [vmem:[#allocation2 + $0x151] sm:$0xff]  ;;  %v8083_v59 = vld [vmem:[#allocation2 + $0xc0] sm:$0xff] }
 0x2fc   : > { %9273 = vst [vmem:[#allocation3_spill] sm:$0xff] %v8054_v25  ;;  %6162 = vmatmul.msk.f32.gmra.mxu3 %vm292_vm1, %v8050_v63  ;;  %6110 = vmatmul.msk.f32.gmra.mxu1 %vm292_vm1, %v8054_v25  ;;  %v6283_v52 = vld [vmem:[%s9133_s3 + $0x18] sm:$0xf] }
 0x2fd   : > { %2913 = vst.msk [vmem:[#allocation2 + $0x159] sm:$0xff] %vm292_vm1, %v2825_v5  ;;  %v2696_v3 = vmul.f32 %v7951_v12, %v2662_v27  ;;  %6284 = vmatpush.msk.msra.mxu3 %vm389_vm0, %v6283_v52  ;;  %v8087_v27 = vld [vmem:[#allocation2 + $0xaa] sm:$0xff] }
 0x2fe   : > { %v2069_v62 = vpop.f32.mrf.mxu2  ;;  %9274 = vst [vmem:[#allocation4_spill] sm:$0xff] %v8083_v59 }
 0x2ff   : > { %v2730_v41 = vadd.f32 %v7978_v36, %v2696_v3  ;;  %v2107_v7 = vadd.f32 %v2069_v62, %v1828_v9  ;;  %v2347_v60 = vpop.f32.mrf.mxu3  ;;  %v2628_v49 = vpop.f32.mrf.mxu0  ;;  %9275 = vst [vmem:[#allocation5_spill] sm:$0xff] %v8087_v27 }
 0x301   : > { %vm2762_vm3 = vcmp.ge.f32.partialorder %v2730_v41, 0.0  ;;  %v2794_v38 = vmul.f32 0.2, %v2730_v41  ;;  %v2385_v57 = vadd.f32 %v2347_v60, %v2107_v7  ;;  %v8081_v44 = vpop.f32.mrf.mxu1 }
 0x302   : > { %6197 = vmatmul.msk.f32.gmra.mxu0 %vm292_vm1, %v8083_v59 }
 0x303   : > { %v2826_v0 = vsel %vm2762_vm3, %v2730_v41, %v2794_v38  ;;  %v2663_v5 = vadd.f32 %v2625_v54, %v2385_v57  ;;  %6129 = vmatmul.msk.f32.gmra.mxu2 %vm292_vm1, %v8025_v39  ;;  %v1829_v54 = vadd.f32 %v7794_v30, %v7535_v40  ;;  %v8104_v38 = vld [vmem:[#allocation2 + $0xc8] sm:$0xff]  ;;  %v8108_v40 = vld [vmem:[#allocation2 + $0xb2] sm:$0xff] }
 0x304   : > { %v8091_v15 = vld [vmem:[#allocation2 + $0x159] sm:$0xff]  ;;  %2914 = vst.msk [vmem:[#allocation2 + $0x169] sm:$0xff] %vm292_vm1, %v2826_v0  ;;  %6163 = vmatmul.msk.f32.gmra.mxu3 %vm292_vm1, %v8087_v27 }
 0x305   : > { %9276 = vst [vmem:[#allocation6_spill] sm:$0xff] %v8091_v15  ;;  %6111 = vmatmul.msk.f32.gmra.mxu1 %vm292_vm1, %v8091_v15  ;;  %v2697_v52 = vmul.f32 %v7951_v12, %v2663_v5  ;;  %v8292_v15 = vld [vmem:[#allocation2 + $0x140] sm:$0xff]  ;;  %v8330_v27 = vld [vmem:[#allocation2 + $0x158] sm:$0xff] }
 0x306   : > { %v2072_v9 = vpop.f32.mrf.mxu2  ;;  %9277 = vst [vmem:[#allocation7_spill] sm:$0xff] %v8104_v38 }
 0x307   : > { %v2731_v3 = vadd.f32 %v7978_v36, %v2697_v52  ;;  %v2108_v20 = vadd.f32 %v2072_v9, %v1829_v54  ;;  %v2350_v21 = vpop.f32.mrf.mxu3  ;;  %v2631_v62 = vpop.f32.mrf.mxu0  ;;  %9278 = vst [vmem:[#allocation8_spill] sm:$0xff] %v8108_v40 }
 0x308   : > { %9307 = vst [vmem:[#allocation39_spill] sm:$0xff] %v8292_v15 }
 0x309   : > { %vm2763_vm0 = vcmp.ge.f32.partialorder %v2731_v3, 0.0  ;;  %v2795_v41 = vmul.f32 0.2, %v2731_v3  ;;  %v2386_v7 = vadd.f32 %v2350_v21, %v2108_v20  ;;  %v8102_v60 = vpop.f32.mrf.mxu1  ;;  %9313 = vst [vmem:[#allocation43_spill] sm:$0xff] %v8330_v27 }
 0x30a   : > { %6198 = vmatmul.msk.f32.gmra.mxu0 %vm292_vm1, %v8104_v38 }
 0x30b   : > { %v2827_v57 = vsel %vm2763_vm0, %v2731_v3, %v2795_v41  ;;  %v2664_v0 = vadd.f32 %v2628_v49, %v2386_v7  ;;  %6130 = vmatmul.msk.f32.gmra.mxu2 %vm292_vm1, %v8046_v46  ;;  %v8112_v30 = vld [vmem:[#allocation2 + $0x169] sm:$0xff]  ;;  %v1830_v49 = vadd.f32 %v7815_v50, %v7560_v4 }
 0x30c   : > { %9279 = vst [vmem:[#allocation9_spill] sm:$0xff] %v8112_v30  ;;  %6164 = vmatmul.msk.f32.gmra.mxu3 %vm292_vm1, %v8108_v40  ;;  %v8129_v4 = vld [vmem:[#allocation2 + $0xc2] sm:$0xff] }
 0x30d   : > { %2915 = vst.msk [vmem:[#allocation2 + $0x171] sm:$0xff] %vm292_vm1, %v2827_v57  ;;  %6112 = vmatmul.msk.f32.gmra.mxu1 %vm292_vm1, %v8112_v30  ;;  %v2698_v5 = vmul.f32 %v7951_v12, %v2664_v0  ;;  %v8125_v57 = vld [vmem:[#allocation2 + $0xd8] sm:$0xff]  ;;  %v8349_v25 = vld [vmem:[#allocation2 + $0x168] sm:$0xff] }
 0x30e   : > { %v2075_v54 = vpop.f32.mrf.mxu2  ;;  %9280 = vst [vmem:[#allocation38_spill] sm:$0xff] %v8125_v57 }
 0x30f   : > { %v2732_v52 = vadd.f32 %v7978_v36, %v2698_v5  ;;  %v2109_v9 = vadd.f32 %v2075_v54, %v1830_v49  ;;  %v2353_v3 = vpop.f32.mrf.mxu3  ;;  %v3837_v20 = vpop.f32.mrf.mxu0  ;;  %9281 = vst [vmem:[#allocation12_spill] sm:$0xff] %v8129_v4 }
 0x310   : > { %9317 = vst [vmem:[#allocation47_spill] sm:$0xff] %v8349_v25 }
 0x311   : > { %vm2764_vm4 = vcmp.ge.f32.partialorder %v2732_v52, 0.0  ;;  %v2796_v21 = vmul.f32 0.2, %v2732_v52  ;;  %v2387_v41 = vadd.f32 %v2353_v3, %v2109_v9  ;;  %v8123_v7 = vpop.f32.mrf.mxu1 }
 0x312   : > { %6199 = vmatmul.msk.f32.gmra.mxu0 %vm292_vm1, %v8125_v57 }
 0x313   : > { %v2828_v40 = vsel %vm2764_vm4, %v2732_v52, %v2796_v21  ;;  %v2665_v30 = vadd.f32 %v2631_v62, %v2387_v41  ;;  %6131 = vmatmul.msk.f32.gmra.mxu2 %vm292_vm1, %v8083_v59  ;;  %v8311_v59 = vld [vmem:[#allocation2 + $0x150] sm:$0xff] }
 0x314   : > { %v8133_v50 = vld [vmem:[#allocation2 + $0x171] sm:$0xff]  ;;  %2916 = vst.msk [vmem:[#allocation2 + $0x181] sm:$0xff] %vm292_vm1, %v2828_v40  ;;  %6165 = vmatmul.msk.f32.gmra.mxu3 %vm292_vm1, %v8129_v4  ;;  %v8145_v40 = vld [vmem:[#allocation2 + $0xe0] sm:$0xff]  ;;  %v8254_v4 = vld [vmem:[#allocation2 + $0x128] sm:$0xff] }
 0x315   : > { %9282 = vst [vmem:[#allocation10_spill] sm:$0xff] %v8133_v50  ;;  %6113 = vmatmul.msk.f32.gmra.mxu1 %vm292_vm1, %v8133_v50  ;;  %v2699_v62 = vmul.f32 %v7951_v12, %v2665_v30  ;;  %v8149_v50 = vld [vmem:[#allocation2 + $0xca] sm:$0xff]  ;;  %v3965_v12 = vld [vmem:[#allocation2 + $0x19] sm:$0xff] }
 0x316   : > { %v3313_v0 = vpop.f32.mrf.mxu2  ;;  %9283 = vst [vmem:[#allocation14_spill] sm:$0xff] %v8145_v40 }
 0x317   : > { %v2733_v49 = vadd.f32 %v7978_v36, %v2699_v62  ;;  %v3314_v5 = vadd.f32 %v3313_v0, %v7827_v55  ;;  %v3559_v54 = vpop.f32.mrf.mxu3  ;;  %v3840_v52 = vpop.f32.mrf.mxu0  ;;  %9284 = vst [vmem:[#allocation11_spill] sm:$0xff] %v8149_v50 }
 0x318   : > { %9301 = vst [vmem:[#allocation32_spill] sm:$0xff] %v8254_v4 }
 0x319   : > { %vm2765_vm5 = vcmp.ge.f32.partialorder %v2733_v49, 0.0  ;;  %v2797_v9 = vmul.f32 0.2, %v2733_v49  ;;  %v3655_v3 = vadd.f32 %v3559_v54, %v3314_v5  ;;  %v8143_v21 = vpop.f32.mrf.mxu1  ;;  %v8162_v54 = vld [vmem:[#allocation2 + $0xf0] sm:$0xff]  ;;  %9310 = vst [vmem:[#allocation40_spill] sm:$0xff] %v8311_v59 }
 0x31a   : > { %6200 = vmatmul.msk.f32.gmra.mxu0 %vm292_vm1, %v8145_v40  ;;  %9286 = vst [vmem:[#allocation13_spill] sm:$0xff] %v8162_v54 }
 0x31b   : > { %v2829_v41 = vsel %vm2765_vm5, %v2733_v49, %v2797_v9  ;;  %6132 = vmatmul.msk.f32.gmra.mxu2 %vm292_vm1, %v8104_v38  ;;  %v8153_v55 = vadd.f32 %v3837_v20, %v3655_v3  ;;  %v8166_v20 = vld [vmem:[#allocation2 + $0xda] sm:$0xff] }
 0x31c   : > { %2917 = vst.msk [vmem:[#allocation2 + $0x189] sm:$0xff] %vm292_vm1, %v2829_v41  ;;  %6166 = vmatmul.msk.f32.gmra.mxu3 %vm292_vm1, %v8149_v50  ;;  %v3966_v9 = vld [vmem:[#allocation2 + $0x21] sm:$0xff]  ;;  %v8216_v50 = vld [vmem:[#allocation2 + $0x110] sm:$0xff]  ;;  %v8273_v38 = vld [vmem:[#allocation2 + $0x138] sm:$0xff] }
 0x31d   : > { %9285 = vst [vmem:[#allocation16_spill] sm:$0xff] %v8153_v55  ;;  %6217 = vmatmul.msk.f32.vlgmr.msrb.gmra.mxu1 %vm292_vm1, %v3965_v12  ;;  %v8178_v55 = vld [vmem:[#allocation2 + $0xf8] sm:$0xff] }
 0x31e   : > { %v3316_v36 = vpop.f32.mrf.mxu2  ;;  %9287 = vst [vmem:[#allocation18_spill] sm:$0xff] %v8166_v20 }
 0x31f   : > { %v3317_v30 = vadd.f32 %v3316_v36, %v7839_v24  ;;  %v3562_v62 = vpop.f32.mrf.mxu3  ;;  %v3843_v0 = vpop.f32.mrf.mxu0  ;;  %9289 = vst [vmem:[#allocation20_spill] sm:$0xff] %v8178_v55 }
 0x320   : > { %9295 = vst [vmem:[#allocation26_spill] sm:$0xff] %v8216_v50 }
 0x321   : > { %v3656_v49 = vadd.f32 %v3562_v62, %v3317_v30  ;;  %v8160_v5 = vpop.f32.mrf.mxu1  ;;  %9304 = vst [vmem:[#allocation31_spill] sm:$0xff] %v8273_v38 }
 0x322   : > { %6201 = vmatmul.msk.f32.gmra.mxu0 %vm292_vm1, %v8162_v54 }
 0x323   : > { %6133 = vmatmul.msk.f32.gmra.mxu2 %vm292_vm1, %v8125_v57  ;;  %v8170_v3 = vadd.f32 %v3840_v52, %v3656_v49  ;;  %v8182_v52 = vld [vmem:[#allocation2 + $0xe2] sm:$0xff]  ;;  %v8186_v49 = vld [vmem:[#allocation2 + $0x31] sm:$0xff] }
 0x324   : > { %6167 = vmatmul.msk.f32.gmra.mxu3 %vm292_vm1, %v8166_v20  ;;  %9290 = vst [vmem:[#allocation17_spill] sm:$0xff] %v8182_v52  ;;  %v8235_v57 = vld [vmem:[#allocation2 + $0x120] sm:$0xff] }
 0x325   : > { %9288 = vst [vmem:[#allocation15_spill] sm:$0xff] %v8170_v3  ;;  %6218 = vmatmul.msk.f32.gmra.mxu1 %vm292_vm1, %v3966_v9 }
 0x326   : > { %v3319_v24 = vpop.f32.mrf.mxu2  ;;  %9298 = vst [vmem:[#allocation25_spill] sm:$0xff] %v8235_v57 }
 0x327   : > { %v3320_v41 = vadd.f32 %v3319_v24, %v7850_v47  ;;  %v3565_v12 = vpop.f32.mrf.mxu3  ;;  %v3846_v36 = vpop.f32.mrf.mxu0 }
 0x329   : > { %v3657_v30 = vadd.f32 %v3565_v12, %v3320_v41  ;;  %v8176_v62 = vpop.f32.mrf.mxu1 }
 0x32a   : > { %6202 = vmatmul.msk.f32.gmra.mxu0 %vm292_vm1, %v8178_v55 }
 0x32b   : > { %6134 = vmatmul.msk.f32.gmra.mxu2 %vm292_vm1, %v8145_v40  ;;  %v8188_v9 = vadd.f32 %v3843_v0, %v3657_v30  ;;  %v8197_v40 = vld [vmem:[#allocation2 + $0x108] sm:$0xff]  ;;  %v8201_v0 = vld [vmem:[#allocation2 + $0xf2] sm:$0xff] }
 0x32c   : > { %6168 = vmatmul.msk.f32.gmra.mxu3 %vm292_vm1, %v8182_v52  ;;  %9292 = vst [vmem:[#allocation19_spill] sm:$0xff] %v8197_v40  ;;  %v8205_v30 = vld [vmem:[#allocation2 + $0x39] sm:$0xff] }
 0x32d   : > { %9291 = vst [vmem:[#allocation22_spill] sm:$0xff] %v8188_v9  ;;  %6219 = vmatmul.msk.f32.gmra.mxu1 %vm292_vm1, %v8186_v49 }
 0x32e   : > { %v3322_v47 = vpop.f32.mrf.mxu2  ;;  %9293 = vst [vmem:[#allocation24_spill] sm:$0xff] %v8201_v0 }
 0x32f   : > { %v3323_v24 = vadd.f32 %v3322_v47, %v7861_v28  ;;  %v3568_v41 = vpop.f32.mrf.mxu3  ;;  %v3849_v12 = vpop.f32.mrf.mxu0 }
 0x331   : > { %v3658_v3 = vadd.f32 %v3568_v41, %v3323_v24  ;;  %v8195_v20 = vpop.f32.mrf.mxu1 }
 0x332   : > { %6203 = vmatmul.msk.f32.gmra.mxu0 %vm292_vm1, %v8197_v40 }
 0x333   : > { %6135 = vmatmul.msk.f32.gmra.mxu2 %vm292_vm1, %v8162_v54  ;;  %v8207_v9 = vadd.f32 %v3846_v36, %v3658_v3  ;;  %v8220_v3 = vld [vmem:[#allocation2 + $0xfa] sm:$0xff]  ;;  %v8224_v36 = vld [vmem:[#allocation2 + $0x49] sm:$0xff] }
 0x334   : > { %6169 = vmatmul.msk.f32.gmra.mxu3 %vm292_vm1, %v8201_v0  ;;  %9296 = vst [vmem:[#allocation23_spill] sm:$0xff] %v8220_v3 }
 0x335   : > { %9294 = vst [vmem:[#allocation21_spill] sm:$0xff] %v8207_v9  ;;  %6220 = vmatmul.msk.f32.gmra.mxu1 %vm292_vm1, %v8205_v30 }
 0x336   : > { %v3325_v28 = vpop.f32.mrf.mxu2 }
 0x337   : > { %v3326_v47 = vadd.f32 %v3325_v28, %v7872_v18  ;;  %v3571_v24 = vpop.f32.mrf.mxu3  ;;  %v3852_v41 = vpop.f32.mrf.mxu0 }
 0x339   : > { %v3659_v52 = vadd.f32 %v3571_v24, %v3326_v47  ;;  %v8214_v54 = vpop.f32.mrf.mxu1 }
 0x33a   : > { %6204 = vmatmul.msk.f32.gmra.mxu0 %vm292_vm1, %v8216_v50 }
 0x33b   : > { %6136 = vmatmul.msk.f32.gmra.mxu2 %vm292_vm1, %v8178_v55  ;;  %v8226_v9 = vadd.f32 %v3849_v12, %v3659_v52  ;;  %v8239_v52 = vld [vmem:[#allocation2 + $0x10a] sm:$0xff] }
 0x33c   : > { %6170 = vmatmul.msk.f32.gmra.mxu3 %vm292_vm1, %v8220_v3  ;;  %9299 = vst [vmem:[#allocation30_spill] sm:$0xff] %v8239_v52  ;;  %v8243_v12 = vld [vmem:[#allocation2 + $0x51] sm:$0xff] }
 0x33d   : > { %9297 = vst [vmem:[#allocation28_spill] sm:$0xff] %v8226_v9  ;;  %6221 = vmatmul.msk.f32.gmra.mxu1 %vm292_vm1, %v8224_v36 }
 0x33e   : > { %v3328_v18 = vpop.f32.mrf.mxu2 }
 0x33f   : > { %v3329_v28 = vadd.f32 %v3328_v18, %v7889_v10  ;;  %v3574_v47 = vpop.f32.mrf.mxu3  ;;  %v3855_v24 = vpop.f32.mrf.mxu0 }
 0x341   : > { %v3660_v0 = vadd.f32 %v3574_v47, %v3329_v28  ;;  %v8233_v55 = vpop.f32.mrf.mxu1 }
 0x342   : > { %6205 = vmatmul.msk.f32.gmra.mxu0 %vm292_vm1, %v8235_v57 }
 0x343   : > { %6137 = vmatmul.msk.f32.gmra.mxu2 %vm292_vm1, %v8197_v40  ;;  %v8245_v9 = vadd.f32 %v3852_v41, %v3660_v0  ;;  %v8258_v0 = vld [vmem:[#allocation2 + $0x112] sm:$0xff]  ;;  %v8262_v41 = vld [vmem:[#allocation2 + $0x61] sm:$0xff] }
 0x344   : > { %6171 = vmatmul.msk.f32.gmra.mxu3 %vm292_vm1, %v8239_v52  ;;  %9302 = vst [vmem:[#allocation29_spill] sm:$0xff] %v8258_v0 }
 0x345   : > { %9300 = vst [vmem:[#allocation27_spill] sm:$0xff] %v8245_v9  ;;  %6222 = vmatmul.msk.f32.gmra.mxu1 %vm292_vm1, %v8243_v12 }
 0x346   : > { %v3331_v10 = vpop.f32.mrf.mxu2 }
 0x347   : > { %v3332_v18 = vadd.f32 %v3331_v10, %v7909_v31  ;;  %v3577_v28 = vpop.f32.mrf.mxu3  ;;  %v3858_v47 = vpop.f32.mrf.mxu0 }
 0x349   : > { %v3661_v3 = vadd.f32 %v3577_v28, %v3332_v18  ;;  %v8252_v40 = vpop.f32.mrf.mxu1 }
 0x34a   : > { %6206 = vmatmul.msk.f32.gmra.mxu0 %vm292_vm1, %v8254_v4 }
 0x34b   : > { %6138 = vmatmul.msk.f32.gmra.mxu2 %vm292_vm1, %v8216_v50  ;;  %v8264_v9 = vadd.f32 %v3855_v24, %v3661_v3  ;;  %v8277_v3 = vld [vmem:[#allocation2 + $0x122] sm:$0xff] }
 0x34c   : > { %6172 = vmatmul.msk.f32.gmra.mxu3 %vm292_vm1, %v8258_v0  ;;  %9305 = vst [vmem:[#allocation36_spill] sm:$0xff] %v8277_v3  ;;  %v8281_v24 = vld [vmem:[#allocation2 + $0x69] sm:$0xff] }
 0x34d   : > { %9303 = vst [vmem:[#allocation34_spill] sm:$0xff] %v8264_v9  ;;  %6223 = vmatmul.msk.f32.gmra.mxu1 %vm292_vm1, %v8262_v41 }
 0x34e   : > { %v3334_v31 = vpop.f32.mrf.mxu2 }
 0x34f   : > { %v3335_v10 = vadd.f32 %v3334_v31, %v7929_v8  ;;  %v3580_v18 = vpop.f32.mrf.mxu3  ;;  %v3861_v28 = vpop.f32.mrf.mxu0 }
 0x351   : > { %v3662_v52 = vadd.f32 %v3580_v18, %v3335_v10  ;;  %v8271_v50 = vpop.f32.mrf.mxu1 }
 0x352   : > { %6207 = vmatmul.msk.f32.gmra.mxu0 %vm292_vm1, %v8273_v38 }
 0x353   : > { %6139 = vmatmul.msk.f32.gmra.mxu2 %vm292_vm1, %v8235_v57  ;;  %v8283_v9 = vadd.f32 %v3858_v47, %v3662_v52  ;;  %v8296_v52 = vld [vmem:[#allocation2 + $0x12a] sm:$0xff]  ;;  %v8300_v47 = vld [vmem:[#allocation2 + $0x79] sm:$0xff] }
 0x354   : > { %6173 = vmatmul.msk.f32.gmra.mxu3 %vm292_vm1, %v8277_v3  ;;  %9308 = vst [vmem:[#allocation35_spill] sm:$0xff] %v8296_v52 }
 0x355   : > { %9306 = vst [vmem:[#allocation33_spill] sm:$0xff] %v8283_v9  ;;  %6224 = vmatmul.msk.f32.gmra.mxu1 %vm292_vm1, %v8281_v24 }
 0x356   : > { %v3337_v8 = vpop.f32.mrf.mxu2 }
 0x357   : > { %v3338_v31 = vadd.f32 %v3337_v8, %v7955_v2  ;;  %v3583_v10 = vpop.f32.mrf.mxu3  ;;  %v3864_v18 = vpop.f32.mrf.mxu0 }
 0x359   : > { %v3663_v0 = vadd.f32 %v3583_v10, %v3338_v31  ;;  %v8290_v57 = vpop.f32.mrf.mxu1 }
 0x35a   : > { %6208 = vmatmul.msk.f32.gmra.mxu0 %vm292_vm1, %v8292_v15 }
 0x35b   : > { %6140 = vmatmul.msk.f32.gmra.mxu2 %vm292_vm1, %v8254_v4  ;;  %v8302_v9 = vadd.f32 %v3861_v28, %v3663_v0  ;;  %v8315_v0 = vld [vmem:[#allocation2 + $0x13a] sm:$0xff] }
 0x35c   : > { %6174 = vmatmul.msk.f32.gmra.mxu3 %vm292_vm1, %v8296_v52  ;;  %9311 = vst [vmem:[#allocation41_spill] sm:$0xff] %v8315_v0  ;;  %v8319_v28 = vld [vmem:[#allocation2 + $0x81] sm:$0xff] }
 0x35d   : > { %9309 = vst [vmem:[#allocation37_spill] sm:$0xff] %v8302_v9  ;;  %6225 = vmatmul.msk.f32.gmra.mxu1 %vm292_vm1, %v8300_v47 }
 0x35e   : > { %v3340_v2 = vpop.f32.mrf.mxu2 }
 0x35f   : > { %v3341_v8 = vadd.f32 %v3340_v2, %v7981_v13  ;;  %v3586_v31 = vpop.f32.mrf.mxu3  ;;  %v3867_v10 = vpop.f32.mrf.mxu0 }
 0x361   : > { %v3664_v3 = vadd.f32 %v3586_v31, %v3341_v8  ;;  %v8309_v4 = vpop.f32.mrf.mxu1 }
 0x362   : > { %6209 = vmatmul.msk.f32.gmra.mxu0 %vm292_vm1, %v8311_v59 }
 0x363   : > { %6141 = vmatmul.msk.f32.gmra.mxu2 %vm292_vm1, %v8273_v38  ;;  %v8321_v9 = vadd.f32 %v3864_v18, %v3664_v3  ;;  %v8334_v3 = vld [vmem:[#allocation2 + $0x142] sm:$0xff]  ;;  %v8338_v18 = vld [vmem:[#allocation2 + $0x91] sm:$0xff] }
 0x364   : > { %6175 = vmatmul.msk.f32.gmra.mxu3 %vm292_vm1, %v8315_v0  ;;  %9314 = vst [vmem:[#allocation44_spill] sm:$0xff] %v8334_v3 }
 0x365   : > { %9312 = vst [vmem:[#allocation42_spill] sm:$0xff] %v8321_v9  ;;  %6226 = vmatmul.msk.f32.gmra.mxu1 %vm292_vm1, %v8319_v28 }
 0x366   : > { %v3343_v13 = vpop.f32.mrf.mxu2 }
 0x367   : > { %v3344_v2 = vadd.f32 %v3343_v13, %v8002_v45  ;;  %v3589_v8 = vpop.f32.mrf.mxu3  ;;  %v3870_v31 = vpop.f32.mrf.mxu0 }
 0x369   : > { %v3665_v52 = vadd.f32 %v3589_v8, %v3344_v2  ;;  %v8328_v38 = vpop.f32.mrf.mxu1 }
 0x36a   : > { %6210 = vmatmul.msk.f32.gmra.mxu0 %vm292_vm1, %v8330_v27 }
 0x36b   : > { %6142 = vmatmul.msk.f32.gmra.mxu2 %vm292_vm1, %v8292_v15  ;;  %v8340_v9 = vadd.f32 %v3867_v10, %v3665_v52  ;;  %v8353_v52 = vld [vmem:[#allocation2 + $0x152] sm:$0xff] }
 0x36c   : > { %6176 = vmatmul.msk.f32.gmra.mxu3 %vm292_vm1, %v8334_v3  ;;  %9318 = vst [vmem:[#allocation48_spill] sm:$0xff] %v8353_v52  ;;  %v8357_v10 = vld [vmem:[#allocation2 + $0x99] sm:$0xff] }
 0x36d   : > { %9315 = vst [vmem:[#allocation45_spill] sm:$0xff] %v8340_v9  ;;  %6227 = vmatmul.msk.f32.gmra.mxu1 %vm292_vm1, %v8338_v18 }
 0x36e   : > { %v3346_v45 = vpop.f32.mrf.mxu2 }
 0x36f   : > { %v3347_v13 = vadd.f32 %v3346_v45, %v8023_v19  ;;  %v3592_v2 = vpop.f32.mrf.mxu3  ;;  %v3873_v8 = vpop.f32.mrf.mxu0 }
 0x371   : > { %v3666_v0 = vadd.f32 %v3592_v2, %v3347_v13  ;;  %v8347_v15 = vpop.f32.mrf.mxu1 }
 0x372   : > { %9316 = vst [vmem:[#allocation46_spill] sm:$0xff] %v8347_v15  ;;  %6211 = vmatmul.msk.f32.gmra.mxu0 %vm292_vm1, %v8349_v25  ;;  %v8368_v15 = vld [vmem:[#allocation2 + $0x170] sm:$0xff] }
 0x373   : > { %6143 = vmatmul.msk.f32.gmra.mxu2 %vm292_vm1, %v8311_v59  ;;  %v8359_v9 = vadd.f32 %v3870_v31, %v3666_v0  ;;  %9321 = vst [vmem:[#allocation51_spill] sm:$0xff] %v8368_v15  ;;  %v8372_v0 = vld [vmem:[#allocation2 + $0x15a] sm:$0xff]  ;;  %v8376_v31 = vld [vmem:[#allocation2 + $0xa9] sm:$0xff] }
 0x374   : > { %6177 = vmatmul.msk.f32.gmra.mxu3 %vm292_vm1, %v8353_v52  ;;  %9322 = vst [vmem:[#allocation52_spill] sm:$0xff] %v8372_v0 }
 0x375   : > { %9319 = vst [vmem:[#allocation49_spill] sm:$0xff] %v8359_v9  ;;  %6228 = vmatmul.msk.f32.gmra.mxu1 %vm292_vm1, %v8357_v10 }
 0x376   : > { %v3349_v19 = vpop.f32.mrf.mxu2 }
 0x377   : > { %v3350_v45 = vadd.f32 %v3349_v19, %v8044_v23  ;;  %v3595_v13 = vpop.f32.mrf.mxu3  ;;  %v3876_v2 = vpop.f32.mrf.mxu0 }
 0x379   : > { %v3667_v3 = vadd.f32 %v3595_v13, %v3350_v45  ;;  %v8366_v59 = vpop.f32.mrf.mxu1 }
 0x37a   : > { %9320 = vst [vmem:[#allocation50_spill] sm:$0xff] %v8366_v59  ;;  %6212 = vmatmul.msk.f32.gmra.mxu0 %vm292_vm1, %v8368_v15  ;;  %v8387_v59 = vld [vmem:[#allocation2 + $0x180] sm:$0xff] }
 0x37b   : > { %6144 = vmatmul.msk.f32.gmra.mxu2 %vm292_vm1, %v8330_v27  ;;  %v8378_v9 = vadd.f32 %v3873_v8, %v3667_v3  ;;  %9325 = vst [vmem:[#allocation55_spill] sm:$0xff] %v8387_v59  ;;  %v8391_v3 = vld [vmem:[#allocation2 + $0x16a] sm:$0xff] }
 0x37c   : > { %6178 = vmatmul.msk.f32.gmra.mxu3 %vm292_vm1, %v8372_v0  ;;  %9326 = vst [vmem:[#allocation56_spill] sm:$0xff] %v8391_v3  ;;  %v8395_v8 = vld [vmem:[#allocation2 + $0xb1] sm:$0xff] }
 0x37d   : > { %9323 = vst [vmem:[#allocation53_spill] sm:$0xff] %v8378_v9  ;;  %6229 = vmatmul.msk.f32.gmra.mxu1 %vm292_vm1, %v8376_v31 }
 0x37e   : > { %v3352_v23 = vpop.f32.mrf.mxu2 }
 0x37f   : > { %v3353_v19 = vadd.f32 %v3352_v23, %v8081_v44  ;;  %v3598_v45 = vpop.f32.mrf.mxu3  ;;  %v3879_v13 = vpop.f32.mrf.mxu0 }
 0x381   : > { %v3668_v52 = vadd.f32 %v3598_v45, %v3353_v19 }
 0x382   : > { %v8385_v27 = vpop.f32.mrf.mxu1  ;;  %6213 = vmatmul.msk.f32.gmra.mxu0 %vm292_vm1, %v8387_v59 }
 0x383   : > { %9324 = vst [vmem:[#allocation54_spill] sm:$0xff] %v8385_v27  ;;  %6145 = vmatmul.msk.f32.gmra.mxu2 %vm292_vm1, %v8349_v25  ;;  %v8397_v9 = vadd.f32 %v3876_v2, %v3668_v52  ;;  %v8406_v27 = vld [vmem:[#allocation2 + $0x188] sm:$0xff]  ;;  %v8410_v52 = vld [vmem:[#allocation2 + $0x172] sm:$0xff] }
 0x384   : > { %6179 = vmatmul.msk.f32.gmra.mxu3 %vm292_vm1, %v8391_v3  ;;  %9328 = vst [vmem:[#allocation58_spill] sm:$0xff] %v8406_v27  ;;  %v8414_v2 = vld [vmem:[#allocation2 + $0xc1] sm:$0xff] }
 0x385   : > { %9327 = vst [vmem:[#allocation57_spill] sm:$0xff] %v8397_v9  ;;  %6230 = vmatmul.msk.f32.gmra.mxu1 %vm292_vm1, %v8395_v8 }
 0x386   : > { %v3355_v44 = vpop.f32.mrf.mxu2  ;;  %9329 = vst [vmem:[#allocation59_spill] sm:$0xff] %v8410_v52 }
 0x387   : > { %v3356_v23 = vadd.f32 %v3355_v44, %v8102_v60  ;;  %v3601_v19 = vpop.f32.mrf.mxu3  ;;  %v3882_v45 = vpop.f32.mrf.mxu0 }
 0x389   : > { %v3669_v0 = vadd.f32 %v3601_v19, %v3356_v23 }
 0x38a   : > { %v8404_v25 = vpop.f32.mrf.mxu1  ;;  %6214 = vmatmul.msk.f32.gmra.mxu0 %vm292_vm1, %v8406_v27  ;;  %v4522_v27 = vld [vmem:[#allocation2 + $0x30] sm:$0xff] }
 0x38b   : > { %6146 = vmatmul.msk.f32.gmra.mxu2 %vm292_vm1, %v8368_v15  ;;  %v8416_v9 = vadd.f32 %v3879_v13, %v3669_v0  ;;  %v4243_v15 = vld [vmem:[#allocation2 + $0x1a] sm:$0xff]  ;;  %v8428_v0 = vld [vmem:[#allocation2 + $0xc9] sm:$0xff] }
 0x38c   : > { %6180 = vmatmul.msk.f32.gmra.mxu3 %vm292_vm1, %v8410_v52  ;;  %v4244_v52 = vld [vmem:[#allocation2 + $0x22] sm:$0xff] }
 0x38d   : > { %9330 = vst [vmem:[#allocation60_spill] sm:$0xff] %v8416_v9  ;;  %6231 = vmatmul.msk.f32.gmra.mxu1 %vm292_vm1, %v8414_v2 }
 0x38e   : > { %v3358_v60 = vpop.f32.mrf.mxu2 }
 0x38f   : > { %v3359_v44 = vadd.f32 %v3358_v60, %v8123_v7  ;;  %v3604_v23 = vpop.f32.mrf.mxu3  ;;  %v3885_v19 = vpop.f32.mrf.mxu0 }
 0x391   : > { %v3670_v59 = vadd.f32 %v3604_v23, %v3359_v44 }
 0x392   : > { %v8423_v3 = vpop.f32.mrf.mxu1  ;;  %6319 = vmatmul.msk.f32.vlgmr.msra.gmra.mxu0 %vm292_vm1, %v8186_v49  ;;  %v4523_v49 = vld [vmem:[#allocation2 + $0x38] sm:$0xff] }
 0x393   : > { %6251 = vmatmul.msk.f32.vlgmr.msra.gmra.mxu2 %vm292_vm1, %v4243_v15  ;;  %v8430_v13 = vadd.f32 %v3882_v45, %v3670_v59  ;;  %v8441_v59 = vld [vmem:[#allocation2 + $0xd9] sm:$0xff] }
 0x394   : > { %6285 = vmatmul.msk.f32.vlgmr.msra.gmra.mxu3 %vm292_vm1, %v4522_v27 }
 0x395   : > { %9331 = vst [vmem:[#allocation61_spill] sm:$0xff] %v8430_v13  ;;  %6232 = vmatmul.msk.f32.gmra.mxu1 %vm292_vm1, %v8428_v0  ;;  %v8451_v13 = vld [vmem:[#allocation2 + $0x32] sm:$0xff] }
 0x396   : > { %v3361_v7 = vpop.f32.mrf.mxu2 }
 0x397   : > { %v3362_v60 = vadd.f32 %v3361_v7, %v8143_v21  ;;  %v3607_v44 = vpop.f32.mrf.mxu3  ;;  %v3888_v23 = vpop.f32.mrf.mxu0 }
 0x399   : > { %v3671_v9 = vadd.f32 %v3607_v44, %v3362_v60 }
 0x39a   : > { %v8436_v15 = vpop.f32.mrf.mxu1  ;;  %6320 = vmatmul.msk.f32.gmra.mxu0 %vm292_vm1, %v8205_v30  ;;  %v8457_v30 = vld [vmem:[#allocation2 + $0xe1] sm:$0xff] }
 0x39b   : > { %6252 = vmatmul.msk.f32.gmra.mxu2 %vm292_vm1, %v4244_v52  ;;  %v8443_v27 = vadd.f32 %v3885_v19, %v3671_v9  ;;  %v4524_v9 = vld [vmem:[#allocation2 + $0x48] sm:$0xff] }
 0x39c   : > { %6286 = vmatmul.msk.f32.gmra.mxu3 %vm292_vm1, %v4523_v49 }
 0x39d   : > { %9332 = vst [vmem:[#allocation62_spill] sm:$0xff] %v8443_v27  ;;  %6233 = vmatmul.msk.f32.gmra.mxu1 %vm292_vm1, %v8441_v59 }
 0x39e   : > { %v3364_v21 = vpop.f32.mrf.mxu2 }
 0x39f   : > { %v3365_v45 = vadd.f32 %v3364_v21, %v8160_v5  ;;  %v3610_v7 = vpop.f32.mrf.mxu3  ;;  %v3891_v60 = vpop.f32.mrf.mxu0 }
 0x3a1   : > { %v3672_v44 = vadd.f32 %v3610_v7, %v3365_v45 }
 0x3a2   : > { %v8449_v52 = vpop.f32.mrf.mxu1  ;;  %6321 = vmatmul.msk.f32.gmra.mxu0 %vm292_vm1, %v8224_v36 }
 0x3a3   : > { %6253 = vmatmul.msk.f32.gmra.mxu2 %vm292_vm1, %v8451_v13  ;;  %v8459_v19 = vadd.f32 %v3888_v23, %v3672_v44  ;;  %v6438_v23 = vld [vmem:[#allocation2 + $0x50] sm:$0xff] }
 0x3a4   : > { %6287 = vmatmul.msk.f32.gmra.mxu3 %vm292_vm1, %v4524_v9 }
 0x3a5   : > { %6234 = vmatmul.msk.f32.gmra.mxu1 %vm292_vm1, %v8457_v30 }
 0x3a6   : > { %v3367_v5 = vpop.f32.mrf.mxu2 }
 0x3a7   : > { %v3368_v49 = vadd.f32 %v3367_v5, %v8176_v62  ;;  %v3613_v21 = vpop.f32.mrf.mxu3  ;;  %v3894_v45 = vpop.f32.mrf.mxu0 }
 0x3a9   : > { %v3673_v7 = vadd.f32 %v3613_v21, %v3368_v49 }
 0x3aa   : > { %v8465_v27 = vpop.f32.mrf.mxu1  ;;  %6322 = vmatmul.msk.f32.gmra.mxu0 %vm292_vm1, %v8243_v12 }
 0x3ab   : > { %6254 = vmatmul.msk.f32.gmra.mxu2 %vm292_vm1, %v7875_v58  ;;  %v8471_v36 = vadd.f32 %v3891_v60, %v3673_v7 }
 0x3ac   : > { %6288 = vmatmul.msk.f32.gmra.mxu3 %vm292_vm1, %v6438_v23 }
 0x3ad   : > { %6235 = vmatmul.msk.f32.gmra.mxu1 %vm292_vm1, %v7878_v1 }
 0x3ae   : > { %v3370_v62 = vpop.f32.mrf.mxu2 }
 0x3af   : > { %v3371_v44 = vadd.f32 %v3370_v62, %v8195_v20  ;;  %v3616_v9 = vpop.f32.mrf.mxu3  ;;  %v3897_v5 = vpop.f32.mrf.mxu0 }
 0x3b1   : > { %v3674_v49 = vadd.f32 %v3616_v9, %v3371_v44 }
 0x3b2   : > { %v8477_v21 = vpop.f32.mrf.mxu1  ;;  %6323 = vmatmul.msk.f32.gmra.mxu0 %vm292_vm1, %v8262_v41 }
 0x3b3   : > { %6255 = vmatmul.msk.f32.gmra.mxu2 %vm292_vm1, %v7894_v35  ;;  %v8483_v58 = vadd.f32 %v3894_v45, %v3674_v49 }
 0x3b4   : > { %6289 = vmatmul.msk.f32.gmra.mxu3 %vm292_vm1, %v7891_v43 }
 0x3b5   : > { %6236 = vmatmul.msk.f32.gmra.mxu1 %vm292_vm1, %v7898_v48 }
 0x3b6   : > { %v3373_v1 = vpop.f32.mrf.mxu2 }
 0x3b7   : > { %v3374_v20 = vadd.f32 %v3373_v1, %v8214_v54  ;;  %v3619_v12 = vpop.f32.mrf.mxu3  ;;  %v3900_v60 = vpop.f32.mrf.mxu0 }
 0x3b9   : > { %v3675_v7 = vadd.f32 %v3619_v12, %v3374_v20 }
 0x3ba   : > { %v8490_v23 = vpop.f32.mrf.mxu1  ;;  %6324 = vmatmul.msk.f32.gmra.mxu0 %vm292_vm1, %v8281_v24 }
 0x3bb   : > { %6256 = vmatmul.msk.f32.gmra.mxu2 %vm292_vm1, %v7914_v37  ;;  %v8496_v35 = vadd.f32 %v3897_v5, %v3675_v7 }
 0x3bc   : > { %6290 = vmatmul.msk.f32.gmra.mxu3 %vm292_vm1, %v7911_v29 }
 0x3bd   : > { %6237 = vmatmul.msk.f32.gmra.mxu1 %vm292_vm1, %v7918_v16 }
 0x3be   : > { %v3376_v43 = vpop.f32.mrf.mxu2 }
 0x3bf   : > { %v3377_v48 = vadd.f32 %v3376_v43, %v8233_v55  ;;  %v3622_v54 = vpop.f32.mrf.mxu3  ;;  %v3903_v41 = vpop.f32.mrf.mxu0 }
 0x3c1   : > { %v3676_v45 = vadd.f32 %v3622_v54, %v3377_v48 }
 0x3c2   : > { %v8503_v62 = vpop.f32.mrf.mxu1  ;;  %6325 = vmatmul.msk.f32.gmra.mxu0 %vm292_vm1, %v8300_v47 }
 0x3c3   : > { %6257 = vmatmul.msk.f32.gmra.mxu2 %vm292_vm1, %v7935_v42  ;;  %v8509_v37 = vadd.f32 %v3900_v60, %v3676_v45 }
 0x3c4   : > { %6291 = vmatmul.msk.f32.gmra.mxu3 %vm292_vm1, %v7931_v22 }
 0x3c5   : > { %6238 = vmatmul.msk.f32.gmra.mxu1 %vm292_vm1, %v7939_v56 }
 0x3c6   : > { %v3379_v29 = vpop.f32.mrf.mxu2 }
 0x3c7   : > { %v3380_v16 = vadd.f32 %v3379_v29, %v8252_v40  ;;  %v3625_v55 = vpop.f32.mrf.mxu3  ;;  %v3906_v24 = vpop.f32.mrf.mxu0  ;;  %v9337_v29 = vld [vmem:[#allocation6_spill] sm:$0xff] }
 0x3c9   : > { %v3677_v44 = vadd.f32 %v3625_v55, %v3380_v16  ;;  %v9338_v55 = vld [vmem:[#allocation50_spill] sm:$0xff] }
 0x3ca   : > { %v8516_v9 = vpop.f32.mrf.mxu1  ;;  %6326 = vmatmul.msk.f32.gmra.mxu0 %vm292_vm1, %v8319_v28 }
 0x3cb   : > { %6258 = vmatmul.msk.f32.gmra.mxu2 %vm292_vm1, %v7961_v51  ;;  %v8522_v42 = vadd.f32 %v3903_v41, %v3677_v44 }
 0x3cc   : > { %6292 = vmatmul.msk.f32.gmra.mxu3 %vm292_vm1, %v7957_v6 }
 0x3cd   : > { %6239 = vmatmul.msk.f32.gmra.mxu1 %vm292_vm1, %v7965_v11 }
 0x3ce   : > { %v3382_v22 = vpop.f32.mrf.mxu2 }
 0x3cf   : > { %v3383_v56 = vadd.f32 %v3382_v22, %v8271_v50  ;;  %v3628_v40 = vpop.f32.mrf.mxu3  ;;  %v3909_v47 = vpop.f32.mrf.mxu0 }
 0x3d1   : > { %v3678_v5 = vadd.f32 %v3628_v40, %v3383_v56 }
 0x3d2   : > { %v8529_v49 = vpop.f32.mrf.mxu1  ;;  %6327 = vmatmul.msk.f32.gmra.mxu0 %vm292_vm1, %v8338_v18 }
 0x3d3   : > { %6259 = vmatmul.msk.f32.gmra.mxu2 %vm292_vm1, %v7987_v32  ;;  %v8535_v51 = vadd.f32 %v3906_v24, %v3678_v5  ;;  %v9340_v5 = vld [vmem:[#allocation7_spill] sm:$0xff] }
 0x3d4   : > { %6293 = vmatmul.msk.f32.gmra.mxu3 %vm292_vm1, %v7983_v53 }
 0x3d5   : > { %6240 = vmatmul.msk.f32.gmra.mxu1 %vm292_vm1, %v7991_v17 }
 0x3d6   : > { %v3385_v6 = vpop.f32.mrf.mxu2 }
 0x3d7   : > { %v3386_v11 = vadd.f32 %v3385_v6, %v8290_v57  ;;  %v3631_v50 = vpop.f32.mrf.mxu3  ;;  %v3912_v28 = vpop.f32.mrf.mxu0  ;;  %v9341_v6 = vld [vmem:[#allocation9_spill] sm:$0xff] }
 0x3d9   : > { %v3679_v1 = vadd.f32 %v3631_v50, %v3386_v11  ;;  %v9342_v50 = vld [vmem:[#allocation54_spill] sm:$0xff] }
 0x3da   : > { %v8542_v20 = vpop.f32.mrf.mxu1  ;;  %6328 = vmatmul.msk.f32.gmra.mxu0 %vm292_vm1, %v8357_v10 }
 0x3db   : > { %6260 = vmatmul.msk.f32.gmra.mxu2 %vm292_vm1, %v8008_v14  ;;  %v8548_v32 = vadd.f32 %v3909_v47, %v3679_v1  ;;  %v9339_v47 = vld [vmem:[#allocation8_spill] sm:$0xff] }
 0x3dc   : > { %6294 = vmatmul.msk.f32.gmra.mxu3 %vm292_vm1, %v8004_v33 }
 0x3dd   : > { %6241 = vmatmul.msk.f32.gmra.mxu1 %vm292_vm1, %v8012_v61 }
 0x3de   : > { %v3388_v53 = vpop.f32.mrf.mxu2 }
 0x3df   : > { %v3389_v17 = vadd.f32 %v3388_v53, %v8309_v4  ;;  %v3634_v57 = vpop.f32.mrf.mxu3  ;;  %v3915_v18 = vpop.f32.mrf.mxu0 }
 0x3e1   : > { %v3680_v12 = vadd.f32 %v3634_v57, %v3389_v17 }
 0x3e2   : > { %v8555_v60 = vpop.f32.mrf.mxu1  ;;  %6329 = vmatmul.msk.f32.gmra.mxu0 %vm292_vm1, %v8376_v31 }
 0x3e3   : > { %6261 = vmatmul.msk.f32.gmra.mxu2 %vm292_vm1, %v8029_v26  ;;  %v8561_v14 = vadd.f32 %v3912_v28, %v3680_v12  ;;  %v9345_v12 = vld [vmem:[#allocation38_spill] sm:$0xff] }
 0x3e4   : > { %6295 = vmatmul.msk.f32.gmra.mxu3 %vm292_vm1, %v8025_v39  ;;  %v9333_v39 = vld [vmem:[#allocation3_spill] sm:$0xff] }
 0x3e5   : > { %6242 = vmatmul.msk.f32.gmra.mxu1 %vm292_vm1, %v8033_v34 }
 0x3e6   : > { %v3391_v33 = vpop.f32.mrf.mxu2 }
 0x3e7   : > { %v3392_v61 = vadd.f32 %v3391_v33, %v8328_v38  ;;  %v3637_v4 = vpop.f32.mrf.mxu3  ;;  %v3918_v10 = vpop.f32.mrf.mxu0  ;;  %v9334_v38 = vld [vmem:[#allocation46_spill] sm:$0xff] }
 0x3e8   : > { %v9346_v33 = vld [vmem:[#allocation10_spill] sm:$0xff] }
 0x3e9   : > { %v3681_v7 = vadd.f32 %v3637_v4, %v3392_v61 }
 0x3ea   : > { %v8568_v43 = vpop.f32.mrf.mxu1  ;;  %6330 = vmatmul.msk.f32.gmra.mxu0 %vm292_vm1, %v8395_v8 }
 0x3eb   : > { %6262 = vmatmul.msk.f32.gmra.mxu2 %vm292_vm1, %v8050_v63  ;;  %v8574_v26 = vadd.f32 %v3915_v18, %v3681_v7  ;;  %v9335_v63 = vld [vmem:[#allocation5_spill] sm:$0xff]  ;;  %v9343_v18 = vld [vmem:[#allocation12_spill] sm:$0xff] }
 0x3ec   : > { %6296 = vmatmul.msk.f32.gmra.mxu3 %vm292_vm1, %v8046_v46  ;;  %v9336_v46 = vld [vmem:[#allocation4_spill] sm:$0xff] }
 0x3ed   : > { %6243 = vmatmul.msk.f32.gmra.mxu1 %vm292_vm1, %v9333_v39 }
 0x3ee   : > { %v3394_v34 = vpop.f32.mrf.mxu2 }
 0x3ef   : > { %v3395_v31 = vadd.f32 %v3394_v34, %v9334_v38  ;;  %v3640_v48 = vpop.f32.mrf.mxu3  ;;  %v3921_v54 = vpop.f32.mrf.mxu0  ;;  %v9347_v38 = vld [vmem:[#allocation11_spill] sm:$0xff] }
 0x3f1   : > { %v3682_v41 = vadd.f32 %v3640_v48, %v3395_v31  ;;  %v9349_v48 = vld [vmem:[#allocation14_spill] sm:$0xff] }
 0x3f2   : > { %v8581_v45 = vpop.f32.mrf.mxu1  ;;  %6331 = vmatmul.msk.f32.gmra.mxu0 %vm292_vm1, %v8414_v2 }
 0x3f3   : > { %6263 = vmatmul.msk.f32.gmra.mxu2 %vm292_vm1, %v9335_v63  ;;  %v8587_v8 = vadd.f32 %v3918_v10, %v3682_v41 }
 0x3f4   : > { %6297 = vmatmul.msk.f32.gmra.mxu3 %vm292_vm1, %v9336_v46 }
 0x3f5   : > { %6244 = vmatmul.msk.f32.gmra.mxu1 %vm292_vm1, %v9337_v29 }
 0x3f6   : > { %v3397_v16 = vpop.f32.mrf.mxu2 }
 0x3f7   : > { %v3398_v24 = vadd.f32 %v3397_v16, %v9338_v55  ;;  %v3643_v44 = vpop.f32.mrf.mxu3  ;;  %v3924_v22 = vpop.f32.mrf.mxu0  ;;  %v4816_v16 = vld [vmem:[#allocation2 + $0xf1] sm:$0xff]  ;;  %v8640_v55 = vld [vmem:[#allocation2 + $0x189] sm:$0xff] }
 0x3f9   : > { %v3683_v56 = vadd.f32 %v3643_v44, %v3398_v24  ;;  %v9352_v44 = vld [vmem:[#allocation13_spill] sm:$0xff] }
 0x3fa   : > { %v8594_v40 = vpop.f32.mrf.mxu1  ;;  %6332 = vmatmul.msk.f32.gmra.mxu0 %vm292_vm1, %v8428_v0 }
 0x3fb   : > { %6264 = vmatmul.msk.f32.gmra.mxu2 %vm292_vm1, %v9339_v47  ;;  %v8600_v2 = vadd.f32 %v3921_v54, %v3683_v56 }
 0x3fc   : > { %6298 = vmatmul.msk.f32.gmra.mxu3 %vm292_vm1, %v9340_v5 }
 0x3fd   : > { %6245 = vmatmul.msk.f32.gmra.mxu1 %vm292_vm1, %v9341_v6 }
 0x3fe   : > { %v3400_v11 = vpop.f32.mrf.mxu2 }
 0x3ff   : > { %v3401_v28 = vadd.f32 %v3400_v11, %v9342_v50  ;;  %v3646_v1 = vpop.f32.mrf.mxu3  ;;  %v3927_v53 = vpop.f32.mrf.mxu0 }
 0x401   : > { %v3684_v17 = vadd.f32 %v3646_v1, %v3401_v28  ;;  %v4817_v28 = vld [vmem:[#allocation2 + $0xf9] sm:$0xff] }
 0x402   : > { %v8607_v57 = vpop.f32.mrf.mxu1  ;;  %6333 = vmatmul.msk.f32.gmra.mxu0 %vm292_vm1, %v8441_v59  ;;  %v8626_v59 = vld [vmem:[#allocation2 + $0x181] sm:$0xff] }
 0x403   : > { %6265 = vmatmul.msk.f32.gmra.mxu2 %vm292_vm1, %v9343_v18  ;;  %v8613_v0 = vadd.f32 %v3924_v22, %v3684_v17  ;;  %v9354_v1 = vld [vmem:[#allocation17_spill] sm:$0xff]  ;;  %v9355_v17 = vld [vmem:[#allocation20_spill] sm:$0xff] }
 0x404   : > { %6299 = vmatmul.msk.f32.gmra.mxu3 %vm292_vm1, %v9345_v12 }
 0x405   : > { %9344 = vst [vmem:[#allocation3_spill] sm:$0xff] %v8613_v0  ;;  %6246 = vmatmul.msk.f32.gmra.mxu1 %vm292_vm1, %v9346_v33 }
 0x406   : > { %v3403_v61 = vpop.f32.mrf.mxu2 }
 0x407   : > { %v3404_v4 = vadd.f32 %v3403_v61, %v8404_v25  ;;  %v3649_v10 = vpop.f32.mrf.mxu3  ;;  %v3930_v7 = vpop.f32.mrf.mxu0 }
 0x409   : > { %v3685_v39 = vadd.f32 %v3649_v10, %v3404_v4 }
 0x40a   : > { %v8620_v34 = vpop.f32.mrf.mxu1  ;;  %6334 = vmatmul.msk.f32.gmra.mxu0 %vm292_vm1, %v8457_v30  ;;  %v9350_v30 = vld [vmem:[#allocation18_spill] sm:$0xff] }
 0x40b   : > { %6266 = vmatmul.msk.f32.gmra.mxu2 %vm292_vm1, %v9347_v38  ;;  %v8628_v31 = vadd.f32 %v3927_v53, %v3685_v39  ;;  %v4818_v39 = vld [vmem:[#allocation2 + $0x109] sm:$0xff]  ;;  %v9357_v38 = vld [vmem:[#allocation24_spill] sm:$0xff] }
 0x40c   : > { %6300 = vmatmul.msk.f32.gmra.mxu3 %vm292_vm1, %v9349_v48  ;;  %v5079_v48 = vld [vmem:[#allocation2 + $0x3a] sm:$0xff] }
 0x40d   : > { %9348 = vst [vmem:[#allocation46_spill] sm:$0xff] %v8628_v31  ;;  %6247 = vmatmul.msk.f32.gmra.mxu1 %vm292_vm1, %v8626_v59 }
 0x40e   : > { %v3406_v25 = vpop.f32.mrf.mxu2 }
 0x40f   : > { %v3407_v54 = vadd.f32 %v3406_v25, %v8423_v3  ;;  %v3652_v41 = vpop.f32.mrf.mxu3  ;;  %v4950_v63 = vpop.f32.mrf.mxu0  ;;  %v9353_v3 = vld [vmem:[#allocation16_spill] sm:$0xff] }
 0x410   : > { %v4211_v22 = vadd.f32 %v8436_v15, %v9353_v3  ;;  %v9356_v15 = vld [vmem:[#allocation15_spill] sm:$0xff] }
 0x411   : > { %v3686_v46 = vadd.f32 %v3652_v41, %v3407_v54  ;;  %v4212_v18 = vadd.f32 %v8449_v52, %v9356_v15  ;;  %v9359_v52 = vld [vmem:[#allocation22_spill] sm:$0xff]  ;;  %v4819_v3 = vld [vmem:[#allocation2 + $0x111] sm:$0xff] }
 0x412   : > { %v8635_v29 = vpop.f32.mrf.mxu1  ;;  %6335 = vmatmul.msk.f32.gmra.mxu0 %vm292_vm1, %v4816_v16  ;;  %v4213_v54 = vadd.f32 %v8465_v27, %v9359_v52  ;;  %v9362_v27 = vld [vmem:[#allocation21_spill] sm:$0xff] }
 0x413   : > { %6267 = vmatmul.msk.f32.gmra.mxu2 %vm292_vm1, %v9350_v30  ;;  %v8642_v24 = vadd.f32 %v3930_v7, %v3686_v46 }
 0x414   : > { %6301 = vmatmul.msk.f32.gmra.mxu3 %vm292_vm1, %v9352_v44 }
 0x415   : > { %9351 = vst [vmem:[#allocation5_spill] sm:$0xff] %v8642_v24  ;;  %6248 = vmatmul.msk.f32.gmra.mxu1 %vm292_vm1, %v8640_v55  ;;  %v6389_v24 = vld [vmem:[%s6514_s8 + $0x49] sm:$0xff] }
 0x416   : > { %v4393_v56 = vpop.f32.mrf.mxu2 }
 0x417   : > { %v4489_v47 = vadd.f32 %v4393_v56, %v4211_v22  ;;  %v4672_v5 = vpop.f32.mrf.mxu3  ;;  %v4953_v6 = vpop.f32.mrf.mxu0  ;;  %v9360_v22 = vld [vmem:[#allocation23_spill] sm:$0xff] }
 0x418   : > { %v5080_v56 = vld [vmem:[#allocation2 + $0x4a] sm:$0xff] }
 0x419   : > { %v4768_v11 = vadd.f32 %v4672_v5, %v4489_v47  ;;  %v9361_v5 = vld [vmem:[#allocation26_spill] sm:$0xff] }
 0x41a   : > { %v8650_v50 = vpop.f32.mrf.mxu1  ;;  %6336 = vmatmul.msk.f32.gmra.mxu0 %vm292_vm1, %v4817_v28 }
 0x41b   : > { %6268 = vmatmul.msk.f32.gmra.mxu2 %vm292_vm1, %v9354_v1  ;;  %v8655_v53 = vadd.f32 %v4950_v63, %v4768_v11 }
 0x41c   : > { %6302 = vmatmul.msk.f32.gmra.mxu3 %vm292_vm1, %v9355_v17 }
 0x41d   : > { %6353 = vmatmul.msk.f32.vlgmr.msra.gmra.mxu1 %vm292_vm1, %v8451_v13  ;;  %v9358_v13 = vld [vmem:[#allocation19_spill] sm:$0xff] }
 0x41e   : > { %v4396_v12 = vpop.f32.mrf.mxu2 }
 0x41f   : > { %v4490_v33 = vadd.f32 %v4396_v12, %v4212_v18  ;;  %v4675_v61 = vpop.f32.mrf.mxu3  ;;  %v4956_v4 = vpop.f32.mrf.mxu0  ;;  %v4820_v18 = vld [vmem:[#allocation2 + $0x121] sm:$0xff] }
 0x420   : > { %v9363_v12 = vld [vmem:[#allocation30_spill] sm:$0xff] }
 0x421   : > { %v4769_v10 = vadd.f32 %v4675_v61, %v4490_v33  ;;  %v5081_v33 = vld [vmem:[#allocation2 + $0x52] sm:$0xff] }
 0x422   : > { %v8663_v7 = vpop.f32.mrf.mxu1  ;;  %6337 = vmatmul.msk.f32.gmra.mxu0 %vm292_vm1, %v4818_v39 }
 0x423   : > { %6269 = vmatmul.msk.f32.gmra.mxu2 %vm292_vm1, %v9357_v38  ;;  %v8668_v25 = vadd.f32 %v4953_v6, %v4769_v10  ;;  %v4214_v6 = vadd.f32 %v8477_v21, %v9362_v27  ;;  %v9364_v10 = vld [vmem:[#allocation25_spill] sm:$0xff]  ;;  %v9365_v21 = vld [vmem:[#allocation28_spill] sm:$0xff] }
 0x424   : > { %6303 = vmatmul.msk.f32.gmra.mxu3 %vm292_vm1, %v9358_v13  ;;  %v4215_v39 = vadd.f32 %v8490_v23, %v9365_v21  ;;  %v9368_v23 = vld [vmem:[#allocation27_spill] sm:$0xff] }
 0x425   : > { %6354 = vmatmul.msk.f32.gmra.mxu1 %vm292_vm1, %v5079_v48 }
 0x426   : > { %v4399_v41 = vpop.f32.mrf.mxu2 }
 0x427   : > { %v4491_v63 = vadd.f32 %v4399_v41, %v4213_v54  ;;  %v4678_v46 = vpop.f32.mrf.mxu3  ;;  %v4959_v44 = vpop.f32.mrf.mxu0  ;;  %v4821_v41 = vld [vmem:[#allocation2 + $0x129] sm:$0xff] }
 0x429   : > { %v4770_v16 = vadd.f32 %v4678_v46, %v4491_v63  ;;  %v9366_v63 = vld [vmem:[#allocation29_spill] sm:$0xff] }
 0x42a   : > { %v8675_v30 = vpop.f32.mrf.mxu1  ;;  %6338 = vmatmul.msk.f32.gmra.mxu0 %vm292_vm1, %v4819_v3  ;;  %v5082_v46 = vld [vmem:[#allocation2 + $0x62] sm:$0xff]  ;;  %v4216_v3 = vadd.f32 %v8503_v62, %v9368_v23 }
 0x42b   : > { %6270 = vmatmul.msk.f32.gmra.mxu2 %vm292_vm1, %v9360_v22  ;;  %v8680_v47 = vadd.f32 %v4956_v4, %v4770_v16  ;;  %v9371_v62 = vld [vmem:[#allocation34_spill] sm:$0xff] }
 0x42c   : > { %6304 = vmatmul.msk.f32.gmra.mxu3 %vm292_vm1, %v9361_v5 }
 0x42d   : > { %6355 = vmatmul.msk.f32.gmra.mxu1 %vm292_vm1, %v5080_v56 }
 0x42e   : > { %v4402_v11 = vpop.f32.mrf.mxu2 }
 0x42f   : > { %v4492_v28 = vadd.f32 %v4402_v11, %v4214_v6  ;;  %v4681_v1 = vpop.f32.mrf.mxu3  ;;  %v4962_v4 = vpop.f32.mrf.mxu0 }
 0x431   : > { %v4771_v17 = vadd.f32 %v4681_v1, %v4492_v28  ;;  %v4822_v28 = vld [vmem:[#allocation2 + $0x139] sm:$0xff] }
 0x432   : > { %v8687_v15 = vpop.f32.mrf.mxu1  ;;  %6339 = vmatmul.msk.f32.gmra.mxu0 %vm292_vm1, %v4820_v18  ;;  %v9369_v1 = vld [vmem:[#allocation36_spill] sm:$0xff] }
 0x433   : > { %6271 = vmatmul.msk.f32.gmra.mxu2 %vm292_vm1, %v9363_v12  ;;  %v8692_v61 = vadd.f32 %v4959_v44, %v4771_v17  ;;  %v9367_v44 = vld [vmem:[#allocation32_spill] sm:$0xff]  ;;  %v5083_v17 = vld [vmem:[#allocation2 + $0x6a] sm:$0xff] }
 0x434   : > { %6305 = vmatmul.msk.f32.gmra.mxu3 %vm292_vm1, %v9364_v10  ;;  %v9370_v12 = vld [vmem:[#allocation31_spill] sm:$0xff] }
 0x435   : > { %6356 = vmatmul.msk.f32.gmra.mxu1 %vm292_vm1, %v5081_v33  ;;  %v4217_v33 = vadd.f32 %v8516_v9, %v9371_v62  ;;  %v9374_v9 = vld [vmem:[#allocation33_spill] sm:$0xff] }
 0x436   : > { %v4405_v38 = vpop.f32.mrf.mxu2  ;;  %v4825_v62 = vld [vmem:[#allocation2 + $0x159] sm:$0xff] }
 0x437   : > { %v4493_v48 = vadd.f32 %v4405_v38, %v4215_v39  ;;  %v4684_v13 = vpop.f32.mrf.mxu3  ;;  %v4965_v22 = vpop.f32.mrf.mxu0 }
 0x439   : > { %v4772_v52 = vadd.f32 %v4684_v13, %v4493_v48  ;;  %v4823_v13 = vld [vmem:[#allocation2 + $0x141] sm:$0xff] }
 0x43a   : > { %v8699_v54 = vpop.f32.mrf.mxu1  ;;  %6340 = vmatmul.msk.f32.gmra.mxu0 %vm292_vm1, %v4821_v41  ;;  %v5084_v41 = vld [vmem:[#allocation2 + $0x7a] sm:$0xff] }
 0x43b   : > { %6272 = vmatmul.msk.f32.gmra.mxu2 %vm292_vm1, %v9366_v63  ;;  %v8704_v16 = vadd.f32 %v4962_v4, %v4772_v52  ;;  %v9372_v52 = vld [vmem:[#allocation35_spill] sm:$0xff] }
 0x43c   : > { %6306 = vmatmul.msk.f32.gmra.mxu3 %vm292_vm1, %v9367_v44  ;;  %v4218_v44 = vadd.f32 %v8529_v49, %v9374_v9  ;;  %v9381_v9 = vld [vmem:[#allocation52_spill] sm:$0xff] }
 0x43d   : > { %6357 = vmatmul.msk.f32.gmra.mxu1 %vm292_vm1, %v5082_v46  ;;  %v9373_v46 = vld [vmem:[#allocation39_spill] sm:$0xff] }
 0x43e   : > { %v4408_v56 = vpop.f32.mrf.mxu2 }
 0x43f   : > { %v4494_v5 = vadd.f32 %v4408_v56, %v4216_v3  ;;  %v4687_v27 = vpop.f32.mrf.mxu3  ;;  %v4968_v39 = vpop.f32.mrf.mxu0 }
 0x441   : > { %v4773_v6 = vadd.f32 %v4687_v27, %v4494_v5 }
 0x442   : > { %v8711_v11 = vpop.f32.mrf.mxu1  ;;  %6341 = vmatmul.msk.f32.gmra.mxu0 %vm292_vm1, %v4822_v28  ;;  %v9375_v28 = vld [vmem:[#allocation41_spill] sm:$0xff] }
 0x443   : > { %6273 = vmatmul.msk.f32.gmra.mxu2 %vm292_vm1, %v9369_v1  ;;  %v8716_v18 = vadd.f32 %v4965_v22, %v4773_v6  ;;  %v4824_v6 = vld [vmem:[#allocation2 + $0x151] sm:$0xff]  ;;  %v5085_v1 = vld [vmem:[#allocation2 + $0x82] sm:$0xff] }
 0x444   : > { %6307 = vmatmul.msk.f32.gmra.mxu3 %vm292_vm1, %v9370_v12  ;;  %v9376_v12 = vld [vmem:[#allocation40_spill] sm:$0xff] }
 0x445   : > { %6358 = vmatmul.msk.f32.gmra.mxu1 %vm292_vm1, %v5083_v17 }
 0x446   : > { %v4411_v4 = vpop.f32.mrf.mxu2 }
 0x447   : > { %v4495_v10 = vadd.f32 %v4411_v4, %v4217_v33  ;;  %v4690_v21 = vpop.f32.mrf.mxu3  ;;  %v4971_v27 = vpop.f32.mrf.mxu0  ;;  %v9377_v33 = vld [vmem:[#allocation44_spill] sm:$0xff] }
 0x448   : > { %v5086_v4 = vld [vmem:[#allocation2 + $0x92] sm:$0xff] }
 0x449   : > { %v4774_v38 = vadd.f32 %v4690_v21, %v4495_v10  ;;  %v9378_v10 = vld [vmem:[#allocation43_spill] sm:$0xff] }
 0x44a   : > { %v8723_v48 = vpop.f32.mrf.mxu1  ;;  %6342 = vmatmul.msk.f32.gmra.mxu0 %vm292_vm1, %v4823_v13  ;;  %v5087_v13 = vld [vmem:[#allocation2 + $0x9a] sm:$0xff] }
 0x44b   : > { %6274 = vmatmul.msk.f32.gmra.mxu2 %vm292_vm1, %v9372_v52  ;;  %v8728_v63 = vadd.f32 %v4968_v39, %v4774_v38  ;;  %v4826_v39 = vld [vmem:[#allocation2 + $0x169] sm:$0xff]  ;;  %v9379_v38 = vld [vmem:[#allocation48_spill] sm:$0xff] }
 0x44c   : > { %6308 = vmatmul.msk.f32.gmra.mxu3 %vm292_vm1, %v9373_v46  ;;  %v9380_v52 = vld [vmem:[#allocation47_spill] sm:$0xff] }
 0x44d   : > { %6359 = vmatmul.msk.f32.gmra.mxu1 %vm292_vm1, %v5084_v41  ;;  %v4827_v46 = vld [vmem:[#allocation2 + $0x171] sm:$0xff] }
 0x44e   : > { %v4414_v23 = vpop.f32.mrf.mxu2 }
 0x44f   : > { %v4496_v3 = vadd.f32 %v4414_v23, %v4218_v44  ;;  %v4693_v22 = vpop.f32.mrf.mxu3  ;;  %v5088_v44 = vld [vmem:[#allocation2 + $0xaa] sm:$0xff] }
 0x450   : > { %v9382_v23 = vld [vmem:[#allocation51_spill] sm:$0xff] }
 0x451   : > { %v4775_v56 = vadd.f32 %v4693_v22, %v4496_v3  ;;  %v9383_v22 = vld [vmem:[#allocation56_spill] sm:$0xff] }
 0x452   : > { %v8735_v5 = vpop.f32.mrf.mxu1  ;;  %6343 = vmatmul.msk.f32.gmra.mxu0 %vm292_vm1, %v4824_v6 }
 0x453   : > { %6275 = vmatmul.msk.f32.gmra.mxu2 %vm292_vm1, %v9375_v28  ;;  %v8740_v17 = vadd.f32 %v4971_v27, %v4775_v56  ;;  %v5089_v56 = vld [vmem:[#allocation2 + $0xb2] sm:$0xff] }
 0x454   : > { %6309 = vmatmul.msk.f32.gmra.mxu3 %vm292_vm1, %v9376_v12  ;;  %v9384_v27 = vld [vmem:[#allocation55_spill] sm:$0xff]  ;;  %v9387_v12 = vld [vmem:[#allocation58_spill] sm:$0xff] }
 0x455   : > { %6360 = vmatmul.msk.f32.gmra.mxu1 %vm292_vm1, %v5085_v1  ;;  %v9386_v28 = vld [vmem:[#allocation59_spill] sm:$0xff]  ;;  %v5090_v1 = vld [vmem:[#allocation2 + $0xc2] sm:$0xff] }
 0x45a   : > { %v8745_v49 = vpop.f32.mrf.mxu1  ;;  %6344 = vmatmul.msk.f32.gmra.mxu0 %vm292_vm1, %v4825_v62 }
 0x45b   : > { %6276 = vmatmul.msk.f32.gmra.mxu2 %vm292_vm1, %v9377_v33  ;;  %v4552_v33 = vld [vmem:[#allocation2 + $0x198] sm:$0xff] }
 0x45c   : > { %6310 = vmatmul.msk.f32.gmra.mxu3 %vm292_vm1, %v9378_v10  ;;  %v5091_v10 = vld [vmem:[#allocation2 + $0xca] sm:$0xff] }
 0x45d   : > { %6361 = vmatmul.msk.f32.gmra.mxu1 %vm292_vm1, %v5086_v4  ;;  %v8789_v4 = vld [vmem:[#allocation2 + $0x182] sm:$0xff] }
 0x462   : > { %v8753_v21 = vpop.f32.mrf.mxu1  ;;  %6345 = vmatmul.msk.f32.gmra.mxu0 %vm292_vm1, %v4826_v39 }
 0x463   : > { %6277 = vmatmul.msk.f32.gmra.mxu2 %vm292_vm1, %v9379_v38  ;;  %v4553_v38 = vld [vmem:[#allocation2 + $0x1a0] sm:$0xff] }
 0x464   : > { %6311 = vmatmul.msk.f32.gmra.mxu3 %vm292_vm1, %v9380_v52  ;;  %v5092_v52 = vld [vmem:[#allocation2 + $0xda] sm:$0xff] }
 0x465   : > { %6362 = vmatmul.msk.f32.gmra.mxu1 %vm292_vm1, %v5087_v13  ;;  %v8798_v13 = vld [vmem:[#allocation2 + $0x18a] sm:$0xff] }
 0x46a   : > { %v8761_v41 = vpop.f32.mrf.mxu1  ;;  %6346 = vmatmul.msk.f32.gmra.mxu0 %vm292_vm1, %v4827_v46 }
 0x46b   : > { %6278 = vmatmul.msk.f32.gmra.mxu2 %vm292_vm1, %v9381_v9  ;;  %v5093_v9 = vld [vmem:[#allocation2 + $0xe2] sm:$0xff] }
 0x46c   : > { %6312 = vmatmul.msk.f32.gmra.mxu3 %vm292_vm1, %v9382_v23 }
 0x46d   : > { %6363 = vmatmul.msk.f32.gmra.mxu1 %vm292_vm1, %v5088_v44  ;;  %v8811_v44 = vld [vmem:[%s9134_s4] ss:$0 sm:$0xff] }
 0x472   : > { %v8769_v3 = vpop.f32.mrf.mxu1  ;;  %6347 = vmatmul.msk.f32.gmra.mxu0 %vm292_vm1, %v8626_v59  ;;  %v4830_v59 = vld [vmem:[#allocation2 + $0x199] sm:$0xff] }
 0x473   : > { %6279 = vmatmul.msk.f32.gmra.mxu2 %vm292_vm1, %v9383_v22 }
 0x474   : > { %6313 = vmatmul.msk.f32.gmra.mxu3 %vm292_vm1, %v9384_v27  ;;  %v5094_v27 = vld [vmem:[#allocation2 + $0xf2] sm:$0xff] }
 0x475   : > { %6364 = vmatmul.msk.f32.gmra.mxu1 %vm292_vm1, %v5089_v56  ;;  %v8817_v56 = vld [vmem:[%s9134_s4 + $0x1] ss:$0 sm:$0xff] }
 0x47a   : > { %v8778_v6 = vpop.f32.mrf.mxu1  ;;  %6348 = vmatmul.msk.f32.gmra.mxu0 %vm292_vm1, %v8640_v55  ;;  %v4831_v55 = vld [vmem:[#allocation2 + $0x1a1] sm:$0xff] }
 0x47b   : > { %9385 = vst [vmem:[#allocation4_spill] sm:$0xff] %v8778_v6  ;;  %6280 = vmatmul.msk.f32.gmra.mxu2 %vm292_vm1, %v9386_v28 }
 0x47c   : > { %6314 = vmatmul.msk.f32.gmra.mxu3 %vm292_vm1, %v9387_v12 }
 0x47d   : > { %6365 = vmatmul.msk.f32.gmra.mxu1 %vm292_vm1, %v5090_v1  ;;  %v6385_v1 = vld [vmem:[%s6514_s8 + $0x19] sm:$0xff] }
 0x482   : > { %v8787_v62 = vpop.f32.mrf.mxu1  ;;  %6349 = vmatmul.msk.f32.gmra.mxu0 %vm292_vm1, %v4830_v59  ;;  %v8824_v59 = vpop.f32.mrf.mxu2 }
 0x483   : > { %9388 = vst [vmem:[#allocation6_spill] sm:$0xff] %v8787_v62  ;;  %6281 = vmatmul.msk.f32.gmra.mxu2 %vm292_vm1, %v8789_v4  ;;  %v9391_v62 = vld [vmem:[#allocation37_spill] sm:$0xff] }
 0x484   : > { %6315 = vmatmul.msk.f32.gmra.mxu3 %vm292_vm1, %v4552_v33 }
 0x485   : > { %6366 = vmatmul.msk.f32.gmra.mxu1 %vm292_vm1, %v5091_v10 }
 0x48a   : > { %v8796_v39 = vpop.f32.mrf.mxu1  ;;  %6350 = vmatmul.msk.f32.gmra.mxu0 %vm292_vm1, %v4831_v55  ;;  %v5095_v55 = vld [vmem:[#allocation2 + $0xfa] sm:$0xff] }
 0x48b   : > { %9389 = vst [vmem:[#allocation50_spill] sm:$0xff] %v8796_v39  ;;  %6282 = vmatmul.msk.f32.gmra.mxu2 %vm292_vm1, %v8798_v13 }
 0x48c   : > { %6316 = vmatmul.msk.f32.gmra.mxu3 %vm292_vm1, %v4553_v38 }
 0x48d   : > { %6367 = vmatmul.msk.f32.gmra.mxu1 %vm292_vm1, %v5092_v52  ;;  %v8836_v52 = vpop.f32.mrf.mxu3 }
 0x492   : > { %v8805_v46 = vpop.f32.mrf.mxu1 }
 0x493   : > { %9390 = vst [vmem:[#allocation8_spill] sm:$0xff] %v8805_v46 }
 0x495   : > { %6368 = vmatmul.msk.f32.gmra.mxu1 %vm292_vm1, %v5093_v9  ;;  %v6386_v9 = vld [vmem:[%s6514_s8 + $0x21] sm:$0xff] }
 0x49a   : > { %v5228_v23 = vpop.f32.mrf.mxu1 }
 0x49b   : > { %v5324_v22 = vadd.f32 %v5228_v23, %v8655_v53 }
 0x49d   : > { %v5358_v28 = vmul.f32 %v8811_v44, %v5324_v22  ;;  %6369 = vmatmul.msk.f32.gmra.mxu1 %vm292_vm1, %v5094_v27  ;;  %v8840_v22 = vpop.f32.mrf.mxu0 }
 0x49f   : > { %v5392_v12 = vadd.f32 %v8817_v56, %v5358_v28  ;;  %v8842_v28 = vpop.f32.mrf.mxu2 }
 0x4a1   : > { %v5456_v53 = vadd.f32 %v6385_v1, %v5392_v12  ;;  %v5096_v12 = vld [vmem:[#allocation2 + $0x10a] sm:$0xff] }
 0x4a2   : > { %v5231_v33 = vpop.f32.mrf.mxu1 }
 0x4a3   : > { %5488 = vst.msk [vmem:[%s8829_s30] sm:$0xff] %vm292_vm1, %v5456_v53  ;;  %v5325_v10 = vadd.f32 %v5231_v33, %v8668_v25  ;;  %v6387_v33 = vld [vmem:[%s6514_s8 + $0x31] sm:$0xff] }
 0x4a5   : > { %v5359_v38 = vmul.f32 %v8811_v44, %v5325_v10  ;;  %6370 = vmatmul.msk.f32.gmra.mxu1 %vm292_vm1, %v5095_v55  ;;  %v8851_v55 = vpop.f32.mrf.mxu3 }
 0x4a7   : > { %v5393_v23 = vadd.f32 %v8817_v56, %v5359_v38 }
 0x4a9   : > { %v5457_v27 = vadd.f32 %v6386_v9, %v5393_v23  ;;  %v8853_v23 = vpop.f32.mrf.mxu0 }
 0x4aa   : > { %v5234_v1 = vpop.f32.mrf.mxu1 }
 0x4ab   : > { %5489 = vst.msk [vmem:[%s8829_s30 + $0x8] sm:$0xff] %vm292_vm1, %v5457_v27  ;;  %v5326_v25 = vadd.f32 %v5234_v1, %v8680_v47  ;;  %v8858_v27 = vpop.f32.mrf.mxu2  ;;  %v5097_v1 = vld [vmem:[#allocation2 + $0x112] sm:$0xff] }
 0x4ad   : > { %v5360_v53 = vmul.f32 %v8811_v44, %v5326_v25  ;;  %6371 = vmatmul.msk.f32.gmra.mxu1 %vm292_vm1, %v5096_v12  ;;  %v6388_v12 = vld [vmem:[%s6514_s8 + $0x39] sm:$0xff] }
 0x4af   : > { %v5394_v10 = vadd.f32 %v8817_v56, %v5360_v53 }
 0x4b1   : > { %v5458_v38 = vadd.f32 %v6387_v33, %v5394_v10  ;;  %v8864_v10 = vpop.f32.mrf.mxu3 }
 0x4b2   : > { %v5237_v9 = vpop.f32.mrf.mxu1 }
 0x4b3   : > { %5490 = vst.msk [vmem:[%s8829_s30 + $0x10] sm:$0xff] %vm292_vm1, %v5458_v38  ;;  %v5327_v47 = vadd.f32 %v5237_v9, %v8692_v61  ;;  %v5098_v38 = vld [vmem:[#allocation2 + $0x122] sm:$0xff]  ;;  %v8869_v9 = vpop.f32.mrf.mxu0 }
 0x4b5   : > { %v5361_v25 = vmul.f32 %v8811_v44, %v5327_v47  ;;  %6372 = vmatmul.msk.f32.gmra.mxu1 %vm292_vm1, %v5097_v1  ;;  %v8873_v1 = vpop.f32.mrf.mxu2 }
 0x4b7   : > { %v5395_v53 = vadd.f32 %v8817_v56, %v5361_v25 }
 0x4b9   : > { %v5459_v33 = vadd.f32 %v6388_v12, %v5395_v53 }
 0x4ba   : > { %v5240_v46 = vpop.f32.mrf.mxu1 }
 0x4bb   : > { %5491 = vst.msk [vmem:[%s8829_s30 + $0x18] sm:$0xff] %vm292_vm1, %v5459_v33  ;;  %v5328_v61 = vadd.f32 %v5240_v46, %v8704_v16  ;;  %v8880_v46 = vpop.f32.mrf.mxu3  ;;  %v5099_v33 = vld [vmem:[#allocation2 + $0x12a] sm:$0xff]  ;;  %v8885_v39 = vpop.f32.mrf.mxu0 }
 0x4bd   : > { %v5362_v47 = vmul.f32 %v8811_v44, %v5328_v61  ;;  %6373 = vmatmul.msk.f32.gmra.mxu1 %vm292_vm1, %v5098_v38  ;;  %v6390_v38 = vld [vmem:[%s6514_s8 + $0x51] sm:$0xff] }
 0x4bf   : > { %v5396_v25 = vadd.f32 %v8817_v56, %v5362_v47  ;;  %v8888_v47 = vpop.f32.mrf.mxu2 }
 0x4c1   : > { %v5460_v12 = vadd.f32 %v6389_v24, %v5396_v25 }
 0x4c2   : > { %v5243_v53 = vpop.f32.mrf.mxu1 }
 0x4c3   : > { %5492 = vst.msk [vmem:[%s8829_s30 + $0x20] sm:$0xff] %vm292_vm1, %v5460_v12  ;;  %v5329_v16 = vadd.f32 %v5243_v53, %v8716_v18  ;;  %v5100_v12 = vld [vmem:[#allocation2 + $0x13a] sm:$0xff]  ;;  %v8902_v0 = vpop.f32.mrf.mxu0 }
 0x4c5   : > { %v5363_v61 = vmul.f32 %v8811_v44, %v5329_v16  ;;  %6374 = vmatmul.msk.f32.gmra.mxu1 %vm292_vm1, %v5099_v33  ;;  %v8895_v16 = vpop.f32.mrf.mxu3  ;;  %v6391_v33 = vld [vmem:[%s6514_s8 + $0x61] sm:$0xff] }
 0x4c7   : > { %v5397_v31 = vadd.f32 %v8817_v56, %v5363_v61  ;;  %v4219_v61 = vadd.f32 %v8542_v20, %v9391_v62  ;;  %v6392_v62 = vld [vmem:[%s6514_s8 + $0x69] sm:$0xff] }
 0x4c9   : > { %v5461_v24 = vadd.f32 %v6390_v38, %v5397_v31  ;;  %v4497_v38 = vadd.f32 %v8824_v59, %v4219_v61  ;;  %v9392_v59 = vld [vmem:[#allocation42_spill] sm:$0xff] }
 0x4ca   : > { %v5246_v25 = vpop.f32.mrf.mxu1 }
 0x4cb   : > { %5493 = vst.msk [vmem:[%s8829_s30 + $0x28] sm:$0xff] %vm292_vm1, %v5461_v24  ;;  %v5330_v18 = vadd.f32 %v5246_v25, %v8728_v63  ;;  %v8904_v63 = vpop.f32.mrf.mxu2  ;;  %v4776_v6 = vadd.f32 %v8836_v52, %v4497_v38  ;;  %v8920_v52 = vpop.f32.mrf.mxu0 }
 0x4cd   : > { %v5364_v53 = vmul.f32 %v8811_v44, %v5330_v18  ;;  %6375 = vmatmul.msk.f32.gmra.mxu1 %vm292_vm1, %v5100_v12  ;;  %v5101_v12 = vld [vmem:[#allocation2 + $0x142] sm:$0xff]  ;;  %v8916_v61 = vpop.f32.mrf.mxu3 }
 0x4cf   : > { %v5398_v31 = vadd.f32 %v8817_v56, %v5364_v53  ;;  %v4220_v53 = vadd.f32 %v8555_v60, %v9392_v59 }
 0x4d1   : > { %v5462_v24 = vadd.f32 %v6391_v33, %v5398_v31  ;;  %v4498_v31 = vadd.f32 %v8842_v28, %v4220_v53  ;;  %v6393_v28 = vld [vmem:[%s6514_s8 + $0x79] sm:$0xff] }
 0x4d2   : > { %v5249_v25 = vpop.f32.mrf.mxu1 }
 0x4d3   : > { %5494 = vst.msk [vmem:[%s8829_s30 + $0x30] sm:$0xff] %vm292_vm1, %v5462_v24  ;;  %v5331_v18 = vadd.f32 %v5249_v25, %v8740_v17  ;;  %v5054_v17 = vadd.f32 %v8840_v22, %v4776_v6  ;;  %v4777_v60 = vadd.f32 %v8851_v55, %v4498_v31  ;;  %v5103_v31 = vld [vmem:[#allocation2 + $0x15a] sm:$0xff] }
 0x4d5   : > { %v5365_v20 = vmul.f32 %v8811_v44, %v5331_v18  ;;  %6376 = vmatmul.msk.f32.gmra.mxu1 %vm292_vm1, %v5101_v12  ;;  %v8924_v18 = vpop.f32.mrf.mxu2  ;;  %v5102_v12 = vld [vmem:[#allocation2 + $0x152] sm:$0xff] }
 0x4d7   : > { %v5399_v33 = vadd.f32 %v8817_v56, %v5365_v20 }
 0x4d9   : > { %v5463_v24 = vadd.f32 %v6392_v62, %v5399_v33  ;;  %v9393_v62 = vld [vmem:[#allocation45_spill] sm:$0xff]  ;;  %v5055_v33 = vadd.f32 %v8853_v23, %v4777_v60 }
 0x4da   : > { %v5252_v25 = vpop.f32.mrf.mxu1  ;;  %v4221_v6 = vadd.f32 %v8568_v43, %v9393_v62  ;;  %v6394_v23 = vld [vmem:[%s6514_s8 + $0x81] sm:$0xff] }
 0x4db   : > { %5495 = vst.msk [vmem:[%s8829_s30 + $0x38] sm:$0xff] %vm292_vm1, %v5463_v24  ;;  %v5332_v38 = vadd.f32 %v5252_v25, %v5054_v17  ;;  %v8935_v24 = vpop.f32.mrf.mxu3 }
 0x4dc   : > { %v4499_v59 = vadd.f32 %v8858_v27, %v4221_v6 }
 0x4dd   : > { %v5366_v20 = vmul.f32 %v8811_v44, %v5332_v38  ;;  %6377 = vmatmul.msk.f32.gmra.mxu1 %vm292_vm1, %v5102_v12  ;;  %v8940_v38 = vpop.f32.mrf.mxu0  ;;  %v8944_v27 = vpop.f32.mrf.mxu2  ;;  %v9394_v12 = vld [vmem:[#allocation49_spill] sm:$0xff] }
 0x4de   : > { %v4778_v25 = vadd.f32 %v8864_v10, %v4499_v59  ;;  %v4222_v60 = vadd.f32 %v8581_v45, %v9394_v12  ;;  %v6395_v45 = vld [vmem:[%s6514_s8 + $0x91] sm:$0xff] }
 0x4df   : > { %v5400_v22 = vadd.f32 %v8817_v56, %v5366_v20 }
 0x4e0   : > { %v5056_v10 = vadd.f32 %v8869_v9, %v4778_v25 }
 0x4e1   : > { %v5464_v53 = vadd.f32 %v6393_v28, %v5400_v22  ;;  %v4500_v28 = vadd.f32 %v8873_v1, %v4222_v60 }
 0x4e2   : > { %v5255_v17 = vpop.f32.mrf.mxu1 }
 0x4e3   : > { %5496 = vst.msk [vmem:[%s8829_s30 + $0x40] sm:$0xff] %vm292_vm1, %v5464_v53  ;;  %v5333_v55 = vadd.f32 %v5255_v17, %v5055_v33  ;;  %v4717_v59 = vpop.f32.mrf.mxu3  ;;  %v5104_v53 = vld [vmem:[#allocation2 + $0x16a] sm:$0xff]  ;;  %v4779_v33 = vadd.f32 %v8880_v46, %v4500_v28 }
 0x4e5   : > { %v5367_v43 = vmul.f32 %v8811_v44, %v5333_v55  ;;  %6378 = vmatmul.msk.f32.gmra.mxu1 %vm292_vm1, %v5103_v31  ;;  %v9395_v55 = vld [vmem:[#allocation53_spill] sm:$0xff]  ;;  %v8960_v31 = vpop.f32.mrf.mxu0  ;;  %v4441_v25 = vpop.f32.mrf.mxu2  ;;  %v5057_v12 = vadd.f32 %v8885_v39, %v4779_v33 }
 0x4e6   : > { %v4223_v1 = vadd.f32 %v8594_v40, %v9395_v55 }
 0x4e7   : > { %v5401_v20 = vadd.f32 %v8817_v56, %v5367_v43 }
 0x4e8   : > { %v4501_v43 = vadd.f32 %v8888_v47, %v4223_v1 }
 0x4e9   : > { %v5465_v62 = vadd.f32 %v6394_v23, %v5401_v20  ;;  %v5105_v20 = vld [vmem:[#allocation2 + $0x172] sm:$0xff] }
 0x4ea   : > { %v5258_v6 = vpop.f32.mrf.mxu1  ;;  %v4780_v28 = vadd.f32 %v8895_v16, %v4501_v43 }
 0x4eb   : > { %5497 = vst.msk [vmem:[%s8829_s30 + $0x48] sm:$0xff] %vm292_vm1, %v5465_v62  ;;  %v5334_v22 = vadd.f32 %v5258_v6, %v5056_v10  ;;  %v4720_v62 = vpop.f32.mrf.mxu3  ;;  %v6396_v10 = vld [vmem:[%s6514_s8 + $0x99] sm:$0xff] }
 0x4ec   : > { %v9396_v6 = vld [vmem:[#allocation57_spill] sm:$0xff] }
 0x4ed   : > { %v5368_v17 = vmul.f32 %v8811_v44, %v5334_v22  ;;  %6379 = vmatmul.msk.f32.gmra.mxu1 %vm292_vm1, %v5104_v53  ;;  %v4224_v47 = vadd.f32 %v8607_v57, %v9396_v6  ;;  %v4998_v53 = vpop.f32.mrf.mxu0  ;;  %v6397_v57 = vld [vmem:[%s6514_s8 + $0xa9] sm:$0xff]  ;;  %v9398_v6 = vld [vmem:[#allocation61_spill] sm:$0xff] }
 0x4ef   : > { %v5402_v9 = vadd.f32 %v8817_v56, %v5368_v17  ;;  %v4502_v22 = vadd.f32 %v8904_v63, %v4224_v47  ;;  %v5058_v17 = vadd.f32 %v8902_v0, %v4780_v28  ;;  %v9397_v63 = vld [vmem:[#allocation60_spill] sm:$0xff] }
 0x4f0   : > { %v4225_v43 = vadd.f32 %v8620_v34, %v9397_v63  ;;  %v6398_v34 = vld [vmem:[%s6514_s8 + $0xb1] sm:$0xff] }
 0x4f1   : > { %v5466_v23 = vadd.f32 %v6395_v45, %v5402_v9  ;;  %v4444_v45 = vpop.f32.mrf.mxu2  ;;  %v4781_v1 = vadd.f32 %v8916_v61, %v4502_v22 }
 0x4f2   : > { %v5261_v46 = vpop.f32.mrf.mxu1 }
 0x4f3   : > { %5498 = vst.msk [vmem:[%s8829_s30 + $0x50] sm:$0xff] %vm292_vm1, %v5466_v23  ;;  %v5335_v60 = vadd.f32 %v5261_v46, %v5057_v12  ;;  %v4723_v23 = vpop.f32.mrf.mxu3  ;;  %v4503_v12 = vadd.f32 %v8924_v18, %v4225_v43  ;;  %v4226_v18 = vadd.f32 %v8635_v29, %v9398_v6 }
 0x4f5   : > { %v5369_v40 = vmul.f32 %v8811_v44, %v5335_v60  ;;  %6380 = vmatmul.msk.f32.gmra.mxu1 %vm292_vm1, %v5105_v20  ;;  %v5059_v60 = vadd.f32 %v8920_v52, %v4781_v1  ;;  %v5001_v61 = vpop.f32.mrf.mxu0  ;;  %v4504_v47 = vadd.f32 %v8944_v27, %v4226_v18  ;;  %v9399_v27 = vld [vmem:[#allocation62_spill] sm:$0xff] }
 0x4f7   : > { %v5403_v39 = vadd.f32 %v8817_v56, %v5369_v40  ;;  %v4782_v40 = vadd.f32 %v8935_v24, %v4503_v12  ;;  %v5108_v24 = vld [vmem:[#allocation2 + $0x19a] sm:$0xff] }
 0x4f9   : > { %v5467_v33 = vadd.f32 %v6396_v10, %v5403_v39  ;;  %v5060_v22 = vadd.f32 %v8940_v38, %v4782_v40 }
 0x4fa   : > { %v5264_v16 = vpop.f32.mrf.mxu1 }
 0x4fb   : > { %5499 = vst.msk [vmem:[%s8829_s30 + $0x58] sm:$0xff] %vm292_vm1, %v5467_v33  ;;  %v5336_v55 = vadd.f32 %v5264_v16, %v5058_v17  ;;  %v4726_v33 = vpop.f32.mrf.mxu3 }
 0x4fd   : > { %v5370_v9 = vmul.f32 %v8811_v44, %v5336_v55  ;;  %6381 = vmatmul.msk.f32.gmra.mxu1 %vm292_vm1, %v8789_v4  ;;  %v4447_v4 = vpop.f32.mrf.mxu2  ;;  %v5004_v55 = vpop.f32.mrf.mxu0 }
 0x4ff   : > { %v5404_v0 = vadd.f32 %v8817_v56, %v5370_v9  ;;  %v6399_v9 = vld [vmem:[%s6514_s8 + $0xc1] sm:$0xff] }
 0x501   : > { %v5468_v46 = vadd.f32 %v6397_v57, %v5404_v0  ;;  %v4227_v57 = vadd.f32 %v8650_v50, %v9399_v27  ;;  %v6400_v50 = vld [vmem:[%s6514_s8 + $0xc9] sm:$0xff] }
 0x502   : > { %v5267_v20 = vpop.f32.mrf.mxu1 }
 0x503   : > { %5500 = vst.msk [vmem:[%s8829_s30 + $0x60] sm:$0xff] %vm292_vm1, %v5468_v46  ;;  %v5337_v28 = vadd.f32 %v5267_v20, %v5059_v60  ;;  %v4505_v63 = vadd.f32 %v4441_v25, %v4227_v57  ;;  %v5109_v46 = vld [vmem:[#allocation2 + $0x1a2] sm:$0xff]  ;;  %v4729_v60 = vpop.f32.mrf.mxu3  ;;  %v4228_v25 = vadd.f32 %v8663_v7, %v8459_v19  ;;  %v4229_v19 = vadd.f32 %v8675_v30, %v8471_v36 }
 0x504   : > { %v6402_v57 = vld [vmem:[%s6514_s8 + $0xe1] sm:$0xff]  ;;  %v4230_v36 = vadd.f32 %v8687_v15, %v8483_v58  ;;  %v4231_v58 = vadd.f32 %v8699_v54, %v8496_v35  ;;  %v4232_v35 = vadd.f32 %v8711_v11, %v8509_v37 }
 0x505   : > { %v5371_v10 = vmul.f32 %v8811_v44, %v5337_v28  ;;  %6382 = vmatmul.msk.f32.gmra.mxu1 %vm292_vm1, %v8798_v13  ;;  %v4783_v13 = vadd.f32 %v4717_v59, %v4504_v47  ;;  %v4450_v29 = vpop.f32.mrf.mxu2  ;;  %v4784_v20 = vadd.f32 %v4720_v62, %v4505_v63  ;;  %v5007_v40 = vpop.f32.mrf.mxu0 }
 0x507   : > { %v5405_v52 = vadd.f32 %v8817_v56, %v5371_v10  ;;  %v5061_v0 = vadd.f32 %v8960_v31, %v4783_v13  ;;  %v5062_v18 = vadd.f32 %v4998_v53, %v4784_v20  ;;  %v6403_v20 = vld [vmem:[%s6514_s8 + $0xf1] sm:$0xff] }
 0x509   : > { %v5469_v39 = vadd.f32 %v6398_v34, %v5405_v52  ;;  %v4506_v34 = vadd.f32 %v4444_v45, %v4228_v25 }
 0x50a   : > { %v5270_v17 = vpop.f32.mrf.mxu1 }
 0x50b   : > { %5501 = vst.msk [vmem:[%s8829_s30 + $0x68] sm:$0xff] %vm292_vm1, %v5469_v39  ;;  %v5338_v16 = vadd.f32 %v5270_v17, %v5060_v22  ;;  %v4785_v47 = vadd.f32 %v4723_v23, %v4506_v34  ;;  %v4732_v22 = vpop.f32.mrf.mxu3  ;;  %v6401_v17 = vld [vmem:[%s6514_s8 + $0xd9] sm:$0xff] }
 0x50d   : > { %v5372_v1 = vmul.f32 %v8811_v44, %v5338_v16  ;;  %6383 = vmatmul.msk.f32.gmra.mxu1 %vm292_vm1, %v5108_v24  ;;  %v4453_v10 = vpop.f32.mrf.mxu2  ;;  %v4507_v24 = vadd.f32 %v4447_v4, %v4229_v19  ;;  %v5010_v45 = vpop.f32.mrf.mxu0  ;;  %v5063_v53 = vadd.f32 %v5001_v61, %v4785_v47 }
 0x50f   : > { %v5406_v38 = vadd.f32 %v8817_v56, %v5372_v1 }
 0x511   : > { %v5470_v43 = vadd.f32 %v6399_v9, %v5406_v38  ;;  %v4786_v9 = vadd.f32 %v4726_v33, %v4507_v24  ;;  %v4508_v38 = vadd.f32 %v4450_v29, %v4230_v36  ;;  %v4509_v29 = vadd.f32 %v4453_v10, %v4231_v58  ;;  %v6406_v36 = vld [vmem:[%s6514_s8 + $0x111] sm:$0xff] }
 0x512   : > { %v5273_v12 = vpop.f32.mrf.mxu1  ;;  %v4233_v24 = vadd.f32 %v8723_v48, %v8522_v42  ;;  %v4234_v42 = vadd.f32 %v8735_v5, %v8535_v51  ;;  %v4235_v51 = vadd.f32 %v8745_v49, %v8548_v32  ;;  %v4236_v32 = vadd.f32 %v8753_v21, %v8561_v14 }
 0x513   : > { %5502 = vst.msk [vmem:[%s8829_s30 + $0x70] sm:$0xff] %vm292_vm1, %v5470_v43  ;;  %v5339_v59 = vadd.f32 %v5273_v12, %v5061_v0  ;;  %v4735_v4 = vpop.f32.mrf.mxu3  ;;  %v5064_v61 = vadd.f32 %v5004_v55, %v4786_v9  ;;  %v4788_v34 = vadd.f32 %v4732_v22, %v4509_v29  ;;  %v4237_v14 = vadd.f32 %v8761_v41, %v8574_v26 }
 0x515   : > { %v5373_v28 = vmul.f32 %v8811_v44, %v5339_v59  ;;  %6384 = vmatmul.msk.f32.gmra.mxu1 %vm292_vm1, %v5109_v46  ;;  %v4456_v13 = vpop.f32.mrf.mxu2  ;;  %v5013_v0 = vpop.f32.mrf.mxu0  ;;  %v4787_v46 = vadd.f32 %v4729_v60, %v4508_v38 }
 0x516   : > { %v4510_v10 = vadd.f32 %v4456_v13, %v4232_v35 }
 0x517   : > { %v5407_v31 = vadd.f32 %v8817_v56, %v5373_v28  ;;  %v5065_v55 = vadd.f32 %v5007_v40, %v4787_v46  ;;  %v6407_v46 = vld [vmem:[%s6514_s8 + $0x121] sm:$0xff] }
 0x519   : > { %v5471_v6 = vadd.f32 %v6400_v50, %v5407_v31 }
 0x51a   : > { %v5276_v52 = vpop.f32.mrf.mxu1 }
 0x51b   : > { %5503 = vst.msk [vmem:[%s8829_s30 + $0x78] sm:$0xff] %vm292_vm1, %v5471_v6  ;;  %v5340_v62 = vadd.f32 %v5276_v52, %v5062_v18  ;;  %v4738_v50 = vpop.f32.mrf.mxu3  ;;  %v6404_v52 = vld [vmem:[%s6514_s8 + $0xf9] sm:$0xff] }
 0x51d   : > { %v5374_v39 = vmul.f32 %v8811_v44, %v5340_v62  ;;  %v4459_v33 = vpop.f32.mrf.mxu2  ;;  %v5016_v60 = vpop.f32.mrf.mxu0  ;;  %v5066_v62 = vadd.f32 %v5010_v45, %v4788_v34  ;;  %v6408_v34 = vld [vmem:[%s6514_s8 + $0x129] sm:$0xff] }
 0x51f   : > { %v5408_v7 = vadd.f32 %v8817_v56, %v5374_v39 }
 0x521   : > { %v5472_v16 = vadd.f32 %v6401_v17, %v5408_v7  ;;  %v4789_v17 = vadd.f32 %v4735_v4, %v4510_v10  ;;  %v6405_v7 = vld [vmem:[%s6514_s8 + $0x109] sm:$0xff] }
 0x522   : > { %v5279_v1 = vpop.f32.mrf.mxu1 }
 0x523   : > { %5504 = vst.msk [vmem:[%s8829_s30 + $0x80] sm:$0xff] %vm292_vm1, %v5472_v16  ;;  %v5341_v23 = vadd.f32 %v5279_v1, %v5063_v53  ;;  %v4741_v22 = vpop.f32.mrf.mxu3  ;;  %v4511_v53 = vadd.f32 %v4459_v33, %v4233_v24  ;;  %v5067_v13 = vadd.f32 %v5013_v0, %v4789_v17 }
 0x525   : > { %v5375_v27 = vmul.f32 %v8811_v44, %v5341_v23  ;;  %v4462_v18 = vpop.f32.mrf.mxu2  ;;  %v5019_v37 = vpop.f32.mrf.mxu0  ;;  %v4790_v9 = vadd.f32 %v4738_v50, %v4511_v53  ;;  %v6410_v53 = vld [vmem:[%s6514_s8 + $0x141] sm:$0xff] }
 0x527   : > { %v5409_v30 = vadd.f32 %v8817_v56, %v5375_v27 }
 0x529   : > { %v5473_v63 = vadd.f32 %v6402_v57, %v5409_v30  ;;  %v4512_v30 = vadd.f32 %v4462_v18, %v4234_v42 }
 0x52a   : > { %v5282_v43 = vpop.f32.mrf.mxu1 }
 0x52b   : > { %5505 = vst.msk [vmem:[%s8829_s30 + $0x88] sm:$0xff] %vm292_vm1, %v5473_v63  ;;  %v5342_v12 = vadd.f32 %v5282_v43, %v5064_v61  ;;  %v4744_v57 = vpop.f32.mrf.mxu3  ;;  %v5068_v63 = vadd.f32 %v5016_v60, %v4790_v9 }
 0x52d   : > { %v5376_v59 = vmul.f32 %v8811_v44, %v5342_v12  ;;  %v4465_v16 = vpop.f32.mrf.mxu2  ;;  %v5022_v4 = vpop.f32.mrf.mxu0  ;;  %v4791_v12 = vadd.f32 %v4741_v22, %v4512_v30  ;;  %v6411_v30 = vld [vmem:[%s6514_s8 + $0x151] sm:$0xff] }
 0x52f   : > { %v5410_v15 = vadd.f32 %v8817_v56, %v5376_v59 }
 0x531   : > { %v5474_v28 = vadd.f32 %v6403_v20, %v5410_v15  ;;  %v4513_v20 = vadd.f32 %v4465_v16, %v4235_v51  ;;  %v5069_v15 = vadd.f32 %v5019_v37, %v4791_v12 }
 0x532   : > { %v5285_v25 = vpop.f32.mrf.mxu1 }
 0x533   : > { %5506 = vst.msk [vmem:[%s8829_s30 + $0x90] sm:$0xff] %vm292_vm1, %v5474_v28  ;;  %v5343_v31 = vadd.f32 %v5285_v25, %v5065_v55  ;;  %v4747_v59 = vpop.f32.mrf.mxu3  ;;  %v4792_v25 = vadd.f32 %v4744_v57, %v4513_v20  ;;  %v9402_v20 = vld [vmem:[#allocation6_spill] sm:$0xff] }
 0x535   : > { %v5377_v6 = vmul.f32 %v8811_v44, %v5343_v31  ;;  %v4468_v61 = vpop.f32.mrf.mxu2  ;;  %v5025_v28 = vpop.f32.mrf.mxu0  ;;  %v5070_v18 = vadd.f32 %v5022_v4, %v4792_v25 }
 0x536   : > { %v4514_v60 = vadd.f32 %v4468_v61, %v4236_v32 }
 0x537   : > { %v5411_v54 = vadd.f32 %v8817_v56, %v5377_v6 }
 0x538   : > { %v4793_v10 = vadd.f32 %v4747_v59, %v4514_v60  ;;  %v9401_v59 = vld [vmem:[#allocation3_spill] sm:$0xff] }
 0x539   : > { %v5475_v40 = vadd.f32 %v6404_v52, %v5411_v54  ;;  %v6413_v60 = vld [vmem:[%s6514_s8 + $0x169] sm:$0xff] }
 0x53a   : > { %v5288_v47 = vpop.f32.mrf.mxu1 }
 0x53b   : > { %5507 = vst.msk [vmem:[%s8829_s30 + $0x98] sm:$0xff] %vm292_vm1, %v5475_v40  ;;  %v5344_v39 = vadd.f32 %v5288_v47, %v5066_v62  ;;  %v4750_v52 = vpop.f32.mrf.mxu3 }
 0x53d   : > { %v5378_v19 = vmul.f32 %v8811_v44, %v5344_v39  ;;  %v4471_v50 = vpop.f32.mrf.mxu2  ;;  %v5028_v40 = vpop.f32.mrf.mxu0  ;;  %v6409_v39 = vld [vmem:[%s6514_s8 + $0x139] sm:$0xff] }
 0x53e   : > { %v4515_v22 = vadd.f32 %v4471_v50, %v4237_v14 }
 0x53f   : > { %v5412_v11 = vadd.f32 %v8817_v56, %v5378_v19  ;;  %v5071_v19 = vadd.f32 %v5025_v28, %v4793_v10 }
 0x541   : > { %v5476_v45 = vadd.f32 %v6405_v7, %v5412_v11  ;;  %v4794_v11 = vadd.f32 %v4750_v52, %v4515_v22 }
 0x542   : > { %v5291_v1 = vpop.f32.mrf.mxu1 }
 0x543   : > { %5508 = vst.msk [vmem:[%s8829_s30 + $0xa0] sm:$0xff] %vm292_vm1, %v5476_v45  ;;  %v5345_v23 = vadd.f32 %v5291_v1, %v5067_v13  ;;  %v4753_v37 = vpop.f32.mrf.mxu3  ;;  %v4238_v45 = vadd.f32 %v8769_v3, %v8587_v8  ;;  %v5072_v9 = vadd.f32 %v5028_v40, %v4794_v11  ;;  %v9400_v8 = vld [vmem:[#allocation4_spill] sm:$0xff] }
 0x544   : > { %v4239_v3 = vadd.f32 %v9400_v8, %v8600_v2  ;;  %v4240_v2 = vadd.f32 %v9402_v20, %v9401_v59 }
 0x545   : > { %v5379_v27 = vmul.f32 %v8811_v44, %v5345_v23  ;;  %v4474_v47 = vpop.f32.mrf.mxu2  ;;  %v5031_v26 = vpop.f32.mrf.mxu0 }
 0x546   : > { %v4516_v1 = vadd.f32 %v4474_v47, %v4238_v45 }
 0x547   : > { %v5413_v48 = vadd.f32 %v8817_v56, %v5379_v27 }
 0x549   : > { %v5477_v38 = vadd.f32 %v6406_v36, %v5413_v48  ;;  %v4795_v36 = vadd.f32 %v4753_v37, %v4516_v1 }
 0x54a   : > { %v5294_v43 = vpop.f32.mrf.mxu1 }
 0x54b   : > { %5509 = vst.msk [vmem:[%s8829_s30 + $0xa8] sm:$0xff] %vm292_vm1, %v5477_v38  ;;  %v5346_v0 = vadd.f32 %v5294_v43, %v5068_v63  ;;  %v4756_v48 = vpop.f32.mrf.mxu3  ;;  %v5073_v43 = vadd.f32 %v5031_v26, %v4795_v36 }
 0x54d   : > { %v5380_v33 = vmul.f32 %v8811_v44, %v5346_v0  ;;  %v4477_v13 = vpop.f32.mrf.mxu2  ;;  %v5034_v38 = vpop.f32.mrf.mxu0 }
 0x54e   : > { %v4517_v63 = vadd.f32 %v4477_v13, %v4239_v3  ;;  %v6416_v3 = vld [vmem:[%s6514_s8 + $0x189] sm:$0xff] }
 0x54f   : > { %v5414_v5 = vadd.f32 %v8817_v56, %v5380_v33 }
 0x551   : > { %v5478_v58 = vadd.f32 %v6407_v46, %v5414_v5  ;;  %v4796_v46 = vadd.f32 %v4756_v48, %v4517_v63  ;;  %v6412_v5 = vld [vmem:[%s6514_s8 + $0x159] sm:$0xff] }
 0x552   : > { %v5297_v29 = vpop.f32.mrf.mxu1 }
 0x553   : > { %5510 = vst.msk [vmem:[%s8829_s30 + $0xb0] sm:$0xff] %vm292_vm1, %v5478_v58  ;;  %v5347_v55 = vadd.f32 %v5297_v29, %v5069_v15  ;;  %v4759_v15 = vpop.f32.mrf.mxu3 }
 0x555   : > { %v5381_v31 = vmul.f32 %v8811_v44, %v5347_v55  ;;  %v4480_v0 = vpop.f32.mrf.mxu2  ;;  %v5074_v55 = vadd.f32 %v5034_v38, %v4796_v46 }
 0x556   : > { %v4518_v29 = vadd.f32 %v4480_v0, %v4240_v2 }
 0x557   : > { %v5415_v49 = vadd.f32 %v8817_v56, %v5381_v31  ;;  %v5037_v31 = vpop.f32.mrf.mxu0 }
 0x558   : > { %v4797_v32 = vadd.f32 %v4759_v15, %v4518_v29 }
 0x559   : > { %v5479_v6 = vadd.f32 %v6408_v34, %v5415_v49 }
 0x55a   : > { %v5300_v35 = vpop.f32.mrf.mxu1 }
 0x55b   : > { %5511 = vst.msk [vmem:[%s8829_s30 + $0xb8] sm:$0xff] %vm292_vm1, %v5479_v6  ;;  %v5348_v54 = vadd.f32 %v5300_v35, %v5070_v18  ;;  %v9403_v6 = vld [vmem:[#allocation46_spill] sm:$0xff] }
 0x55c   : > { %v9404_v18 = vld [vmem:[#allocation50_spill] sm:$0xff] }
 0x55d   : > { %v5382_v62 = vmul.f32 %v8811_v44, %v5348_v54  ;;  %v4483_v34 = vpop.f32.mrf.mxu2  ;;  %v4241_v52 = vadd.f32 %v9404_v18, %v9403_v6  ;;  %v4762_v54 = vpop.f32.mrf.mxu3 }
 0x55f   : > { %v5416_v21 = vadd.f32 %v8817_v56, %v5382_v62  ;;  %v4519_v10 = vadd.f32 %v4483_v34, %v4241_v52  ;;  %v5075_v62 = vadd.f32 %v5037_v31, %v4797_v32  ;;  %v5040_v14 = vpop.f32.mrf.mxu0 }
 0x561   : > { %v5480_v17 = vadd.f32 %v6409_v39, %v5416_v21  ;;  %v4798_v21 = vadd.f32 %v4762_v54, %v4519_v10 }
 0x562   : > { %v5303_v7 = vpop.f32.mrf.mxu1 }
 0x563   : > { %5512 = vst.msk [vmem:[%s8829_s30 + $0xc0] sm:$0xff] %vm292_vm1, %v5480_v17  ;;  %v5349_v24 = vadd.f32 %v5303_v7, %v5071_v19  ;;  %v6414_v19 = vld [vmem:[%s6514_s8 + $0x171] sm:$0xff]  ;;  %v9405_v7 = vld [vmem:[#allocation5_spill] sm:$0xff] }
 0x565   : > { %v5383_v16 = vmul.f32 %v8811_v44, %v5349_v24  ;;  %v4486_v17 = vpop.f32.mrf.mxu2  ;;  %v9406_v24 = vld [vmem:[#allocation8_spill] sm:$0xff]  ;;  %v4765_v26 = vpop.f32.mrf.mxu3 }
 0x566   : > { %v4242_v37 = vadd.f32 %v9406_v24, %v9405_v7 }
 0x567   : > { %v5417_v41 = vadd.f32 %v8817_v56, %v5383_v16  ;;  %v5076_v16 = vadd.f32 %v5040_v14, %v4798_v21 }
 0x569   : > { %v5481_v23 = vadd.f32 %v6410_v53, %v5417_v41  ;;  %v4520_v53 = vadd.f32 %v4486_v17, %v4242_v37 }
 0x56a   : > { %v5306_v27 = vpop.f32.mrf.mxu1 }
 0x56b   : > { %5513 = vst.msk [vmem:[%s8829_s30 + $0xc8] sm:$0xff] %vm292_vm1, %v5481_v23  ;;  %v5350_v57 = vadd.f32 %v5306_v27, %v5072_v9  ;;  %v4799_v1 = vadd.f32 %v4765_v26, %v4520_v53  ;;  %v5043_v9 = vpop.f32.mrf.mxu0  ;;  %v6415_v27 = vld [vmem:[%s6514_s8 + $0x181] sm:$0xff] }
 0x56d   : > { %v5384_v42 = vmul.f32 %v8811_v44, %v5350_v57  ;;  %v5077_v36 = vadd.f32 %v5043_v9, %v4799_v1 }
 0x56f   : > { %v5418_v4 = vadd.f32 %v8817_v56, %v5384_v42 }
 0x571   : > { %v5482_v61 = vadd.f32 %v6411_v30, %v5418_v4 }
 0x572   : > { %v5309_v12 = vpop.f32.mrf.mxu1 }
 0x573   : > { %5514 = vst.msk [vmem:[%s8829_s30 + $0xd0] sm:$0xff] %vm292_vm1, %v5482_v61  ;;  %v5351_v33 = vadd.f32 %v5309_v12, %v5073_v43 }
 0x575   : > { %v5385_v51 = vmul.f32 %v8811_v44, %v5351_v33 }
 0x577   : > { %v5419_v58 = vadd.f32 %v8817_v56, %v5385_v51 }
 0x579   : > { %v5483_v28 = vadd.f32 %v6412_v5, %v5419_v58 }
 0x57a   : > { %v5312_v50 = vpop.f32.mrf.mxu1 }
 0x57b   : > { %5515 = vst.msk [vmem:[%s8829_s30 + $0xd8] sm:$0xff] %vm292_vm1, %v5483_v28  ;;  %v5352_v25 = vadd.f32 %v5312_v50, %v5074_v55 }
 0x57d   : > { %v5386_v49 = vmul.f32 %v8811_v44, %v5352_v25 }
 0x57f   : > { %v5420_v35 = vadd.f32 %v8817_v56, %v5386_v49 }
 0x581   : > { %v5484_v40 = vadd.f32 %v6413_v60, %v5420_v35 }
 0x582   : > { %v5315_v47 = vpop.f32.mrf.mxu1 }
 0x583   : > { %5516 = vst.msk [vmem:[%s8829_s30 + $0xe0] sm:$0xff] %vm292_vm1, %v5484_v40  ;;  %v5353_v39 = vadd.f32 %v5315_v47, %v5075_v62 }
 0x585   : > { %v5387_v22 = vmul.f32 %v8811_v44, %v5353_v39 }
 0x587   : > { %v5421_v11 = vadd.f32 %v8817_v56, %v5387_v22 }
 0x589   : > { %v5485_v45 = vadd.f32 %v6414_v19, %v5421_v11 }
 0x58a   : > { %v5318_v41 = vpop.f32.mrf.mxu1 }
 0x58b   : > { %5517 = vst.msk [vmem:[%s8829_s30 + $0xe8] sm:$0xff] %vm292_vm1, %v5485_v45  ;;  %v5354_v13 = vadd.f32 %v5318_v41, %v5076_v16 }
 0x58d   : > { %v5388_v23 = vmul.f32 %v8811_v44, %v5354_v13 }
 0x58f   : > { %v5422_v57 = vadd.f32 %v8817_v56, %v5388_v23 }
 0x591   : > { %v5486_v42 = vadd.f32 %v6415_v27, %v5422_v57 }
 0x592   : > { %v5321_v48 = vpop.f32.mrf.mxu1 }
 0x593   : > { %5518 = vst.msk [vmem:[%s8829_s30 + $0xf0] sm:$0xff] %vm292_vm1, %v5486_v42  ;;  %v5355_v30 = vadd.f32 %v5321_v48, %v5077_v36 }
 0x595   : > { %v5389_v8 = vmul.f32 %v8811_v44, %v5355_v30 }
 0x597   : > { %v5423_v4 = vadd.f32 %v8817_v56, %v5389_v8 }
 0x599   : > { %v5487_v38 = vadd.f32 %v6416_v3, %v5423_v4 }
 0x59b   : > { %5519 = vst.msk [vmem:[%s8829_s30 + $0xf8] sm:$0xff] %vm292_vm1, %v5487_v38 }
 0x59c PF: > { %s15_s18 = sadd.s32 1, %s6445_s18  }
 0x59d   : > { %p12_p4 = scmp.ge.s32.totalorder %s15_s18, 4  }
 0x59f   :  { %14 = sbr.rel (!%p12_p4) target bundleno = 1 (0x1), region = 90 }

</bundles_post_ra>
